<compile_context>
chip_gen: v6e
topology: v6e:2x2x1
jax: 0.10.0
libtpu: 0.0.40
codegen_flags: <defaults>
</compile_context>

<pallas_src>
import functools
import math

import jax
import jax.numpy as jnp
from jax.experimental import pallas as pl
from jax.experimental.pallas import tpu as pltpu


# -----------------------------------------------------------------------------
# Fused kernel: for one batch element x_b, build its neighborhood in-register,
# run the surrogate model on gaussian perturbations of every instance
# (x_b itself + its num_samples neighbors) and emit, per instance j:
#     A_j = pert^T diag(w) pert      (F, F)
#     c_j = pert^T (w * y)           (F, 1)
# where w_i = exp(-||pert_i||^2 / kw^2) and y_i = sigmoid(logit_diff(z_i)).
# The explanation is solve(A_j + ridge*I, c_j), done outside (F x F is tiny).
# -----------------------------------------------------------------------------
def _stability_kernel(x_ref, noise_ref, pert_ref, wd_ref, bd_ref,
                      a_ref, c_ref, *, stddev, inv_kw2):
    x = x_ref[0]            # (1, 1, F)   the instance itself
    noise = noise_ref[0]    # (J, 1, F)   row 0 is zeros -> instance, rows 1.. -> neighbors
    pert = pert_ref[0]      # (J, P, F)   LIME perturbations per explanation
    wd = wd_ref[...]        # (1, F)      W[:,1] - W[:,0]
    bd = bd_ref[...]        # (1, 1)      b[:,1] - b[:,0]

    # neighborhood(x) fused: base[0] = x, base[1..] = x + stddev * N(0,1)
    base = x + stddev * noise            # (J, 1, F)
    z = base + pert                      # (J, P, F)

    # surrogate predict_proba, class 1 of a 2-class softmax == sigmoid(logit diff)
    # TODO(synk): hard-codes the 2-class case ("class 1"), like the original script.
    logit = jnp.sum(z * wd, axis=-1, keepdims=True) + bd          # (J, P, 1)
    y = pl.reciprocal(1.0 + jnp.exp(-logit), approx=True)         # (J, P, 1)

    # LIME exponential distance kernel; apply sqrt(w) once and share it.
    d2 = jnp.sum(pert * pert, axis=-1, keepdims=True)             # (J, P, 1)
    sw = jnp.exp(d2 * (-0.5 * inv_kw2))                           # sqrt(exp(-d2/kw^2))
    ps = sw * pert                                                # (J, P, F)
    wy = sw * y                                                   # (J, P, 1)

    # Weighted Gram matrices on the MXU.  J is a small compile-time constant;
    # a static unrolled loop with plain 2-D dots keeps Mosaic lowering trivial,
    # and the (F, P) transpose is computed once per instance and shared.
    J = pert.shape[0]
    for j in range(J):
        ps_j = ps[j]                                              # (P, F)
        pst_j = ps_j.T                                            # (F, P)  shared
        a_ref[0, j] = jnp.dot(ps_j.T, ps_j,
                              preferred_element_type=jnp.float32)  # (F, F)
        c_ref[0, j] = jnp.dot(pst_j, wy[j],
                              preferred_element_type=jnp.float32)  # (F, 1)


# -----------------------------------------------------------------------------
# Full forward (equivalent of Stability_Regualrizer.forward)
# -----------------------------------------------------------------------------
def stability_regularizer_forward(x, W, b, key, *, num_samples, num_perturb, stddev):
    B, F = x.shape
    J = 1 + num_samples          # instance itself + its neighborhood
    P = num_perturb
    k_nb, k_pert = jax.random.split(key)

    x4 = x.reshape(B, 1, 1, F)

    # Neighborhood noise; row 0 is zeros so instance 0 of every batch element is x itself.
    nb_noise = jax.random.normal(k_nb, (B, num_samples, 1, F), dtype=x.dtype)
    noise0 = jnp.concatenate(
        [jnp.zeros((B, 1, 1, F), dtype=x.dtype), nb_noise], axis=1)    # (B, J, 1, F)

    # LIME surrogate perturbations for every explanation.
    pert = jax.random.normal(k_pert, (B, J, P, F), dtype=x.dtype)      # (B, J, P, F)

    # 2-class softmax prob of class 1 == sigmoid of the logit difference.
    wd = (W[:, 1] - W[:, 0]).reshape(1, F).astype(jnp.float32)
    bd = (b[:, 1] - b[:, 0]).reshape(1, 1).astype(jnp.float32)

    kernel_width = math.sqrt(F) * 0.75       # LIME default kernel width
    inv_kw2 = 1.0 / (kernel_width * kernel_width)

    A, c = pl.pallas_call(
        functools.partial(_stability_kernel, stddev=float(stddev), inv_kw2=inv_kw2),
        out_shape=(
            jax.ShapeDtypeStruct((B, J, F, F), jnp.float32),
            jax.ShapeDtypeStruct((B, J, F, 1), jnp.float32),
        ),
        grid=(B,),
        in_specs=[
            pl.BlockSpec((1, 1, 1, F), lambda i: (i, 0, 0, 0)),
            pl.BlockSpec((1, J, 1, F), lambda i: (i, 0, 0, 0)),
            pl.BlockSpec((1, J, P, F), lambda i: (i, 0, 0, 0)),
            pl.BlockSpec((1, F), lambda i: (0, 0)),
            pl.BlockSpec((1, 1), lambda i: (0, 0)),
        ],
        out_specs=(
            pl.BlockSpec((1, J, F, F), lambda i: (i, 0, 0, 0)),
            pl.BlockSpec((1, J, F, 1), lambda i: (i, 0, 0, 0)),
        ),
        compiler_params=pltpu.CompilerParams(
            dimension_semantics=("parallel",)),      # v7x: 2 TCs split the batch
    )(x4, noise0, pert, wd, bd)

    # Tiny F x F ridge solve (LIME uses Ridge(alpha=1)) + final reduction: plain XLA.
    ridge = 1.0
    eye = jnp.eye(F, dtype=jnp.float32)
    coefs = jnp.linalg.solve(A + ridge * eye, c)[..., 0]      # (B, J, F)

    exp_true = coefs[:, :1, :]        # explanation of x_i
    exp_nb = coefs[:, 1:, :]          # explanations of its neighborhood
    nb_mean = jnp.mean(exp_nb, axis=1, keepdims=True)
    return jnp.mean((nb_mean - exp_true) ** 2)


if __name__ == "__main__":
    key = jax.random.PRNGKey(0)
    kx, kw, kb, kn = jax.random.split(key, 4)

    B, F = 2, 16            # batch, n_input
    num_samples = 4         # neighborhood size (self.num_samples)
    num_perturb = 128       # LIME surrogate perturbations per explanation
    stddev = 0.1
    n_classes = 2

    x = jax.random.normal(kx, (B, F), dtype=jnp.float32)
    # deterministic surrogate for self.model.predict_proba (logistic regression)
    W = jax.random.normal(kw, (F, n_classes), dtype=jnp.float32) * 0.5
    b = jax.random.normal(kb, (1, n_classes), dtype=jnp.float32) * 0.1

    loss = stability_regularizer_forward(
        x, W, b, kn,
        num_samples=num_samples, num_perturb=num_perturb, stddev=stddev,
    )
    jax.block_until_ready(loss)
    print("KERNEL_OK")
</pallas_src>

<mosaic_0001>
module attributes {stable_mosaic.version = 11 : i64} {
  func.func @_stability_kernel(%arg0: i32, %arg1: memref<1x1x1x16xf32, #tpu.memory_space<vmem>>, %arg2: memref<1x5x1x16xf32, #tpu.memory_space<vmem>>, %arg3: memref<1x5x128x16xf32, #tpu.memory_space<vmem>>, %arg4: memref<1x16xf32, #tpu.memory_space<vmem>>, %arg5: memref<1x1xf32, #tpu.memory_space<vmem>>, %arg6: memref<1x5x16x16xf32, #tpu.memory_space<vmem>>, %arg7: memref<1x5x16x1xf32, #tpu.memory_space<vmem>>) attributes {dimension_semantics = [#tpu.dimension_semantics<parallel>], iteration_bounds = array<i64: 2>, scalar_prefetch = 0 : i64, scratch_operands = 0 : i64, tpu.core_type = #tpu.core_type<tc>, window_params = [{transform_indices = @transform_0, window_bounds = array<i64: 1, 1, 1, 16>}, {transform_indices = @transform_1, window_bounds = array<i64: 1, 5, 1, 16>}, {transform_indices = @transform_2, window_bounds = array<i64: 1, 5, 128, 16>}, {pipeline_mode = #tpu.pipeline_mode<synchronous>, transform_indices = @transform_3, window_bounds = array<i64: 1, 16>}, {pipeline_mode = #tpu.pipeline_mode<synchronous>, transform_indices = @transform_4, window_bounds = array<i64: 1, 1>}, {transform_indices = @transform_5, window_bounds = array<i64: 1, 5, 16, 16>}, {transform_indices = @transform_6, window_bounds = array<i64: 1, 5, 16, 1>}]} {
    %c0 = arith.constant 0 : index
    %c0_0 = arith.constant 0 : index
    %c0_1 = arith.constant 0 : index
    %c0_2 = arith.constant 0 : index
    %0 = vector.load %arg1[%c0, %c0_0, %c0_1, %c0_2] : memref<1x1x1x16xf32, #tpu.memory_space<vmem>>, vector<1x1x1x16xf32>
    %1 = vector.shape_cast %0 : vector<1x1x1x16xf32> to vector<1x1x16xf32>
    %c0_3 = arith.constant 0 : index
    %c0_4 = arith.constant 0 : index
    %c0_5 = arith.constant 0 : index
    %c0_6 = arith.constant 0 : index
    %2 = vector.load %arg2[%c0_3, %c0_4, %c0_5, %c0_6] : memref<1x5x1x16xf32, #tpu.memory_space<vmem>>, vector<1x5x1x16xf32>
    %3 = vector.shape_cast %2 : vector<1x5x1x16xf32> to vector<5x1x16xf32>
    %c0_7 = arith.constant 0 : index
    %c0_8 = arith.constant 0 : index
    %c0_9 = arith.constant 0 : index
    %c0_10 = arith.constant 0 : index
    %4 = vector.load %arg3[%c0_7, %c0_8, %c0_9, %c0_10] : memref<1x5x128x16xf32, #tpu.memory_space<vmem>>, vector<1x5x128x16xf32>
    %5 = vector.shape_cast %4 : vector<1x5x128x16xf32> to vector<5x128x16xf32>
    %c0_11 = arith.constant 0 : index
    %c0_12 = arith.constant 0 : index
    %6 = vector.load %arg4[%c0_11, %c0_12] : memref<1x16xf32, #tpu.memory_space<vmem>>, vector<1x16xf32>
    %c0_13 = arith.constant 0 : index
    %c0_14 = arith.constant 0 : index
    %7 = vector.load %arg5[%c0_13, %c0_14] : memref<1x1xf32, #tpu.memory_space<vmem>>, vector<1x1xf32>
    %cst = arith.constant 1.000000e-01 : f32
    %8 = vector.broadcast %cst : f32 to vector<5x1x16xf32>
    %9 = arith.mulf %8, %3 : vector<5x1x16xf32>
    %10 = vector.broadcast %1 : vector<1x1x16xf32> to vector<5x1x16xf32>
    %11 = arith.addf %10, %9 : vector<5x1x16xf32>
    %12 = vector.broadcast %11 : vector<5x1x16xf32> to vector<5x128x16xf32>
    %13 = arith.addf %12, %5 : vector<5x128x16xf32>
    %14 = vector.shape_cast %6 : vector<1x16xf32> to vector<1x1x16xf32>
    %15 = vector.broadcast %14 : vector<1x1x16xf32> to vector<5x128x16xf32>
    %16 = arith.mulf %13, %15 : vector<5x128x16xf32>
    %cst_15 = arith.constant dense<0.000000e+00> : vector<5x128xf32>
    %17 = vector.multi_reduction <add>, %16, %cst_15 [2] : vector<5x128x16xf32> to vector<5x128xf32>
    %18 = vector.shape_cast %17 : vector<5x128xf32> to vector<5x128x1xf32>
    %19 = vector.shape_cast %7 : vector<1x1xf32> to vector<1x1x1xf32>
    %20 = vector.broadcast %19 : vector<1x1x1xf32> to vector<5x128x1xf32>
    %21 = arith.addf %18, %20 : vector<5x128x1xf32>
    %cst_16 = arith.constant 0.000000e+00 : f32
    %22 = vector.broadcast %cst_16 : f32 to vector<5x128x1xf32>
    %23 = arith.subf %22, %21 : vector<5x128x1xf32>
    %24 = math.exp %23 : vector<5x128x1xf32>
    %cst_17 = arith.constant 1.000000e+00 : f32
    %25 = vector.broadcast %cst_17 : f32 to vector<5x128x1xf32>
    %26 = arith.addf %25, %24 : vector<5x128x1xf32>
    %27 = tpu.reciprocal %26 {approx = true} : vector<5x128x1xf32> -> vector<5x128x1xf32>
    %28 = arith.mulf %5, %5 : vector<5x128x16xf32>
    %cst_18 = arith.constant dense<0.000000e+00> : vector<5x128xf32>
    %29 = vector.multi_reduction <add>, %28, %cst_18 [2] : vector<5x128x16xf32> to vector<5x128xf32>
    %30 = vector.shape_cast %29 : vector<5x128xf32> to vector<5x128x1xf32>
    %cst_19 = arith.constant -0.055555556 : f32
    %31 = vector.broadcast %cst_19 : f32 to vector<5x128x1xf32>
    %32 = arith.mulf %30, %31 : vector<5x128x1xf32>
    %33 = math.exp %32 : vector<5x128x1xf32>
    %34 = vector.broadcast %33 : vector<5x128x1xf32> to vector<5x128x16xf32>
    %35 = arith.mulf %34, %5 : vector<5x128x16xf32>
    %36 = arith.mulf %33, %27 : vector<5x128x1xf32>
    %37 = vector.extract_strided_slice %35 {offsets = [0, 0, 0], sizes = [1, 128, 16], strides = [1, 1, 1]} : vector<5x128x16xf32> to vector<1x128x16xf32>
    %38 = vector.shape_cast %37 : vector<1x128x16xf32> to vector<128x16xf32>
    %39 = tpu.transpose %38, [1, 0] : vector<128x16xf32> -> vector<16x128xf32>
    %40 = tpu.transpose %38, [1, 0] : vector<128x16xf32> -> vector<16x128xf32>
    %cst_20 = arith.constant dense<0.000000e+00> : vector<16x16xf32>
    %41 = tpu.matmul %40, %38, %cst_20 {dimension_numbers = #tpu.dot_dimension_numbers<[1], [0], [0], [1], [0, 0, 1, 1], [], []>} : vector<16x128xf32>, vector<128x16xf32>, vector<16x16xf32> -> vector<16x16xf32>
    %c0_21 = arith.constant 0 : index
    %c0_22 = arith.constant 0 : index
    %c0_23 = arith.constant 0 : index
    %c0_24 = arith.constant 0 : index
    %42 = vector.load %arg6[%c0_21, %c0_22, %c0_23, %c0_24] : memref<1x5x16x16xf32, #tpu.memory_space<vmem>>, vector<1x1x16x16xf32>
    %43 = vector.shape_cast %42 : vector<1x1x16x16xf32> to vector<16x16xf32>
    %44 = vector.shape_cast %41 : vector<16x16xf32> to vector<1x1x16x16xf32>
    tpu.vector_store %arg6[%c0_21, %c0_22, %c0_23, %c0_24], %44 {strides = array<i32>} : memref<1x5x16x16xf32, #tpu.memory_space<vmem>>, vector<1x1x16x16xf32>,
    %45 = vector.extract_strided_slice %36 {offsets = [0, 0, 0], sizes = [1, 128, 1], strides = [1, 1, 1]} : vector<5x128x1xf32> to vector<1x128x1xf32>
    %46 = vector.shape_cast %45 : vector<1x128x1xf32> to vector<128x1xf32>
    %cst_25 = arith.constant dense<0.000000e+00> : vector<16x1xf32>
    %47 = tpu.matmul %39, %46, %cst_25 {dimension_numbers = #tpu.dot_dimension_numbers<[1], [0], [0], [1], [0, 0, 1, 1], [], []>} : vector<16x128xf32>, vector<128x1xf32>, vector<16x1xf32> -> vector<16x1xf32>
    %c0_26 = arith.constant 0 : index
    %c0_27 = arith.constant 0 : index
    %c0_28 = arith.constant 0 : index
    %c0_29 = arith.constant 0 : index
    %48 = vector.load %arg7[%c0_26, %c0_27, %c0_28, %c0_29] : memref<1x5x16x1xf32, #tpu.memory_space<vmem>>, vector<1x1x16x1xf32>
    %49 = vector.shape_cast %48 : vector<1x1x16x1xf32> to vector<16x1xf32>
    %50 = vector.shape_cast %47 : vector<16x1xf32> to vector<1x1x16x1xf32>
    tpu.vector_store %arg7[%c0_26, %c0_27, %c0_28, %c0_29], %50 {strides = array<i32>} : memref<1x5x16x1xf32, #tpu.memory_space<vmem>>, vector<1x1x16x1xf32>,
    %51 = vector.extract_strided_slice %35 {offsets = [1, 0, 0], sizes = [1, 128, 16], strides = [1, 1, 1]} : vector<5x128x16xf32> to vector<1x128x16xf32>
    %52 = vector.shape_cast %51 : vector<1x128x16xf32> to vector<128x16xf32>
    %53 = tpu.transpose %52, [1, 0] : vector<128x16xf32> -> vector<16x128xf32>
    %54 = tpu.transpose %52, [1, 0] : vector<128x16xf32> -> vector<16x128xf32>
    %cst_30 = arith.constant dense<0.000000e+00> : vector<16x16xf32>
    %55 = tpu.matmul %54, %52, %cst_30 {dimension_numbers = #tpu.dot_dimension_numbers<[1], [0], [0], [1], [0, 0, 1, 1], [], []>} : vector<16x128xf32>, vector<128x16xf32>, vector<16x16xf32> -> vector<16x16xf32>
    %c0_31 = arith.constant 0 : index
    %c1 = arith.constant 1 : index
    %c0_32 = arith.constant 0 : index
    %c0_33 = arith.constant 0 : index
    %56 = vector.load %arg6[%c0_31, %c1, %c0_32, %c0_33] : memref<1x5x16x16xf32, #tpu.memory_space<vmem>>, vector<1x1x16x16xf32>
    %57 = vector.shape_cast %56 : vector<1x1x16x16xf32> to vector<16x16xf32>
    %58 = vector.shape_cast %55 : vector<16x16xf32> to vector<1x1x16x16xf32>
    tpu.vector_store %arg6[%c0_31, %c1, %c0_32, %c0_33], %58 {strides = array<i32>} : memref<1x5x16x16xf32, #tpu.memory_space<vmem>>, vector<1x1x16x16xf32>,
    %59 = vector.extract_strided_slice %36 {offsets = [1, 0, 0], sizes = [1, 128, 1], strides = [1, 1, 1]} : vector<5x128x1xf32> to vector<1x128x1xf32>
    %60 = vector.shape_cast %59 : vector<1x128x1xf32> to vector<128x1xf32>
    %cst_34 = arith.constant dense<0.000000e+00> : vector<16x1xf32>
    %61 = tpu.matmul %53, %60, %cst_34 {dimension_numbers = #tpu.dot_dimension_numbers<[1], [0], [0], [1], [0, 0, 1, 1], [], []>} : vector<16x128xf32>, vector<128x1xf32>, vector<16x1xf32> -> vector<16x1xf32>
    %c0_35 = arith.constant 0 : index
    %c1_36 = arith.constant 1 : index
    %c0_37 = arith.constant 0 : index
    %c0_38 = arith.constant 0 : index
    %62 = vector.load %arg7[%c0_35, %c1_36, %c0_37, %c0_38] : memref<1x5x16x1xf32, #tpu.memory_space<vmem>>, vector<1x1x16x1xf32>
    %63 = vector.shape_cast %62 : vector<1x1x16x1xf32> to vector<16x1xf32>
    %64 = vector.shape_cast %61 : vector<16x1xf32> to vector<1x1x16x1xf32>
    tpu.vector_store %arg7[%c0_35, %c1_36, %c0_37, %c0_38], %64 {strides = array<i32>} : memref<1x5x16x1xf32, #tpu.memory_space<vmem>>, vector<1x1x16x1xf32>,
    %65 = vector.extract_strided_slice %35 {offsets = [2, 0, 0], sizes = [1, 128, 16], strides = [1, 1, 1]} : vector<5x128x16xf32> to vector<1x128x16xf32>
    %66 = vector.shape_cast %65 : vector<1x128x16xf32> to vector<128x16xf32>
    %67 = tpu.transpose %66, [1, 0] : vector<128x16xf32> -> vector<16x128xf32>
    %68 = tpu.transpose %66, [1, 0] : vector<128x16xf32> -> vector<16x128xf32>
    %cst_39 = arith.constant dense<0.000000e+00> : vector<16x16xf32>
    %69 = tpu.matmul %68, %66, %cst_39 {dimension_numbers = #tpu.dot_dimension_numbers<[1], [0], [0], [1], [0, 0, 1, 1], [], []>} : vector<16x128xf32>, vector<128x16xf32>, vector<16x16xf32> -> vector<16x16xf32>
    %c0_40 = arith.constant 0 : index
    %c2 = arith.constant 2 : index
    %c0_41 = arith.constant 0 : index
    %c0_42 = arith.constant 0 : index
    %70 = vector.load %arg6[%c0_40, %c2, %c0_41, %c0_42] : memref<1x5x16x16xf32, #tpu.memory_space<vmem>>, vector<1x1x16x16xf32>
    %71 = vector.shape_cast %70 : vector<1x1x16x16xf32> to vector<16x16xf32>
    %72 = vector.shape_cast %69 : vector<16x16xf32> to vector<1x1x16x16xf32>
    tpu.vector_store %arg6[%c0_40, %c2, %c0_41, %c0_42], %72 {strides = array<i32>} : memref<1x5x16x16xf32, #tpu.memory_space<vmem>>, vector<1x1x16x16xf32>,
    %73 = vector.extract_strided_slice %36 {offsets = [2, 0, 0], sizes = [1, 128, 1], strides = [1, 1, 1]} : vector<5x128x1xf32> to vector<1x128x1xf32>
    %74 = vector.shape_cast %73 : vector<1x128x1xf32> to vector<128x1xf32>
    %cst_43 = arith.constant dense<0.000000e+00> : vector<16x1xf32>
    %75 = tpu.matmul %67, %74, %cst_43 {dimension_numbers = #tpu.dot_dimension_numbers<[1], [0], [0], [1], [0, 0, 1, 1], [], []>} : vector<16x128xf32>, vector<128x1xf32>, vector<16x1xf32> -> vector<16x1xf32>
    %c0_44 = arith.constant 0 : index
    %c2_45 = arith.constant 2 : index
    %c0_46 = arith.constant 0 : index
    %c0_47 = arith.constant 0 : index
    %76 = vector.load %arg7[%c0_44, %c2_45, %c0_46, %c0_47] : memref<1x5x16x1xf32, #tpu.memory_space<vmem>>, vector<1x1x16x1xf32>
    %77 = vector.shape_cast %76 : vector<1x1x16x1xf32> to vector<16x1xf32>
    %78 = vector.shape_cast %75 : vector<16x1xf32> to vector<1x1x16x1xf32>
    tpu.vector_store %arg7[%c0_44, %c2_45, %c0_46, %c0_47], %78 {strides = array<i32>} : memref<1x5x16x1xf32, #tpu.memory_space<vmem>>, vector<1x1x16x1xf32>,
    %79 = vector.extract_strided_slice %35 {offsets = [3, 0, 0], sizes = [1, 128, 16], strides = [1, 1, 1]} : vector<5x128x16xf32> to vector<1x128x16xf32>
    %80 = vector.shape_cast %79 : vector<1x128x16xf32> to vector<128x16xf32>
    %81 = tpu.transpose %80, [1, 0] : vector<128x16xf32> -> vector<16x128xf32>
    %82 = tpu.transpose %80, [1, 0] : vector<128x16xf32> -> vector<16x128xf32>
    %cst_48 = arith.constant dense<0.000000e+00> : vector<16x16xf32>
    %83 = tpu.matmul %82, %80, %cst_48 {dimension_numbers = #tpu.dot_dimension_numbers<[1], [0], [0], [1], [0, 0, 1, 1], [], []>} : vector<16x128xf32>, vector<128x16xf32>, vector<16x16xf32> -> vector<16x16xf32>
    %c0_49 = arith.constant 0 : index
    %c3 = arith.constant 3 : index
    %c0_50 = arith.constant 0 : index
    %c0_51 = arith.constant 0 : index
    %84 = vector.load %arg6[%c0_49, %c3, %c0_50, %c0_51] : memref<1x5x16x16xf32, #tpu.memory_space<vmem>>, vector<1x1x16x16xf32>
    %85 = vector.shape_cast %84 : vector<1x1x16x16xf32> to vector<16x16xf32>
    %86 = vector.shape_cast %83 : vector<16x16xf32> to vector<1x1x16x16xf32>
    tpu.vector_store %arg6[%c0_49, %c3, %c0_50, %c0_51], %86 {strides = array<i32>} : memref<1x5x16x16xf32, #tpu.memory_space<vmem>>, vector<1x1x16x16xf32>,
    %87 = vector.extract_strided_slice %36 {offsets = [3, 0, 0], sizes = [1, 128, 1], strides = [1, 1, 1]} : vector<5x128x1xf32> to vector<1x128x1xf32>
    %88 = vector.shape_cast %87 : vector<1x128x1xf32> to vector<128x1xf32>
    %cst_52 = arith.constant dense<0.000000e+00> : vector<16x1xf32>
    %89 = tpu.matmul %81, %88, %cst_52 {dimension_numbers = #tpu.dot_dimension_numbers<[1], [0], [0], [1], [0, 0, 1, 1], [], []>} : vector<16x128xf32>, vector<128x1xf32>, vector<16x1xf32> -> vector<16x1xf32>
    %c0_53 = arith.constant 0 : index
    %c3_54 = arith.constant 3 : index
    %c0_55 = arith.constant 0 : index
    %c0_56 = arith.constant 0 : index
    %90 = vector.load %arg7[%c0_53, %c3_54, %c0_55, %c0_56] : memref<1x5x16x1xf32, #tpu.memory_space<vmem>>, vector<1x1x16x1xf32>
    %91 = vector.shape_cast %90 : vector<1x1x16x1xf32> to vector<16x1xf32>
    %92 = vector.shape_cast %89 : vector<16x1xf32> to vector<1x1x16x1xf32>
    tpu.vector_store %arg7[%c0_53, %c3_54, %c0_55, %c0_56], %92 {strides = array<i32>} : memref<1x5x16x1xf32, #tpu.memory_space<vmem>>, vector<1x1x16x1xf32>,
    %93 = vector.extract_strided_slice %35 {offsets = [4, 0, 0], sizes = [1, 128, 16], strides = [1, 1, 1]} : vector<5x128x16xf32> to vector<1x128x16xf32>
    %94 = vector.shape_cast %93 : vector<1x128x16xf32> to vector<128x16xf32>
    %95 = tpu.transpose %94, [1, 0] : vector<128x16xf32> -> vector<16x128xf32>
    %96 = tpu.transpose %94, [1, 0] : vector<128x16xf32> -> vector<16x128xf32>
    %cst_57 = arith.constant dense<0.000000e+00> : vector<16x16xf32>
    %97 = tpu.matmul %96, %94, %cst_57 {dimension_numbers = #tpu.dot_dimension_numbers<[1], [0], [0], [1], [0, 0, 1, 1], [], []>} : vector<16x128xf32>, vector<128x16xf32>, vector<16x16xf32> -> vector<16x16xf32>
    %c0_58 = arith.constant 0 : index
    %c4 = arith.constant 4 : index
    %c0_59 = arith.constant 0 : index
    %c0_60 = arith.constant 0 : index
    %98 = vector.load %arg6[%c0_58, %c4, %c0_59, %c0_60] : memref<1x5x16x16xf32, #tpu.memory_space<vmem>>, vector<1x1x16x16xf32>
    %99 = vector.shape_cast %98 : vector<1x1x16x16xf32> to vector<16x16xf32>
    %100 = vector.shape_cast %97 : vector<16x16xf32> to vector<1x1x16x16xf32>
    tpu.vector_store %arg6[%c0_58, %c4, %c0_59, %c0_60], %100 {strides = array<i32>} : memref<1x5x16x16xf32, #tpu.memory_space<vmem>>, vector<1x1x16x16xf32>,
    %101 = vector.extract_strided_slice %36 {offsets = [4, 0, 0], sizes = [1, 128, 1], strides = [1, 1, 1]} : vector<5x128x1xf32> to vector<1x128x1xf32>
    %102 = vector.shape_cast %101 : vector<1x128x1xf32> to vector<128x1xf32>
    %cst_61 = arith.constant dense<0.000000e+00> : vector<16x1xf32>
    %103 = tpu.matmul %95, %102, %cst_61 {dimension_numbers = #tpu.dot_dimension_numbers<[1], [0], [0], [1], [0, 0, 1, 1], [], []>} : vector<16x128xf32>, vector<128x1xf32>, vector<16x1xf32> -> vector<16x1xf32>
    %c0_62 = arith.constant 0 : index
    %c4_63 = arith.constant 4 : index
    %c0_64 = arith.constant 0 : index
    %c0_65 = arith.constant 0 : index
    %104 = vector.load %arg7[%c0_62, %c4_63, %c0_64, %c0_65] : memref<1x5x16x1xf32, #tpu.memory_space<vmem>>, vector<1x1x16x1xf32>
    %105 = vector.shape_cast %104 : vector<1x1x16x1xf32> to vector<16x1xf32>
    %106 = vector.shape_cast %103 : vector<16x1xf32> to vector<1x1x16x1xf32>
    tpu.vector_store %arg7[%c0_62, %c4_63, %c0_64, %c0_65], %106 {strides = array<i32>} : memref<1x5x16x1xf32, #tpu.memory_space<vmem>>, vector<1x1x16x1xf32>,
    return
  }
  func.func @transform_0(%arg0: i32) -> (i32, i32, i32, i32) {
    %c0_i32 = arith.constant 0 : i32
    %c0_i32_0 = arith.constant 0 : i32
    %c0_i32_1 = arith.constant 0 : i32
    %c0_i32_2 = arith.constant 0 : i32
    return %arg0, %c0_i32, %c0_i32_0, %c0_i32_1 : i32, i32, i32, i32
  }
  func.func @transform_1(%arg0: i32) -> (i32, i32, i32, i32) {
    %c0_i32 = arith.constant 0 : i32
    %c0_i32_0 = arith.constant 0 : i32
    %c0_i32_1 = arith.constant 0 : i32
    %c0_i32_2 = arith.constant 0 : i32
    return %arg0, %c0_i32, %c0_i32_0, %c0_i32_1 : i32, i32, i32, i32
  }
  func.func @transform_2(%arg0: i32) -> (i32, i32, i32, i32) {
    %c0_i32 = arith.constant 0 : i32
    %c0_i32_0 = arith.constant 0 : i32
    %c0_i32_1 = arith.constant 0 : i32
    %c0_i32_2 = arith.constant 0 : i32
    return %arg0, %c0_i32, %c0_i32_0, %c0_i32_1 : i32, i32, i32, i32
  }
  func.func @transform_3(%arg0: i32) -> (i32, i32) {
    %c0_i32 = arith.constant 0 : i32
    %c0_i32_0 = arith.constant 0 : i32
    %c0_i32_1 = arith.constant 0 : i32
    return %c0_i32, %c0_i32_0 : i32, i32
  }
  func.func @transform_4(%arg0: i32) -> (i32, i32) {
    %c0_i32 = arith.constant 0 : i32
    %c0_i32_0 = arith.constant 0 : i32
    %c0_i32_1 = arith.constant 0 : i32
    return %c0_i32, %c0_i32_0 : i32, i32
  }
  func.func @transform_5(%arg0: i32) -> (i32, i32, i32, i32) {
    %c0_i32 = arith.constant 0 : i32
    %c0_i32_0 = arith.constant 0 : i32
    %c0_i32_1 = arith.constant 0 : i32
    %c0_i32_2 = arith.constant 0 : i32
    return %arg0, %c0_i32, %c0_i32_0, %c0_i32_1 : i32, i32, i32, i32
  }
  func.func @transform_6(%arg0: i32) -> (i32, i32, i32, i32) {
    %c0_i32 = arith.constant 0 : i32
    %c0_i32_0 = arith.constant 0 : i32
    %c0_i32_1 = arith.constant 0 : i32
    %c0_i32_2 = arith.constant 0 : i32
    return %arg0, %c0_i32, %c0_i32_0, %c0_i32_1 : i32, i32, i32, i32
  }
}

</mosaic_0001>

<bundles_post_ra>
// kernel: tpu_custom_call.1
= control target key start
LH: loop header
LB: loop body
LE: loop exit
PB: predicated region body
PF: predicated region fallthrough
CT: control target
= control target key end

     0   :  { %s6577_s0 = inlined_call_operand.vmem [shape: f32[2,1,1,16], index: 0, kind: input, shape index: {}]   ;;  %s6578_s1 = inlined_call_operand.vmem [shape: f32[2,5,1,16], index: 1, kind: input, shape index: {}]   ;;  %s6579_s2 = inlined_call_operand.vmem [shape: f32[2,5,128,16], index: 2, kind: input, shape index: {}]   ;;  %s6580_s3 = inlined_call_operand.vmem [shape: f32[1,16], index: 3, kind: input, shape index: {}]   ;;  %s6581_s4 = inlined_call_operand.<no memory space> [shape: f32[1,1], index: 4, kind: input, shape index: {}]   ;;  %s6582_s5 = inlined_call_operand.hbm [shape: f32[2,5,16,16], index: 5, kind: output, shape index: {0}]   ;;  %s6583_s6 = inlined_call_operand.vmem [shape: f32[2,5,16,1], index: 6, kind: output, shape index: {1}]  }
   0x1   :  { %v12_v0 = vstv %s6581_s4 }
   0x2   :  { %13 = vst [vmem:[#allocation2] sm:$0x1] %v12_v0 }
   0x3   :  { %14 = vsyncpa [#allocation4], 0 }
   0x4   :  { %16 = vsyncpa [#allocation4 + $0x1], 0  ;;  %s4468_s23 = smov 0   ;;  %s4470_s24 = smov 0  }
   0x5   :  { %s4472_s25 = smov 0   ;;  %s4474_s26 = smov 0  }
   0x6 LB: > { %s4489_s4 = sadd.s32 4294967295, %s4425_s26   ;;  %s3106_s27 = sadd.s32 4294967294, %s4425_s26   ;;  %s4425_s26 = sphi %s4474_s26, %s6809_s26   ;;  %s4421_s25 = sphi %s4472_s25, %s6808_s25   ;;  %s4417_s24 = sphi %s4470_s24, %s6807_s24   ;;  %s4413_s23 = sphi %s4468_s23, %s6806_s23  }
   0x7   : > { %s4493_s28 = sadd.s32 1, %s4425_s26   ;;  %s149_s29 = sadd.s32 1, %s4421_s25 }
   0x8   : > { %s146_s30 = ssub.s32 %s4425_s26, %s4493_s28  ;;  %p159_p0 = scmp.ne.s32.totalorder %s4421_s25, %s4417_s24 }
   0x9   : > { %p147_p1 = scmp.eq.s32.totalorder %s146_s30, 0  ;;  %p160_p2 = scmp.eq.s32.totalorder %s4489_s4, 1 }
   0xa   : > { %p165_p3 = scmp.ne.s32.totalorder %s4417_s24, %s4413_s23  ;;  %p166_p4 = scmp.eq.s32.totalorder %s3106_s27, 1 }
   0xb   : > { %s4504_s7 = scalar_select %p147_p1, %s4421_s25, %s149_s29  }
   0xc   : > { %p4506_p5 = por %p160_p2, %p159_p0  ;;  %p4510_p6 = por %p166_p4, %p165_p3 }
   0xd   : > { %p3109_p7 = scmp.ge.s32.totalorder %s4425_s26, 1  ;;  %p237_p8 = scmp.lt.s32.totalorder %s4425_s26, 3 }
   0xf   : > { %p238_p9 = pnand %p3109_p7, %p237_p8 }
  0x11   : > { %241 = sbr.rel (%p238_p9) target bundleno = 898 (0x382), region = 40 }
  0x16   : > { %p279_p10 = scmp.lt.s32.totalorder %s4489_s4, 1  ;;  %v399_v1 = vlaneseq  ;;  %v4565_v15 = vld [vmem:[%s6580_s3] ss:$0 sm:$0xff]  ;;  %vm590_vm0 = vcmask 130048   ;;  %vm2221_vm1 = vcmask 7168   ;;  %s3667_s19 = smul.u32 1280, %s4489_s4 }
  0x17   : > { %s4427_s30 = smov [#allocation3]  }
  0x18   : > { %s4518_s10 = scalar_select %p279_p10, %s4489_s4, 1  ;;  %v400_v2 = vshrl.u32 %v399_v1, 7 }
  0x19   : > { %s6523_s27 = scalar_lea.hbm %s6582_s5, %s3667_s19  ;;  %s4369_s11 = sshll.u32 %s4427_s30, 4  ;;  %s4370_s11 = int_to_ptr.vmem [resolvable:$false] %s4369_s11 }
  0x1a   : > { %s4524_s13 = scalar_lea.vmem %s6577_s0, %s4518_s10  ;;  %s3664_s14 = smul.u32 5, %s4518_s10  ;;  %v4542_v6 = vsub.s32 0, %v400_v2 }
  0x1b   : > { %s3665_s15 = smul.u32 640, %s4518_s10  ;;  %v4539_v3 = vld [vmem:[%s4524_s13] sm:$0x1]  ;;  %s4371_s12 = scalar_lea.vmem %s4370_s11, 2560 }
  0x1c   : > { %s4531_s18 = scalar_lea.vmem %s6578_s1, %s3664_s14  ;;  %s3666_s14 = smul.u32 80, %s4518_s10 }
  0x1d   : > { %s4536_s21 = scalar_lea.vmem %s6579_s2, %s3665_s15  ;;  %v297_v4 = vld [vmem:[%s4531_s18] sm:$0x1] }
  0x1e   : > { %v384_v5 = vmul.f32 0.1, %v297_v4  ;;  %v4545_v7 = vld [vmem:[%s4536_s21 + $0x10] sm:$0xff]  ;;  %v302_v9 = vld [vmem:[%s4536_s21] sm:$0xff]  ;;  %v4550_v10 = vld [vmem:[%s4536_s21 + $0x18] sm:$0xff]  ;;  %s6388_s17 = scalar_lea.vmem %s6583_s6, %s3666_s14 }
  0x1f   : > { %v303_v11 = vld [vmem:[%s4536_s21 + $0x8] sm:$0xff]  ;;  %v4560_v14 = vld [vmem:[%s4536_s21 + $0x20] sm:$0xff]  ;;  %v309_v26 = vld [vmem:[%s4536_s21 + $0x38] sm:$0xff]  ;;  %v1317_v59 = vmul.f32 %v302_v9, %v302_v9  ;;  %v1320_v62 = vmul.f32 %v4550_v10, %v4550_v10  ;;  %v1319_v63 = vmul.f32 %v4545_v7, %v4545_v7 }
  0x20   : > { %v389_v8 = vadd.f32 %v384_v5, %v4539_v3  ;;  %v4557_v13 = vld [vmem:[%s4536_s21 + $0x28] sm:$0xff]  ;;  %v308_v27 = vld [vmem:[%s4536_s21 + $0x30] sm:$0xff]  ;;  %v310_v37 = vld [vmem:[%s4536_s21 + $0x40] sm:$0xff]  ;;  %v1318_v58 = vmul.f32 %v303_v11, %v303_v11  ;;  %v1321_v4 = vmul.f32 %v4560_v14, %v4560_v14 }
  0x21   : > { %v311_v36 = vld [vmem:[%s4536_s21 + $0x48] sm:$0xff]  ;;  %v4600_v44 = vld [vmem:[%s4536_s21 + $0x58] sm:$0xff]  ;;  %v312_v45 = vld [vmem:[%s4536_s21 + $0x50] sm:$0xff]  ;;  %v1397_v61 = vsel %vm590_vm0, %v1317_v59, 0.0  ;;  %v1406_v0 = vsel %vm590_vm0, %v1320_v62, 0.0  ;;  %v1403_v1 = vsel %vm590_vm0, %v1319_v63, 0.0  ;;  %v1322_v2 = vmul.f32 %v4557_v13, %v4557_v13 }
  0x22   : > { %v4554_v12 = vrot.slane %v389_v8, %v4542_v6  ;;  %v1400_v60 = vsel %vm590_vm0, %v1318_v58, 0.0  ;;  %v317_v5 = vld [vmem:[%s4536_s21 + $0x78] sm:$0xff]  ;;  %v1324_v8 = vmul.f32 %v309_v26, %v309_v26  ;;  %v4686_v59 = vld [vmem:[%s4536_s21 + $0xa0] sm:$0xff] }
  0x23   : > { %v1337_v63 = vmul.f32 %v4686_v59, %v4686_v59 }
  0x24   : > { %v426_v16 = vadd.f32 %v4554_v12, %v4545_v7  ;;  %v424_v17 = vadd.f32 %v4554_v12, %v302_v9  ;;  %v427_v18 = vadd.f32 %v4554_v12, %v4550_v10  ;;  %v425_v19 = vadd.f32 %v4554_v12, %v303_v11 }
  0x25   : > { %v429_v20 = vadd.f32 %v4554_v12, %v4557_v13  ;;  %v428_v21 = vadd.f32 %v4554_v12, %v4560_v14  ;;  %v431_v30 = vadd.f32 %v4554_v12, %v309_v26  ;;  %v430_v31 = vadd.f32 %v4554_v12, %v308_v27  ;;  %v314_v26 = vld [vmem:[%s4536_s21 + $0x60] sm:$0xff] }
  0x26   : > { %v512_v22 = vmul.f32 %v4565_v15, %v426_v16  ;;  %v510_v23 = vmul.f32 %v4565_v15, %v424_v17  ;;  %v513_v24 = vmul.f32 %v4565_v15, %v427_v18  ;;  %v511_v25 = vmul.f32 %v4565_v15, %v425_v19  ;;  %v316_v16 = vld [vmem:[%s4536_s21 + $0x70] sm:$0xff] }
  0x27   : > { %v515_v34 = vmul.f32 %v4565_v15, %v429_v20  ;;  %v514_v35 = vmul.f32 %v4565_v15, %v428_v21  ;;  %v517_v38 = vmul.f32 %v4565_v15, %v431_v30  ;;  %v516_v39 = vmul.f32 %v4565_v15, %v430_v31  ;;  %v315_v20 = vld [vmem:[%s4536_s21 + $0x68] sm:$0xff] }
  0x28   : > { %v597_v28 = vsel %vm590_vm0, %v512_v22, 0.0  ;;  %v591_v29 = vsel %vm590_vm0, %v510_v23, 0.0  ;;  %v600_v32 = vsel %vm590_vm0, %v513_v24, 0.0  ;;  %v594_v33 = vsel %vm590_vm0, %v511_v25, 0.0 }
  0x29   : > { %598 = vadd.xlane.f32.xlu1 %v597_v28  ;;  %592 = vadd.xlane.f32.xlu0 %v591_v29  ;;  %v606_v40 = vsel %vm590_vm0, %v515_v34, 0.0  ;;  %v603_v41 = vsel %vm590_vm0, %v514_v35, 0.0  ;;  %v433_v42 = vadd.f32 %v4554_v12, %v311_v36  ;;  %v432_v43 = vadd.f32 %v4554_v12, %v310_v37 }
  0x2a   : > { %v612_v46 = vsel %vm590_vm0, %v517_v38, 0.0  ;;  %v609_v47 = vsel %vm590_vm0, %v516_v39, 0.0  ;;  %v435_v50 = vadd.f32 %v4554_v12, %v4600_v44  ;;  %v434_v51 = vadd.f32 %v4554_v12, %v312_v45 }
  0x2b   : > { %v519_v48 = vmul.f32 %v4565_v15, %v433_v42  ;;  %v518_v49 = vmul.f32 %v4565_v15, %v432_v43  ;;  %v1412_v9 = vsel %vm590_vm0, %v1322_v2, 0.0  ;;  %v1409_v7 = vsel %vm590_vm0, %v1321_v4, 0.0  ;;  %v298_v43 = vld [vmem:[%s4531_s18 + $0x1] sm:$0x1]  ;;  %v4701_v2 = vld [vmem:[%s4536_s21 + $0xb0] sm:$0xff]  ;;  %v4704_v4 = vld [vmem:[%s4536_s21 + $0xf8] sm:$0xff] }
  0x2c   : > { %v521_v54 = vmul.f32 %v4565_v15, %v435_v50  ;;  %v520_v55 = vmul.f32 %v4565_v15, %v434_v51  ;;  %v1323_v10 = vmul.f32 %v308_v27, %v308_v27  ;;  %v439_v11 = vadd.f32 %v4554_v12, %v317_v5  ;;  %v4670_v51 = vld [vmem:[%s4536_s21 + $0x98] sm:$0xff] }
  0x2d   : > { %601 = vadd.xlane.f32.xlu1 %v600_v32  ;;  %595 = vadd.xlane.f32.xlu0 %v594_v33  ;;  %v618_v52 = vsel %vm590_vm0, %v519_v48, 0.0  ;;  %v615_v53 = vsel %vm590_vm0, %v518_v49, 0.0  ;;  %v1418_v13 = vsel %vm590_vm0, %v1324_v8, 0.0  ;;  %v1325_v17 = vmul.f32 %v310_v37, %v310_v37 }
  0x2e   : > { %v624_v56 = vsel %vm590_vm0, %v521_v54, 0.0  ;;  %v621_v57 = vsel %vm590_vm0, %v520_v55, 0.0  ;;  %v1415_v14 = vsel %vm590_vm0, %v1323_v10, 0.0  ;;  %v525_v18 = vmul.f32 %v4565_v15, %v439_v11  ;;  %v326_v11 = vld [vmem:[%s4536_s21 + $0xc0] sm:$0xff] }
  0x2f   : > { %v438_v19 = vadd.f32 %v4554_v12, %v316_v16  ;;  %v1326_v21 = vmul.f32 %v311_v36, %v311_v36  ;;  %v1421_v22 = vsel %vm590_vm0, %v1325_v17, 0.0  ;;  %v437_v25 = vadd.f32 %v4554_v12, %v315_v20 }
  0x30   : > { %v636_v23 = vsel %vm590_vm0, %v525_v18, 0.0  ;;  %v1327_v29 = vmul.f32 %v312_v45, %v312_v45  ;;  %v436_v31 = vadd.f32 %v4554_v12, %v314_v26  ;;  %v1328_v34 = vmul.f32 %v4600_v44, %v4600_v44  ;;  %v4658_v44 = vld [vmem:[%s4536_s21 + $0x88] sm:$0xff]  ;;  %v4661_v45 = vld [vmem:[%s4536_s21 + $0x80] sm:$0xff] }
  0x31   : > { %607 = vadd.xlane.f32.xlu1 %v606_v40  ;;  %604 = vadd.xlane.f32.xlu0 %v603_v41  ;;  %v524_v24 = vmul.f32 %v4565_v15, %v438_v19  ;;  %v1424_v27 = vsel %vm590_vm0, %v1326_v21, 0.0  ;;  %v523_v30 = vmul.f32 %v4565_v15, %v437_v25  ;;  %v1330_v37 = vmul.f32 %v315_v20, %v315_v20  ;;  %v327_v19 = vld [vmem:[%s4536_s21 + $0xc8] sm:$0xff] }
  0x32   : > { %v1427_v32 = vsel %vm590_vm0, %v1327_v29, 0.0  ;;  %v522_v35 = vmul.f32 %v4565_v15, %v436_v31  ;;  %v1430_v36 = vsel %vm590_vm0, %v1328_v34, 0.0  ;;  %v1329_v38 = vmul.f32 %v314_v26, %v314_v26  ;;  %v331_v21 = vld [vmem:[%s4536_s21 + $0xe8] sm:$0xff]  ;;  %v328_v26 = vld [vmem:[%s4536_s21 + $0xd0] sm:$0xff] }
  0x33   : > { %v633_v28 = vsel %vm590_vm0, %v524_v24, 0.0  ;;  %v630_v33 = vsel %vm590_vm0, %v523_v30, 0.0  ;;  %v1436_v39 = vsel %vm590_vm0, %v1330_v37, 0.0  ;;  %v1332_v41 = vmul.f32 %v317_v5, %v317_v5 }
  0x34   : > { %v627_v12 = vsel %vm590_vm0, %v522_v35, 0.0  ;;  %v1433_v40 = vsel %vm590_vm0, %v1329_v38, 0.0  ;;  %v1331_v42 = vmul.f32 %v316_v16, %v316_v16  ;;  %v1334_v49 = vmul.f32 %v4658_v44, %v4658_v44  ;;  %v332_v16 = vld [vmem:[%s4536_s21 + $0xf0] sm:$0xff] }
  0x35   : > { %613 = vadd.xlane.f32.xlu1 %v612_v46  ;;  %610 = vadd.xlane.f32.xlu0 %v609_v47  ;;  %v385_v46 = vmul.f32 0.1, %v298_v43  ;;  %v1442_v47 = vsel %vm590_vm0, %v1332_v41, 0.0  ;;  %v1333_v50 = vmul.f32 %v4661_v45, %v4661_v45  ;;  %v1341_v17 = vmul.f32 %v326_v11, %v326_v11 }
  0x36   : > { %v1439_v48 = vsel %vm590_vm0, %v1331_v42, 0.0  ;;  %v1448_v54 = vsel %vm590_vm0, %v1334_v49, 0.0  ;;  %v1343_v29 = vmul.f32 %v328_v26, %v328_v26 }
  0x37   : > { %v1445_v55 = vsel %vm590_vm0, %v1333_v50, 0.0  ;;  %v390_v58 = vadd.f32 %v385_v46, %v4539_v3  ;;  %v1346_v46 = vmul.f32 %v331_v21, %v331_v21 }
  0x39   : > { %619 = vadd.xlane.f32.xlu1 %v618_v52  ;;  %616 = vadd.xlane.f32.xlu0 %v615_v53  ;;  %v4673_v52 = vld [vmem:[%s4536_s21 + $0x90] sm:$0xff]  ;;  %v1336_v53 = vmul.f32 %v4670_v51, %v4670_v51 }
  0x3d   : > { %625 = vadd.xlane.f32.xlu1 %v624_v56  ;;  %622 = vadd.xlane.f32.xlu0 %v621_v57  ;;  %v1335_v56 = vmul.f32 %v4673_v52, %v4673_v52  ;;  %v4682_v57 = vld [vmem:[%s4536_s21 + $0xa8] sm:$0xff] }
  0x3f   : > { %v1451_v62 = vsel %vm590_vm0, %v1335_v56, 0.0 }
  0x41   : > { %1401 = vadd.xlane.f32.xlu1 %v1400_v60  ;;  %1398 = vadd.xlane.f32.xlu0 %v1397_v61  ;;  %v1338_v60 = vmul.f32 %v4682_v57, %v4682_v57  ;;  %v1454_v61 = vsel %vm590_vm0, %v1336_v53, 0.0  ;;  %v1347_v53 = vmul.f32 %v332_v16, %v332_v16 }
  0x43   : > { %v1460_v8 = vsel %vm590_vm0, %v1338_v60, 0.0  ;;  %v1348_v60 = vmul.f32 %v4704_v4, %v4704_v4 }
  0x45   : > { %1407 = vadd.xlane.f32.xlu1 %v1406_v0  ;;  %1404 = vadd.xlane.f32.xlu0 %v1403_v1  ;;  %v4695_v0 = vld [vmem:[%s4536_s21 + $0xb8] sm:$0xff]  ;;  %v4698_v1 = vrot.slane %v390_v58, %v4542_v6 }
  0x46   : > { %v1340_v5 = vmul.f32 %v4695_v0, %v4695_v0 }
  0x47   : > { %v455_v10 = vadd.f32 %v4698_v1, %v4704_v4  ;;  %v454_v20 = vadd.f32 %v4698_v1, %v332_v16  ;;  %v450_v43 = vadd.f32 %v4698_v1, %v328_v26  ;;  %v449_v50 = vadd.f32 %v4698_v1, %v327_v19 }
  0x48   : > { %v448_v58 = vadd.f32 %v4698_v1, %v326_v11  ;;  %v4765_v11 = vld [vmem:[%s4536_s21 + $0x108] sm:$0xff] }
  0x49   : > { %1413 = vadd.xlane.f32.xlu1 %v1412_v9  ;;  %1410 = vadd.xlane.f32.xlu0 %v1409_v7  ;;  %v1457_v9 = vsel %vm590_vm0, %v1337_v63, 0.0  ;;  %v1339_v7 = vmul.f32 %v4701_v2, %v4701_v2  ;;  %v541_v18 = vmul.f32 %v4565_v15, %v455_v10  ;;  %v540_v25 = vmul.f32 %v4565_v15, %v454_v20 }
  0x4a   : > { %v536_v49 = vmul.f32 %v4565_v15, %v450_v43  ;;  %v535_v56 = vmul.f32 %v4565_v15, %v449_v50  ;;  %v534_v63 = vmul.f32 %v4565_v15, %v448_v58  ;;  %v1350_v16 = vmul.f32 %v4765_v11, %v4765_v11 }
  0x4b   : > { %v684_v24 = vsel %vm590_vm0, %v541_v18, 0.0  ;;  %v681_v31 = vsel %vm590_vm0, %v540_v25, 0.0  ;;  %v4775_v18 = vld [vmem:[%s4536_s21 + $0x110] sm:$0xff] }
  0x4c   : > { %v1496_v20 = vsel %vm590_vm0, %v1350_v16, 0.0 }
  0x4d   : > { %1419 = vadd.xlane.f32.xlu1 %v1418_v13  ;;  %1416 = vadd.xlane.f32.xlu0 %v1415_v14  ;;  %v1466_v13 = vsel %vm590_vm0, %v1340_v5, 0.0  ;;  %v1463_v14 = vsel %vm590_vm0, %v1339_v7, 0.0  ;;  %v447_v5 = vadd.f32 %v4698_v1, %v4695_v0  ;;  %v663_v7 = vsel %vm590_vm0, %v534_v63, 0.0 }
  0x4e   : > { %v446_v0 = vadd.f32 %v4698_v1, %v4701_v2  ;;  %v1351_v2 = vmul.f32 %v4775_v18, %v4775_v18 }
  0x4f   : > { %v533_v10 = vmul.f32 %v4565_v15, %v447_v5 }
  0x50   : > { %v1499_v25 = vsel %vm590_vm0, %v1351_v2, 0.0 }
  0x51   : > { %1422 = vadd.xlane.f32.xlu1 %v1421_v22  ;;  %637 = vadd.xlane.f32.xlu0 %v636_v23  ;;  %v1342_v22 = vmul.f32 %v327_v19, %v327_v19  ;;  %v1469_v23 = vsel %vm590_vm0, %v1341_v17, 0.0  ;;  %v532_v17 = vmul.f32 %v4565_v15, %v446_v0  ;;  %v445_v19 = vadd.f32 %v4698_v1, %v4682_v57  ;;  %v347_v0 = vld [vmem:[%s4536_s21 + $0x168] sm:$0xff] }
  0x53   : > { %v1472_v30 = vsel %vm590_vm0, %v1342_v22, 0.0  ;;  %v531_v22 = vmul.f32 %v4565_v15, %v445_v19 }
  0x55   : > { %1425 = vadd.xlane.f32.xlu1 %v1424_v27  ;;  %634 = vadd.xlane.f32.xlu0 %v633_v28  ;;  %v453_v27 = vadd.f32 %v4698_v1, %v331_v21  ;;  %v330_v28 = vld [vmem:[%s4536_s21 + $0xe0] sm:$0xff]  ;;  %v657_v21 = vsel %vm590_vm0, %v532_v17, 0.0  ;;  %v654_v26 = vsel %vm590_vm0, %v531_v22, 0.0 }
  0x56   : > { %v452_v34 = vadd.f32 %v4698_v1, %v330_v28 }
  0x58   : > { %v538_v37 = vmul.f32 %v4565_v15, %v452_v34  ;;  %v4806_v34 = vld [vmem:[%s4536_s21 + $0x128] sm:$0xff] }
  0x59   : > { %1428 = vadd.xlane.f32.xlu1 %v1427_v32  ;;  %631 = vadd.xlane.f32.xlu0 %v630_v33  ;;  %v539_v32 = vmul.f32 %v4565_v15, %v453_v27  ;;  %v329_v33 = vld [vmem:[%s4536_s21 + $0xd8] sm:$0xff] }
  0x5a   : > { %v1344_v35 = vmul.f32 %v329_v33, %v329_v33  ;;  %v451_v38 = vadd.f32 %v4698_v1, %v329_v33  ;;  %v675_v41 = vsel %vm590_vm0, %v538_v37, 0.0 }
  0x5c   : > { %v537_v42 = vmul.f32 %v4565_v15, %v451_v38 }
  0x5d   : > { %1431 = vadd.xlane.f32.xlu1 %v1430_v36  ;;  %628 = vadd.xlane.f32.xlu0 %v627_v12  ;;  %v1475_v36 = vsel %vm590_vm0, %v1343_v29, 0.0  ;;  %v678_v12 = vsel %vm590_vm0, %v539_v32, 0.0  ;;  %v443_v29 = vadd.f32 %v4698_v1, %v4670_v51 }
  0x5f   : > { %v529_v33 = vmul.f32 %v4565_v15, %v443_v29 }
  0x61   : > { %1437 = vadd.xlane.f32.xlu1 %v1436_v39  ;;  %1434 = vadd.xlane.f32.xlu0 %v1433_v40  ;;  %v1345_v39 = vmul.f32 %v330_v28, %v330_v28  ;;  %v1478_v40 = vsel %vm590_vm0, %v1344_v35, 0.0  ;;  %v4795_v28 = vld [vmem:[%s4536_s21 + $0x120] sm:$0xff]  ;;  %v442_v35 = vadd.f32 %v4698_v1, %v4673_v52  ;;  %v648_v37 = vsel %vm590_vm0, %v529_v33, 0.0  ;;  %v345_v33 = vld [vmem:[%s4536_s21 + $0x158] sm:$0xff] }
  0x63   : > { %v528_v38 = vmul.f32 %v4565_v15, %v442_v35 }
  0x65   : > { %1443 = vadd.xlane.f32.xlu1 %v1442_v47  ;;  %1440 = vadd.xlane.f32.xlu0 %v1439_v48  ;;  %v1481_v47 = vsel %vm590_vm0, %v1345_v39, 0.0  ;;  %v672_v48 = vsel %vm590_vm0, %v537_v42, 0.0  ;;  %v4816_v39 = vld [vmem:[%s4536_s21 + $0x130] sm:$0xff]  ;;  %v645_v43 = vsel %vm590_vm0, %v528_v38, 0.0 }
  0x66   : > { %v1355_v42 = vmul.f32 %v4816_v39, %v4816_v39 }
  0x69   : > { %1449 = vadd.xlane.f32.xlu1 %v1448_v54  ;;  %1446 = vadd.xlane.f32.xlu0 %v1445_v55  ;;  %v1484_v54 = vsel %vm590_vm0, %v1346_v46, 0.0  ;;  %v669_v55 = vsel %vm590_vm0, %v536_v49, 0.0  ;;  %v4835_v49 = vld [vmem:[%s4536_s21 + $0x178] sm:$0xff] }
  0x6d   : > { %1455 = vadd.xlane.f32.xlu1 %v1454_v61  ;;  %1452 = vadd.xlane.f32.xlu0 %v1451_v62  ;;  %v1487_v61 = vsel %vm590_vm0, %v1347_v53, 0.0  ;;  %v666_v62 = vsel %vm590_vm0, %v535_v56, 0.0  ;;  %v1511_v53 = vsel %vm590_vm0, %v1355_v42, 0.0  ;;  %v4848_v56 = vld [vmem:[%s4536_s21 + $0x170] sm:$0xff] }
  0x71   : > { %1461 = vadd.xlane.f32.xlu1 %v1460_v8  ;;  %1458 = vadd.xlane.f32.xlu0 %v1457_v9  ;;  %v4757_v8 = vld [vmem:[%s4536_s21 + $0x100] sm:$0xff]  ;;  %v1490_v9 = vsel %vm590_vm0, %v1348_v60, 0.0 }
  0x72   : > { %v1349_v4 = vmul.f32 %v4757_v8, %v4757_v8  ;;  %v4851_v60 = vld [vmem:[#allocation2] ss:$0 sm:$0xff] }
  0x75   : > { %1467 = vadd.xlane.f32.xlu1 %v1466_v13  ;;  %1464 = vadd.xlane.f32.xlu0 %v1463_v14  ;;  %v1493_v13 = vsel %vm590_vm0, %v1349_v4, 0.0  ;;  %v660_v14 = vsel %vm590_vm0, %v533_v10, 0.0 }
  0x79   : > { %1470 = vadd.xlane.f32.xlu1 %v1469_v23  ;;  %685 = vadd.xlane.f32.xlu0 %v684_v24  ;;  %v4785_v23 = vld [vmem:[%s4536_s21 + $0x118] sm:$0xff]  ;;  %v444_v24 = vadd.f32 %v4698_v1, %v4686_v59 }
  0x7a   : > { %v1352_v57 = vmul.f32 %v4785_v23, %v4785_v23 }
  0x7b   : > { %v530_v27 = vmul.f32 %v4565_v15, %v444_v24 }
  0x7c   : > { %v1502_v59 = vsel %vm590_vm0, %v1352_v57, 0.0  ;;  %v346_v57 = vld [vmem:[%s4536_s21 + $0x160] sm:$0xff] }
  0x7d   : > { %1473 = vadd.xlane.f32.xlu1 %v1472_v30  ;;  %682 = vadd.xlane.f32.xlu0 %v681_v31  ;;  %v299_v30 = vld [vmem:[%s4531_s18 + $0x2] sm:$0x1]  ;;  %v1353_v31 = vmul.f32 %v4795_v28, %v4795_v28  ;;  %v651_v32 = vsel %vm590_vm0, %v530_v27, 0.0  ;;  %v1361_v42 = vmul.f32 %v346_v57, %v346_v57 }
  0x7f   : > { %v1505_v51 = vsel %vm590_vm0, %v1353_v31, 0.0 }
  0x81   : > { %1476 = vadd.xlane.f32.xlu1 %v1475_v36  ;;  %679 = vadd.xlane.f32.xlu0 %v678_v12  ;;  %v386_v36 = vmul.f32 0.1, %v299_v30  ;;  %v1354_v12 = vmul.f32 %v4806_v34, %v4806_v34 }
  0x83   : > { %v391_v52 = vadd.f32 %v386_v36, %v4539_v3 }
  0x85   : > { %1479 = vadd.xlane.f32.xlu1 %v1478_v40  ;;  %676 = vadd.xlane.f32.xlu0 %v675_v41  ;;  %v441_v40 = vadd.f32 %v4698_v1, %v4658_v44  ;;  %v1508_v41 = vsel %vm590_vm0, %v1354_v12, 0.0  ;;  %v440_v44 = vadd.f32 %v4698_v1, %v4661_v45  ;;  %v4845_v1 = vld [vmem:[%s4536_s21 + $0x140] sm:$0xff]  ;;  %v1360_v12 = vmul.f32 %v345_v33, %v345_v33 }
  0x86   : > { %v1357_v5 = vmul.f32 %v4845_v1, %v4845_v1 }
  0x87   : > { %v527_v46 = vmul.f32 %v4565_v15, %v441_v40 }
  0x88   : > { %v1517_v19 = vsel %vm590_vm0, %v1357_v5, 0.0 }
  0x89   : > { %1482 = vadd.xlane.f32.xlu1 %v1481_v47  ;;  %673 = vadd.xlane.f32.xlu0 %v672_v48  ;;  %v4827_v47 = vld [vmem:[%s4536_s21 + $0x138] sm:$0xff]  ;;  %v4832_v48 = vrot.slane %v391_v52, %v4542_v6 }
  0x8a   : > { %v1356_v50 = vmul.f32 %v4827_v47, %v4827_v47 }
  0x8b   : > { %v471_v45 = vadd.f32 %v4832_v48, %v4835_v49  ;;  %v470_v4 = vadd.f32 %v4832_v48, %v4848_v56  ;;  %v469_v22 = vadd.f32 %v4832_v48, %v347_v0  ;;  %v468_v35 = vadd.f32 %v4832_v48, %v346_v57 }
  0x8c   : > { %v1514_v58 = vsel %vm590_vm0, %v1356_v50, 0.0 }
  0x8d   : > { %1485 = vadd.xlane.f32.xlu1 %v1484_v54  ;;  %670 = vadd.xlane.f32.xlu0 %v669_v55  ;;  %v642_v54 = vsel %vm590_vm0, %v527_v46, 0.0  ;;  %v526_v55 = vmul.f32 %v4565_v15, %v440_v44  ;;  %v554_v52 = vmul.f32 %v4565_v15, %v468_v35  ;;  %v1526_v44 = vsel %vm590_vm0, %v1360_v12, 0.0 }
  0x8f   : > { %v639_v63 = vsel %vm590_vm0, %v526_v55, 0.0  ;;  %v723_v50 = vsel %vm590_vm0, %v554_v52, 0.0  ;;  %v1362_v55 = vmul.f32 %v347_v0, %v347_v0  ;;  %v462_v52 = vadd.f32 %v4832_v48, %v4816_v39 }
  0x91   : > { %1488 = vadd.xlane.f32.xlu1 %v1487_v61  ;;  %667 = vadd.xlane.f32.xlu0 %v666_v62  ;;  %v548_v39 = vmul.f32 %v4565_v15, %v462_v52 }
  0x95   : > { %1491 = vadd.xlane.f32.xlu1 %v1490_v9  ;;  %664 = vadd.xlane.f32.xlu0 %v663_v7  ;;  %v557_v9 = vmul.f32 %v4565_v15, %v471_v45  ;;  %v343_v7 = vld [vmem:[%s4536_s21 + $0x148] sm:$0xff] }
  0x97   : > { %v732_v2 = vsel %vm590_vm0, %v557_v9, 0.0  ;;  %v465_v9 = vadd.f32 %v4832_v48, %v343_v7 }
  0x99   : > { %1494 = vadd.xlane.f32.xlu1 %v1493_v13  ;;  %661 = vadd.xlane.f32.xlu0 %v660_v14  ;;  %v1358_v13 = vmul.f32 %v343_v7, %v343_v7 }
  0x9d   : > { %1497 = vadd.xlane.f32.xlu1 %v1496_v20  ;;  %658 = vadd.xlane.f32.xlu0 %v657_v21  ;;  %v556_v20 = vmul.f32 %v4565_v15, %v470_v4  ;;  %v344_v21 = vld [vmem:[%s4536_s21 + $0x150] sm:$0xff]  ;;  %v1363_v4 = vmul.f32 %v4848_v56, %v4848_v56 }
  0x9e   : > { %v1359_v27 = vmul.f32 %v344_v21, %v344_v21 }
  0x9f   : > { %v729_v31 = vsel %vm590_vm0, %v556_v20, 0.0  ;;  %v1535_v56 = vsel %vm590_vm0, %v1363_v4, 0.0  ;;  %v355_v4 = vld [vmem:[%s4536_s21 + $0x1a8] sm:$0xff] }
  0xa1   : > { %1500 = vadd.xlane.f32.xlu1 %v1499_v25  ;;  %655 = vadd.xlane.f32.xlu0 %v654_v26 }
  0xa5   : > { %1503 = vadd.xlane.f32.xlu1 %v1502_v59  ;;  %652 = vadd.xlane.f32.xlu0 %v651_v32  ;;  %v1520_v59 = vsel %vm590_vm0, %v1358_v13, 0.0  ;;  %v555_v32 = vmul.f32 %v4565_v15, %v469_v22  ;;  %v1532_v13 = vsel %vm590_vm0, %v1362_v55, 0.0  ;;  %v352_v55 = vld [vmem:[%s4536_s21 + $0x190] sm:$0xff] }
  0xa7   : > { %v726_v40 = vsel %vm590_vm0, %v555_v32, 0.0 }
  0xa9   : > { %1506 = vadd.xlane.f32.xlu1 %v1505_v51  ;;  %649 = vadd.xlane.f32.xlu0 %v648_v37  ;;  %v1523_v51 = vsel %vm590_vm0, %v1359_v27, 0.0 }
  0xad   : > { %1509 = vadd.xlane.f32.xlu1 %v1508_v41  ;;  %646 = vadd.xlane.f32.xlu0 %v645_v43  ;;  %v467_v41 = vadd.f32 %v4832_v48, %v345_v33 }
  0xb1   : > { %1512 = vadd.xlane.f32.xlu1 %v1511_v53  ;;  %643 = vadd.xlane.f32.xlu0 %v642_v54  ;;  %v553_v53 = vmul.f32 %v4565_v15, %v467_v41  ;;  %v466_v54 = vadd.f32 %v4832_v48, %v344_v21 }
  0xb2   : > { %v4853_v61 = vpop.xlane.xlu1 %598  ;;  %v593_v62 = vpop.xlane.xlu0 %592 }
  0xb3   : > { %v837_v10 = vadd.f32 %v4851_v60, %v593_v62  ;;  %v1529_v62 = vsel %vm590_vm0, %v1361_v42, 0.0  ;;  %v552_v5 = vmul.f32 %v4565_v15, %v466_v54 }
  0xb5   : > { %v917_v16 = vsub.f32 0.0, %v837_v10  ;;  %1515 = vadd.xlane.f32.xlu1 %v1514_v58  ;;  %640 = vadd.xlane.f32.xlu0 %v639_v63  ;;  %v720_v63 = vsel %vm590_vm0, %v553_v53, 0.0 }
  0xb6   : > { %v4864_v14 = vpop.xlane.xlu1 %601  ;;  %v596_v17 = vpop.xlane.xlu0 %595 }
  0xb7   : > { %v838_v24 = vadd.f32 %v4851_v60, %v596_v17  ;;  %v997_v25 = vmul.f32 1.442695, %v917_v16  ;;  %v717_v17 = vsel %vm590_vm0, %v552_v5, 0.0  ;;  %v459_v5 = vadd.f32 %v4832_v48, %v4785_v23 }
  0xb9   : > { %v918_v26 = vsub.f32 0.0, %v838_v24  ;;  %1518 = vadd.xlane.f32.xlu1 %v1517_v19  ;;  %733 = vadd.xlane.f32.xlu0 %v732_v2  ;;  %3793 = vpow2.f32 %v997_v25  ;;  %v551_v19 = vmul.f32 %v4565_v15, %v465_v9  ;;  %v464_v2 = vadd.f32 %v4832_v48, %v4845_v1  ;;  %v354_v9 = vld [vmem:[%s4536_s21 + $0x1a0] sm:$0xff] }
  0xba   : > { %v4873_v29 = vpop.xlane.xlu1 %607  ;;  %v4875_v30 = vpop.xlane.xlu0 %604  ;;  %v1364_v24 = vmul.f32 %v4835_v49, %v4835_v49 }
  0xbb   : > { %v999_v36 = vmul.f32 1.442695, %v918_v26  ;;  %v714_v27 = vsel %vm590_vm0, %v551_v19, 0.0  ;;  %v550_v1 = vmul.f32 %v4565_v15, %v464_v2  ;;  %v705_v19 = vsel %vm590_vm0, %v548_v39, 0.0 }
  0xbc   : > { %v1538_v49 = vsel %vm590_vm0, %v1364_v24, 0.0  ;;  %v1369_v2 = vmul.f32 %v354_v9, %v354_v9  ;;  %v457_v9 = vadd.f32 %v4832_v48, %v4765_v11 }
  0xbd   : > { %1521 = vadd.xlane.f32.xlu1 %v1520_v59  ;;  %730 = vadd.xlane.f32.xlu0 %v729_v31  ;;  %3795 = vpow2.f32 %v999_v36  ;;  %v350_v59 = vld [vmem:[%s4536_s21 + $0x180] sm:$0xff]  ;;  %v463_v31 = vadd.f32 %v4832_v48, %v4827_v47  ;;  %v711_v12 = vsel %vm590_vm0, %v550_v1, 0.0  ;;  %v351_v47 = vld [vmem:[%s4536_s21 + $0x188] sm:$0xff] }
  0xbe   : > { %v4883_v37 = vpop.xlane.xlu1 %613  ;;  %v4885_v38 = vpop.xlane.xlu0 %610  ;;  %v1365_v35 = vmul.f32 %v350_v59, %v350_v59  ;;  %v1366_v42 = vmul.f32 %v351_v47, %v351_v47  ;;  %v300_v1 = vld [vmem:[%s4531_s18 + $0x3] sm:$0x1] }
  0xc0   : > { %v1541_v41 = vsel %vm590_vm0, %v1365_v35, 0.0 }
  0xc1   : > { %1524 = vadd.xlane.f32.xlu1 %v1523_v51  ;;  %727 = vadd.xlane.f32.xlu0 %v726_v40  ;;  %v549_v40 = vmul.f32 %v4565_v15, %v463_v31  ;;  %v844_v31 = vadd.f32 %v4851_v60, %v4883_v37 }
  0xc2   : > { %v4890_v43 = vpop.xlane.xlu1 %619  ;;  %v4892_v46 = vpop.xlane.xlu0 %616 }
  0xc3   : > { %v708_v54 = vsel %vm590_vm0, %v549_v40, 0.0 }
  0xc5   : > { %1527 = vadd.xlane.f32.xlu1 %v1526_v44  ;;  %724 = vadd.xlane.f32.xlu0 %v723_v50  ;;  %v461_v44 = vadd.f32 %v4832_v48, %v4806_v34  ;;  %v458_v34 = vadd.f32 %v4832_v48, %v4775_v18 }
  0xc6   : > { %v4898_v45 = vpop.xlane.xlu1 %625  ;;  %v4900_v58 = vpop.xlane.xlu0 %622 }
  0xc7   : > { %v3794_v10 = vpop.eup %3793  ;;  %v848_v47 = vadd.f32 %v4851_v60, %v4898_v45  ;;  %v843_v45 = vadd.f32 %v4851_v60, %v4885_v38 }
  0xc8   : > { %v1157_v22 = vadd.f32 1.0, %v3794_v10  ;;  %v1544_v10 = vsel %vm590_vm0, %v1366_v42, 0.0 }
  0xc9   : > { %1530 = vadd.xlane.f32.xlu1 %v1529_v62  ;;  %721 = vadd.xlane.f32.xlu0 %v720_v63  ;;  %v353_v62 = vld [vmem:[%s4536_s21 + $0x198] sm:$0xff]  ;;  %v460_v63 = vadd.f32 %v4832_v48, %v4795_v28 }
  0xca   : > { %v1402_v16 = vpop.xlane.xlu1 %1401  ;;  %v1399_v0 = vpop.xlane.xlu0 %1398  ;;  %3797 = vrcp.f32 %v1157_v22  ;;  %v544_v22 = vmul.f32 %v4565_v15, %v458_v34 }
  0xcb   : > { %v3796_v20 = vpop.eup %3795  ;;  %v1638_v7 = vmul.f32 -0.055555556, %v1402_v16  ;;  %v1637_v21 = vmul.f32 -0.055555556, %v1399_v0  ;;  %v1367_v16 = vmul.f32 %v352_v55, %v352_v55  ;;  %v547_v0 = vmul.f32 %v4565_v15, %v461_v44 }
  0xcc   : > { %v1158_v57 = vadd.f32 1.0, %v3796_v20  ;;  %v546_v23 = vmul.f32 %v4565_v15, %v460_v63  ;;  %v545_v20 = vmul.f32 %v4565_v15, %v459_v5  ;;  %v4990_v39 = vsel %vm590_vm0, %v544_v22, 0.0 }
  0xcd   : > { %1533 = vadd.xlane.f32.xlu1 %v1532_v13  ;;  %718 = vadd.xlane.f32.xlu0 %v717_v17  ;;  %v1719_v32 = vmul.f32 1.442695, %v1638_v7  ;;  %v1717_v33 = vmul.f32 1.442695, %v1637_v21  ;;  %v1368_v13 = vmul.f32 %v353_v62, %v353_v62  ;;  %v1370_v7 = vmul.f32 %v355_v4, %v355_v4 }
  0xce   : > { %v4916_v25 = vpop.xlane.xlu1 %1407  ;;  %v4918_v26 = vpop.xlane.xlu0 %1404  ;;  %3799 = vrcp.f32 %v1158_v57  ;;  %v842_v21 = vadd.f32 %v4851_v60, %v4873_v29  ;;  %v1547_v24 = vsel %vm590_vm0, %v1367_v16, 0.0  ;;  %v702_v57 = vsel %vm590_vm0, %v547_v0, 0.0 }
  0xcf   : > { %3801 = vpow2.f32 %v1719_v32  ;;  %v696_v35 = vsel %vm590_vm0, %v545_v20, 0.0  ;;  %v4983_v37 = vsel %vm590_vm0, %v1370_v7, 0.0  ;;  %v387_v55 = vmul.f32 0.1, %v300_v1 }
  0xd0   : > { %3803 = vpow2.f32 %v1717_v33  ;;  %v699_v33 = vsel %vm590_vm0, %v546_v23, 0.0  ;;  %v922_v44 = vsub.f32 0.0, %v842_v21  ;;  %v846_v16 = vadd.f32 %v4851_v60, %v4890_v43 }
  0xd1   : > { %1536 = vadd.xlane.f32.xlu1 %v1535_v56  ;;  %715 = vadd.xlane.f32.xlu0 %v714_v27  ;;  %v1550_v27 = vsel %vm590_vm0, %v1368_v13, 0.0  ;;  %v928_v0 = vsub.f32 0.0, %v848_v47  ;;  %v845_v23 = vadd.f32 %v4851_v60, %v4892_v46  ;;  %v392_v20 = vadd.f32 %v387_v55, %v4539_v3  ;;  %v5032_v47 = vld [vmem:[%s4536_s21 + $0x1f8] sm:$0xff] }
  0xd2   : > { %v4926_v36 = vpop.xlane.xlu1 %1413  ;;  %v4928_v51 = vpop.xlane.xlu0 %1410  ;;  %v1007_v11 = vmul.f32 1.442695, %v922_v44  ;;  %v543_v7 = vmul.f32 %v4565_v15, %v457_v9  ;;  %v456_v43 = vadd.f32 %v4832_v48, %v4757_v8  ;;  %v923_v22 = vsub.f32 0.0, %v843_v45  ;;  %v5038_v45 = vld [vmem:[%s4536_s21 + $0x1c0] sm:$0xff] }
  0xd3   : > { %v926_v46 = vsub.f32 0.0, %v846_v16  ;;  %v1019_v1 = vmul.f32 1.442695, %v928_v0  ;;  %v5027_v48 = vrot.slane %v392_v20, %v4542_v6  ;;  %v1373_v16 = vmul.f32 %v5038_v45, %v5038_v45 }
  0xd5   : > { %1539 = vadd.xlane.f32.xlu1 %v1538_v49  ;;  %712 = vadd.xlane.f32.xlu0 %v711_v12  ;;  %v1553_v49 = vsel %vm590_vm0, %v1369_v2, 0.0  ;;  %v4977_v12 = vld [vmem:[%s4536_s21 + $0x1b0] sm:$0xff] }
  0xd6   : > { %v4938_v50 = vpop.xlane.xlu1 %1419  ;;  %v4940_v53 = vpop.xlane.xlu0 %1416  ;;  %v1371_v5 = vmul.f32 %v4977_v12, %v4977_v12 }
  0xd7   : > { %v3798_v59 = vpop.eup %3797 }
  0xd9   : > { %1542 = vadd.xlane.f32.xlu1 %v1541_v41  ;;  %709 = vadd.xlane.f32.xlu0 %v708_v54  ;;  %v847_v54 = vadd.f32 %v4851_v60, %v4900_v58  ;;  %v924_v58 = vsub.f32 0.0, %v844_v31  ;;  %v925_v31 = vsub.f32 0.0, %v845_v23 }
  0xda   : > { %v4956_v17 = vpop.xlane.xlu1 %1422  ;;  %v638_v28 = vpop.xlane.xlu0 %637 }
  0xdb   : > { %v852_v18 = vadd.f32 %v4851_v60, %v638_v28  ;;  %v3800_v40 = vpop.eup %3799  ;;  %v927_v2 = vsub.f32 0.0, %v847_v54  ;;  %v1011_v21 = vmul.f32 1.442695, %v924_v58  ;;  %v1013_v9 = vmul.f32 1.442695, %v925_v31 }
  0xdc   : > { %v4985_v42 = vpop.eup %3801 }
  0xdd   : > { %v932_v56 = vsub.f32 0.0, %v852_v18  ;;  %1545 = vadd.xlane.f32.xlu1 %v1544_v10  ;;  %706 = vadd.xlane.f32.xlu0 %v705_v19  ;;  %v4992_v62 = vpop.eup %3803  ;;  %v5003_v10 = vmul.f32 %v4985_v42, %v3800_v40  ;;  %v5012_v19 = vld [vmem:[%s4536_s21 + $0x1b8] sm:$0xff]  ;;  %v1017_v8 = vmul.f32 1.442695, %v927_v2  ;;  %v542_v40 = vmul.f32 %v4565_v15, %v456_v43  ;;  %v5062_v43 = vld [vmem:[%s6580_s3] ss:$0 sm:$0xff] }
  0xde   : > { %v4971_v32 = vpop.xlane.xlu1 %1425  ;;  %v635_v29 = vpop.xlane.xlu0 %634  ;;  %v5006_v38 = vmul.f32 %v4992_v62, %v3798_v59  ;;  %v1372_v3 = vmul.f32 %v5012_v19, %v5012_v19  ;;  %v841_v15 = vadd.f32 %v4851_v60, %v4875_v30 }
  0xdf   : > { %v1027_v52 = vmul.f32 1.442695, %v932_v56  ;;  %v851_v41 = vadd.f32 %v4851_v60, %v635_v29 }
  0xe0   : > { %v1562_v55 = vsel %vm590_vm0, %v1372_v3, 0.0 }
  0xe1   : > { %v931_v63 = vsub.f32 0.0, %v851_v41  ;;  %1548 = vadd.xlane.f32.xlu1 %v1547_v24  ;;  %703 = vadd.xlane.f32.xlu0 %v702_v57  ;;  %3805 = vpow2.f32 %v1027_v52  ;;  %v1559_v57 = vsel %vm590_vm0, %v1371_v5, 0.0  ;;  %v839_v52 = vadd.f32 %v4851_v60, %v4853_v61 }
  0xe2   : > { %v5000_v4 = vpop.xlane.xlu1 %1428  ;;  %v632_v34 = vpop.xlane.xlu0 %631  ;;  %v1009_v41 = vmul.f32 1.442695, %v923_v22  ;;  %v487_v61 = vadd.f32 %v5027_v48, %v5032_v47 }
  0xe3   : > { %v1025_v13 = vmul.f32 1.442695, %v931_v63  ;;  %v850_v28 = vadd.f32 %v4851_v60, %v632_v34  ;;  %v5041_v63 = vld [vmem:[%s4536_s21 + $0x1f0] sm:$0xff]  ;;  %v687_v34 = vsel %vm590_vm0, %v542_v40, 0.0  ;;  %v919_v0 = vsub.f32 0.0, %v839_v52 }
  0xe4   : > { %v486_v23 = vadd.f32 %v5027_v48, %v5041_v63 }
  0xe5   : > { %3807 = vpow2.f32 %v1025_v13  ;;  %v930_v18 = vsub.f32 0.0, %v850_v28  ;;  %1551 = vadd.xlane.f32.xlu1 %v1550_v27  ;;  %700 = vadd.xlane.f32.xlu0 %v699_v33  ;;  %v690_v33 = vsel %vm590_vm0, %v543_v7, 0.0 }
  0xe6   : > { %v5020_v56 = vpop.xlane.xlu1 %1431  ;;  %v629_v24 = vpop.xlane.xlu0 %628  ;;  %3809 = vpow2.f32 %v1007_v11  ;;  %v5053_v11 = vld [vmem:[%s4536_s21 + $0x1c8] sm:$0xff]  ;;  %v572_v31 = vmul.f32 %v5062_v43, %v486_v23 }
  0xe7   : > { %v1023_v27 = vmul.f32 1.442695, %v930_v18  ;;  %v849_v59 = vadd.f32 %v4851_v60, %v629_v24  ;;  %v921_v18 = vsub.f32 0.0, %v841_v15  ;;  %v1646_v15 = vmul.f32 -0.055555556, %v4971_v32 }
  0xe8   : > { %v1645_v32 = vmul.f32 -0.055555556, %v4956_v17 }
  0xe9   : > { %3811 = vpow2.f32 %v1023_v27  ;;  %v929_v29 = vsub.f32 0.0, %v849_v59  ;;  %1554 = vadd.xlane.f32.xlu1 %v1553_v49  ;;  %697 = vadd.xlane.f32.xlu0 %v696_v35  ;;  %v1015_v49 = vmul.f32 1.442695, %v926_v46  ;;  %v1648_v46 = vmul.f32 -0.055555556, %v5020_v56 }
  0xea   : > { %3813 = vpow2.f32 %v1011_v21  ;;  %v1438_v44 = vpop.xlane.xlu1 %1437  ;;  %v1435_v54 = vpop.xlane.xlu0 %1434  ;;  %v573_v21 = vmul.f32 %v5062_v43, %v487_v61  ;;  %v1005_v52 = vmul.f32 1.442695, %v921_v18  ;;  %v1565_v56 = vsel %vm590_vm0, %v1373_v16, 0.0 }
  0xeb   : > { %3815 = vpow2.f32 %v1019_v1  ;;  %v1021_v35 = vmul.f32 1.442695, %v929_v29  ;;  %v1650_v5 = vmul.f32 -0.055555556, %v1438_v44  ;;  %v1649_v13 = vmul.f32 -0.055555556, %v1435_v54 }
  0xec   : > { %3817 = vpow2.f32 %v1017_v8  ;;  %v5074_v8 = vld [vmem:[%s4536_s21 + $0x1e8] sm:$0xff]  ;;  %v5077_v29 = vld [vmem:[%s4536_s21 + $0x1e0] sm:$0xff]  ;;  %v780_v54 = vsel %vm590_vm0, %v573_v21, 0.0  ;;  %v1644_v21 = vmul.f32 -0.055555556, %v4938_v50 }
  0xed   : > { %3819 = vpow2.f32 %v1021_v35  ;;  %v1743_v58 = vmul.f32 1.442695, %v1650_v5  ;;  %1557 = vadd.xlane.f32.xlu1 %v4983_v37  ;;  %694 = vadd.xlane.f32.xlu0 %v4990_v39  ;;  %v840_v37 = vadd.f32 %v4851_v60, %v4864_v14  ;;  %v1374_v14 = vmul.f32 %v5053_v11, %v5053_v11 }
  0xee   : > { %3821 = vpow2.f32 %v1009_v41  ;;  %v1444_v30 = vpop.xlane.xlu1 %1443  ;;  %v1441_v28 = vpop.xlane.xlu0 %1440  ;;  %v1741_v1 = vmul.f32 1.442695, %v1649_v13  ;;  %v1647_v41 = vmul.f32 -0.055555556, %v5000_v4  ;;  %v485_v35 = vadd.f32 %v5027_v48, %v5074_v8 }
  0xef   : > { %v3806_v2 = vpop.eup %3805  ;;  %3823 = vpow2.f32 %v1015_v49  ;;  %v1652_v39 = vmul.f32 -0.055555556, %v1444_v30  ;;  %v1651_v20 = vmul.f32 -0.055555556, %v1441_v28  ;;  %v5085_v49 = vld [vmem:[%s4536_s21 + $0x1d0] sm:$0xff]  ;;  %v484_v5 = vadd.f32 %v5027_v48, %v5077_v29 }
  0xf0   : > { %3825 = vpow2.f32 %v1013_v9  ;;  %v1172_v7 = vadd.f32 1.0, %v3806_v2  ;;  %v1739_v9 = vmul.f32 1.442695, %v1648_v46  ;;  %v777_v30 = vsel %vm590_vm0, %v572_v31, 0.0 }
  0xf1   : > { %3827 = vpow2.f32 %v1743_v58  ;;  %v1747_v22 = vmul.f32 1.442695, %v1652_v39  ;;  %v1745_v24 = vmul.f32 1.442695, %v1651_v20  ;;  %1560 = vadd.xlane.f32.xlu1 %v1559_v57  ;;  %691 = vadd.xlane.f32.xlu0 %v690_v33  ;;  %v1001_v57 = vmul.f32 1.442695, %v919_v0 }
  0xf2   : > { %v3808_v3 = vpop.eup %3807  ;;  %3829 = vrcp.f32 %v1172_v7  ;;  %v5068_v27 = vpop.xlane.xlu1 %1449  ;;  %v920_v33 = vsub.f32 0.0, %v840_v37  ;;  %v1737_v23 = vmul.f32 1.442695, %v1647_v41  ;;  %v1375_v2 = vmul.f32 %v5085_v49, %v5085_v49 }
  0xf3   : > { %v5070_v59 = vpop.xlane.xlu0 %1446  ;;  %v1171_v40 = vadd.f32 1.0, %v3808_v3  ;;  %3831 = vpow2.f32 %v1747_v22  ;;  %v5081_v44 = vpop.eup %3809  ;;  %v571_v39 = vmul.f32 %v5062_v43, %v485_v35  ;;  %v570_v18 = vmul.f32 %v5062_v43, %v484_v5 }
  0xf4   : > { %3833 = vpow2.f32 %v1745_v24  ;;  %v1003_v0 = vmul.f32 1.442695, %v920_v33  ;;  %v1735_v22 = vmul.f32 1.442695, %v1646_v15  ;;  %v1733_v33 = vmul.f32 1.442695, %v1645_v32 }
  0xf5   : > { %3835 = vrcp.f32 %v1171_v40  ;;  %1563 = vadd.xlane.f32.xlu1 %v1562_v55  ;;  %688 = vadd.xlane.f32.xlu0 %v687_v34  ;;  %v1568_v55 = vsel %vm590_vm0, %v1374_v14, 0.0  ;;  %v361_v34 = vld [vmem:[%s4536_s21 + $0x1d8] sm:$0xff]  ;;  %v1571_v50 = vsel %vm590_vm0, %v1375_v2, 0.0  ;;  %v774_v41 = vsel %vm590_vm0, %v571_v39, 0.0 }
  0xf6   : > { %v3812_v4 = vpop.eup %3811  ;;  %3837 = vpow2.f32 %v1741_v1  ;;  %v5092_v61 = vpop.xlane.xlu1 %1455  ;;  %v1376_v20 = vmul.f32 %v361_v34, %v361_v34  ;;  %v483_v14 = vadd.f32 %v5027_v48, %v361_v34  ;;  %v1642_v1 = vmul.f32 -0.055555556, %v4926_v36  ;;  %v4274_v2 = vld [vmem:[%s4536_s21 + $0x78] sm:$0xff] }
  0xf7   : > { %v5094_v58 = vpop.xlane.xlu0 %1452  ;;  %v5098_v16 = vpop.eup %3813  ;;  %3839 = vpow2.f32 %v1001_v57  ;;  %v1170_v13 = vadd.f32 1.0, %v3812_v4  ;;  %v1731_v35 = vmul.f32 1.442695, %v1644_v21  ;;  %v1643_v36 = vmul.f32 -0.055555556, %v4940_v53  ;;  %v4275_v21 = vld [vmem:[%s4536_s21 + $0x70] sm:$0xff] }
  0xf8   : > { %v3816_v28 = vpop.eup %3815  ;;  %3841 = vpow2.f32 %v1005_v52  ;;  %v771_v15 = vsel %vm590_vm0, %v570_v18, 0.0  ;;  %v1377_v34 = vmul.f32 %v5077_v29, %v5077_v29 }
  0xf9   : > { %v3818_v37 = vpop.eup %3817  ;;  %3843 = vrcp.f32 %v1170_v13  ;;  %1566 = vadd.xlane.f32.xlu1 %v1565_v56  ;;  %781 = vadd.xlane.f32.xlu0 %v780_v54  ;;  %v1168_v46 = vadd.f32 1.0, %v3816_v28  ;;  %v1574_v56 = vsel %vm590_vm0, %v1376_v20, 0.0  ;;  %v482_v28 = vadd.f32 %v5027_v48, %v5085_v49 }
  0xfa   : > { %v3820_v7 = vpop.eup %3819  ;;  %3845 = vpow2.f32 %v1739_v9  ;;  %v5107_v24 = vpop.xlane.xlu1 %1461  ;;  %v1167_v52 = vadd.f32 1.0, %v3818_v37  ;;  %v1640_v20 = vmul.f32 -0.055555556, %v4916_v25 }
  0xfb   : > { %v5109_v17 = vpop.xlane.xlu0 %1458  ;;  %v5112_v3 = vpop.eup %3821  ;;  %3847 = vpow2.f32 %v1003_v0  ;;  %v1169_v31 = vadd.f32 1.0, %v3820_v7  ;;  %v569_v0 = vmul.f32 %v5062_v43, %v483_v14  ;;  %v1641_v14 = vmul.f32 -0.055555556, %v4928_v51 }
  0xfc   : > { %v3824_v57 = vpop.eup %3823  ;;  %3849 = vpow2.f32 %v1737_v23 }
  0xfd   : > { %v3826_v40 = vpop.eup %3825  ;;  %3851 = vrcp.f32 %v1169_v31  ;;  %1569 = vadd.xlane.f32.xlu1 %v1568_v55  ;;  %778 = vadd.xlane.f32.xlu0 %v777_v30  ;;  %v1727_v55 = vmul.f32 1.442695, %v1642_v1  ;;  %v1162_v30 = vadd.f32 1.0, %v5081_v44  ;;  %v1166_v23 = vadd.f32 1.0, %v3824_v57 }
  0xfe   : > { %v5118_v54 = vpop.eup %3827  ;;  %3853 = vpow2.f32 %v1735_v22  ;;  %v5121_v5 = vpop.xlane.xlu1 %1467  ;;  %v1165_v53 = vadd.f32 1.0, %v3826_v40  ;;  %v1729_v44 = vmul.f32 1.442695, %v1643_v36  ;;  %v1164_v31 = vadd.f32 1.0, %v5098_v16 }
  0xff   : > { %v5123_v4 = vpop.xlane.xlu0 %1464  ;;  %v3830_v9 = vpop.eup %3829  ;;  %3855 = vrcp.f32 %v1168_v46  ;;  %v1577_v57 = vsel %vm590_vm0, %v1377_v34, 0.0 }
 0x100   : > { %v3832_v13 = vpop.eup %3831  ;;  %3857 = vpow2.f32 %v1733_v33  ;;  %v768_v33 = vsel %vm590_vm0, %v569_v0, 0.0 }
 0x101   : > { %v3834_v32 = vpop.eup %3833  ;;  %3859 = vrcp.f32 %v1167_v52  ;;  %1572 = vadd.xlane.f32.xlu1 %v1571_v50  ;;  %775 = vadd.xlane.f32.xlu0 %v774_v41  ;;  %v5133_v37 = vmul.f32 %v4274_v2, %v3832_v13  ;;  %v1972_v29 = vmul.f32 %v3832_v13, %v3830_v9  ;;  %v1163_v50 = vadd.f32 1.0, %v5112_v3  ;;  %v4276_v9 = vld [vmem:[%s4536_s21 + $0x68] sm:$0xff]  ;;  %v4277_v3 = vld [vmem:[%s4536_s21 + $0x60] sm:$0xff] }
 0x102   : > { %v3836_v39 = vpop.eup %3835  ;;  %3861 = vpow2.f32 %v1731_v35  ;;  %v5136_v18 = vpop.xlane.xlu1 %1470  ;;  %v5139_v22 = vmul.f32 %v4275_v21, %v3834_v32  ;;  %v568_v52 = vmul.f32 %v5062_v43, %v482_v28  ;;  %v1723_v41 = vmul.f32 1.442695, %v1640_v20 }
 0x103   : > { %v686_v7 = vpop.xlane.xlu0 %685  ;;  %v5141_v49 = vpop.eup %3837  ;;  %3863 = vpow2.f32 %v1727_v55  ;;  %3313 = vmatprep.subr.mxu0 %v5133_v37  ;;  %3348 = vmatprep.subr.mxu1 %v1972_v29  ;;  %v1971_v1 = vmul.f32 %v3836_v39, %v3834_v32  ;;  %v5159_v55 = vmul.f32 %v4276_v9, %v5118_v54  ;;  %v481_v13 = vadd.f32 %v5027_v48, %v5053_v11 }
 0x104   : > { %v868_v46 = vadd.f32 %v4851_v60, %v686_v7  ;;  %v5146_v25 = vpop.eup %3839  ;;  %3865 = vrcp.f32 %v1165_v53  ;;  %3314 = vmatpush3.msra.mxu0 %v5133_v37  ;;  %3349 = vmatpush3.msra.mxu1 %v1972_v29  ;;  %v5163_v34 = vmul.f32 %v4277_v3, %v5141_v49  ;;  %v1639_v28 = vmul.f32 -0.055555556, %v4918_v26  ;;  %v4280_v3 = vld [vmem:[%s4536_s21 + $0x48] sm:$0xff] }
 0x105   : > { %v3842_v51 = vpop.eup %3841  ;;  %3867 = vrcp.f32 %v1166_v23  ;;  %1575 = vadd.xlane.f32.xlu1 %v1574_v56  ;;  %772 = vadd.xlane.f32.xlu0 %v771_v15  ;;  %v1725_v15 = vmul.f32 1.442695, %v1641_v14  ;;  %v765_v29 = vsel %vm590_vm0, %v568_v52, 0.0  ;;  %v1378_v7 = vmul.f32 %v5074_v8, %v5074_v8 }
 0x106   : > { %v948_v40 = vsub.f32 0.0, %v868_v46  ;;  %v3844_v16 = vpop.eup %3843  ;;  %3869 = vpow2.f32 %v1729_v44  ;;  %3315 = vmatprep.subr.mxu0 %v5139_v22  ;;  %v5155_v35 = vpop.xlane.xlu1 %1473  ;;  %3350 = vmatprep.subr.mxu1 %v1971_v1  ;;  %v1161_v39 = vadd.f32 1.0, %v3842_v51  ;;  %v480_v52 = vadd.f32 %v5027_v48, %v5038_v45 }
 0x107   : > { %v683_v36 = vpop.xlane.xlu0 %682  ;;  %v3846_v56 = vpop.eup %3845  ;;  %3871 = vrcp.f32 %v1162_v30  ;;  %3316 = vmatpush3.msra.mxu0 %v5139_v22  ;;  %3351 = vmatpush3.msra.mxu1 %v1971_v1  ;;  %v1970_v23 = vmul.f32 %v3844_v16, %v5118_v54  ;;  %v4278_v54 = vld [vmem:[%s4536_s21 + $0x58] sm:$0xff]  ;;  %v567_v1 = vmul.f32 %v5062_v43, %v481_v13 }
 0x108   : > { %v867_v0 = vadd.f32 %v4851_v60, %v683_v36  ;;  %v3848_v53 = vpop.eup %3847  ;;  %3873 = vrcp.f32 %v1164_v31  ;;  %v1059_v32 = vmul.f32 1.442695, %v948_v40  ;;  %3317 = vmatprep.subr.mxu0 %v5159_v55  ;;  %v5180_v44 = vmul.f32 %v4278_v54, %v3846_v56 }
 0x109   : > { %v5172_v30 = vpop.eup %3849  ;;  %3875 = vrcp.f32 %v1163_v50  ;;  %3318 = vmatpush3.msra.mxu0 %v5159_v55  ;;  %1578 = vadd.xlane.f32.xlu1 %v1577_v57  ;;  %v1721_v57 = vmul.f32 1.442695, %v1639_v28  ;;  %v762_v28 = vsel %vm590_vm0, %v567_v1, 0.0  ;;  %v1380_v1 = vmul.f32 %v5032_v47, %v5032_v47  ;;  %v4283_v47 = vld [vmem:[%s4536_s21 + $0x30] sm:$0xff] }
 0x10a   : > { %v947_v2 = vsub.f32 0.0, %v867_v0  ;;  %v3852_v11 = vpop.eup %3851  ;;  %3877 = vpow2.f32 %v1723_v41  ;;  %769 = vadd.xlane.f32.xlu0 %v768_v33  ;;  %3319 = vmatprep.subr.mxu0 %v5163_v34  ;;  %v5177_v26 = vpop.xlane.xlu1 %1476  ;;  %v4279_v33 = vld [vmem:[%s4536_s21 + $0x50] sm:$0xff]  ;;  %v1160_v41 = vadd.f32 1.0, %v3848_v53  ;;  %v1580_v53 = vsel %vm590_vm0, %v1378_v7, 0.0 }
 0x10b   : > { %v680_v20 = vpop.xlane.xlu0 %679  ;;  %v5184_v21 = vpop.eup %3853  ;;  %3879 = vpow2.f32 %v1725_v15  ;;  %3352 = vmatprep.subr.mxu1 %v1970_v23  ;;  %3320 = vmatpush3.msra.mxu0 %v5163_v34  ;;  %v5192_v8 = vmul.f32 %v4279_v33, %v5172_v30  ;;  %v1969_v51 = vmul.f32 %v3852_v11, %v5141_v49 }
 0x10c   : > { %v1057_v14 = vmul.f32 1.442695, %v947_v2  ;;  %v866_v46 = vadd.f32 %v4851_v60, %v680_v20  ;;  %v3856_v31 = vpop.eup %3855  ;;  %3881 = vpow2.f32 %v1059_v32  ;;  %3353 = vmatpush3.msra.mxu1 %v1970_v23  ;;  %3321 = vmatprep.subr.mxu0 %v5180_v44  ;;  %v5201_v49 = vmul.f32 %v4280_v3, %v5184_v21 }
 0x10d   : > { %v3858_v50 = vpop.eup %3857  ;;  %3322 = vmatpush3.msra.mxu0 %v5180_v44  ;;  %766 = vadd.xlane.f32.xlu1 %v765_v29  ;;  %v1968_v15 = vmul.f32 %v3856_v31, %v3846_v56  ;;  %v1159_v23 = vadd.f32 1.0, %v5146_v25  ;;  %v4281_v56 = vld [vmem:[%s4536_s21 + $0x40] sm:$0xff]  ;;  %v1379_v29 = vmul.f32 %v5041_v63, %v5041_v63 }
 0x10e   : > { %3883 = vpow2.f32 %v1057_v14  ;;  %v946_v40 = vsub.f32 0.0, %v866_v46  ;;  %v3860_v16 = vpop.eup %3859  ;;  %3323 = vmatprep.subr.mxu0 %v5192_v8  ;;  %3354 = vmatprep.subr.mxu1 %v1969_v51  ;;  %v1480_v36 = vpop.xlane.xlu1 %1479  ;;  %v5214_v2 = vmul.f32 %v4281_v56, %v3858_v50  ;;  %v4282_v46 = vld [vmem:[%s4536_s21 + $0x38] sm:$0xff] }
 0x10f   : > { %3885 = vrcp.f32 %v1161_v39  ;;  %v677_v9 = vpop.xlane.xlu0 %676  ;;  %v5203_v0 = vpop.eup %3861  ;;  %3324 = vmatpush3.msra.mxu0 %v5192_v8  ;;  %3355 = vmatpush3.msra.mxu1 %v1969_v51  ;;  %v1654_v39 = vmul.f32 -0.055555556, %v5068_v27  ;;  %v1967_v25 = vmul.f32 %v3860_v16, %v5172_v30  ;;  %v566_v27 = vmul.f32 %v5062_v43, %v480_v52 }
 0x110   : > { %v1055_v13 = vmul.f32 1.442695, %v946_v40  ;;  %v865_v45 = vadd.f32 %v4851_v60, %v677_v9  ;;  %v5209_v32 = vpop.eup %3863  ;;  %3887 = vpow2.f32 %v1721_v57  ;;  %3325 = vmatprep.subr.mxu0 %v5201_v49  ;;  %3356 = vmatprep.subr.mxu1 %v1968_v15  ;;  %v5224_v63 = vmul.f32 %v4282_v46, %v5203_v0 }
 0x111   : > { %v3866_v11 = vpop.eup %3865  ;;  %3326 = vmatpush3.msra.mxu0 %v5201_v49  ;;  %3357 = vmatpush3.msra.mxu1 %v1968_v15  ;;  %v1653_v30 = vmul.f32 -0.055555556, %v5070_v59  ;;  %v1655_v16 = vmul.f32 -0.055555556, %v5094_v58  ;;  %v1751_v9 = vmul.f32 1.442695, %v1654_v39 }
 0x112   : > { %3889 = vpow2.f32 %v1055_v13  ;;  %v945_v20 = vsub.f32 0.0, %v865_v45  ;;  %v3868_v54 = vpop.eup %3867  ;;  %1581 = vadd.xlane.f32.xlu1 %v1580_v53  ;;  %3327 = vmatprep.subr.mxu0 %v5214_v2  ;;  %v1483_v7 = vpop.xlane.xlu1 %1482  ;;  %v1965_v59 = vmul.f32 %v3866_v11, %v3858_v50  ;;  %v1664_v3 = vmul.f32 -0.055555556, %v1480_v36  ;;  %v4284_v13 = vld [vmem:[%s4536_s21 + $0x28] sm:$0xff] }
 0x113   : > { %3891 = vrcp.f32 %v1160_v41  ;;  %v674_v14 = vpop.xlane.xlu0 %673  ;;  %v3870_v31 = vpop.eup %3869  ;;  %3358 = vmatprep.subr.mxu1 %v1967_v25  ;;  %3328 = vmatpush3.msra.mxu0 %v5214_v2  ;;  %v1966_v51 = vmul.f32 %v3868_v54, %v5184_v21  ;;  %v5243_v45 = vmul.f32 %v4284_v13, %v5209_v32  ;;  %v1583_v50 = vsel %vm590_vm0, %v1379_v29, 0.0 }
 0x114   : > { %v1053_v57 = vmul.f32 1.442695, %v945_v20  ;;  %v864_v33 = vadd.f32 %v4851_v60, %v674_v14  ;;  %v3872_v40 = vpop.eup %3871  ;;  %3893 = vrcp.f32 %v1159_v23  ;;  %3359 = vmatpush3.msra.mxu1 %v1967_v25  ;;  %3329 = vmatprep.subr.mxu0 %v5224_v63  ;;  %v5236_v52 = vmul.f32 %v4283_v47, %v3870_v31  ;;  %v5251_v20 = vld [vmem:[#allocation2] ss:$0 sm:$0xff] }
 0x115   : > { %v3874_v41 = vpop.eup %3873  ;;  %3360 = vmatprep.subr.mxu1 %v1966_v51  ;;  %3330 = vmatpush3.msra.mxu0 %v5224_v63  ;;  %v1749_v36 = vmul.f32 1.442695, %v1653_v30  ;;  %v1665_v23 = vmul.f32 -0.055555556, %v1483_v7  ;;  %v1753_v39 = vmul.f32 1.442695, %v1655_v16  ;;  %v479_v30 = vadd.f32 %v5027_v48, %v5012_v19 }
 0x116   : > { %3895 = vpow2.f32 %v1053_v57  ;;  %v944_v15 = vsub.f32 0.0, %v864_v33  ;;  %v3876_v60 = vpop.eup %3875  ;;  %3361 = vmatpush3.msra.mxu1 %v1966_v51  ;;  %763 = vadd.xlane.f32.xlu1 %v762_v28  ;;  %v5239_v58 = vpop.xlane.xlu1 %1485  ;;  %v1964_v28 = vmul.f32 %v3874_v41, %v5203_v0  ;;  %v759_v25 = vsel %vm590_vm0, %v566_v27, 0.0  ;;  %v4286_v0 = vld [vmem:[%s4536_s21 + $0x20] sm:$0xff]  ;;  %v4287_v16 = vld [vmem:[%s4536_s21 + $0x18] sm:$0xff] }
 0x117   : > { %v671_v21 = vpop.xlane.xlu0 %670  ;;  %v5246_v53 = vpop.eup %3877  ;;  %3331 = vmatprep.subr.mxu0 %v5236_v52  ;;  %3362 = vmatprep.subr.mxu1 %v1965_v59  ;;  %v5256_v54 = vsel %vm590_vm0, %v1380_v1, 0.0  ;;  %3897 = vpow2.f32 %v1751_v9  ;;  %v1771_v14 = vmul.f32 1.442695, %v1664_v3  ;;  %v1963_v27 = vmul.f32 %v3876_v60, %v3870_v31 }
 0x118   : > { %v1051_v56 = vmul.f32 1.442695, %v944_v15  ;;  %v3880_v11 = vpop.eup %3879  ;;  %3332 = vmatpush3.msra.mxu0 %v5236_v52  ;;  %3363 = vmatpush3.msra.mxu1 %v1965_v59  ;;  %v863_v29 = vadd.f32 %v5251_v20, %v671_v21  ;;  %v5267_v47 = vmul.f32 %v4287_v16, %v5246_v53  ;;  %v1773_v41 = vmul.f32 1.442695, %v1665_v23 }
 0x119   : > { %v3882_v7 = vpop.eup %3881  ;;  %3333 = vmatprep.subr.mxu0 %v5243_v45  ;;  %3364 = vmatprep.subr.mxu1 %v1964_v28  ;;  %v5260_v46 = vmul.f32 %v4286_v0, %v3880_v11  ;;  %v1962_v9 = vmul.f32 %v3872_v40, %v5209_v32  ;;  %v4288_v40 = vld [vmem:[%s4536_s21 + $0x10] sm:$0xff]  ;;  %v1666_v0 = vmul.f32 -0.055555556, %v5239_v58 }
 0x11a   : > { %3899 = vpow2.f32 %v1051_v56  ;;  %v943_v33 = vsub.f32 0.0, %v863_v29  ;;  %3334 = vmatpush3.msra.mxu0 %v5243_v45  ;;  %3365 = vmatpush3.msra.mxu1 %v1964_v28  ;;  %v1489_v1 = vpop.xlane.xlu1 %1488  ;;  %v1188_v3 = vadd.f32 1.0, %v3882_v7  ;;  %v366_v7 = vld [vmem:[%s4536_s21 + $0x200] sm:$0xff] }
 0x11b   : > { %v3884_v57 = vpop.eup %3883  ;;  %v668_v51 = vpop.xlane.xlu0 %667  ;;  %3901 = vpow2.f32 %v1749_v36  ;;  %1584 = vadd.xlane.f32.xlu1 %v1583_v50  ;;  %3335 = vmatprep.subr.mxu0 %v5260_v46  ;;  %v1667_v15 = vmul.f32 -0.055555556, %v1489_v1  ;;  %v565_v50 = vmul.f32 %v5062_v43, %v479_v30  ;;  %v1381_v58 = vmul.f32 %v366_v7, %v366_v7 }
 0x11c   : > { %v3886_v59 = vpop.eup %3885  ;;  %v862_v19 = vadd.f32 %v5251_v20, %v668_v51  ;;  %3903 = vpow2.f32 %v1753_v39  ;;  %v1049_v31 = vmul.f32 1.442695, %v943_v33  ;;  %3366 = vmatprep.subr.mxu1 %v1963_v27  ;;  %3336 = vmatpush3.msra.mxu0 %v5260_v46  ;;  %v1187_v21 = vadd.f32 1.0, %v3884_v57  ;;  %v4289_v39 = vld [vmem:[%s4536_s21 + $0x8] sm:$0xff] }
 0x11d   : > { %v3888_v60 = vpop.eup %3887  ;;  %3905 = vpow2.f32 %v1771_v14  ;;  %3367 = vmatpush3.msra.mxu1 %v1963_v27  ;;  %3337 = vmatprep.subr.mxu0 %v5267_v47  ;;  %v1961_v23 = vmul.f32 %v3886_v59, %v3880_v11  ;;  %v5281_v29 = vmul.f32 %v4289_v39, %v4985_v42  ;;  %v1777_v33 = vmul.f32 1.442695, %v1667_v15  ;;  %v4290_v59 = vld [vmem:[%s4536_s21] sm:$0xff] }
 0x11e   : > { %v942_v13 = vsub.f32 0.0, %v862_v19  ;;  %3907 = vpow2.f32 %v1049_v31  ;;  %3368 = vmatprep.subr.mxu1 %v1962_v9  ;;  %3338 = vmatpush3.msra.mxu0 %v5267_v47  ;;  %v5277_v36 = vmul.f32 %v4288_v40, %v3888_v60  ;;  %v1492_v56 = vpop.xlane.xlu1 %1491  ;;  %v1775_v31 = vmul.f32 1.442695, %v1666_v0 }
 0x11f   : > { %v3890_v32 = vpop.eup %3889  ;;  %v665_v28 = vpop.xlane.xlu0 %664  ;;  %3909 = vpow2.f32 %v1773_v41  ;;  %3369 = vmatpush3.msra.mxu1 %v1962_v9  ;;  %760 = vadd.xlane.f32.xlu1 %v759_v25  ;;  %v1668_v57 = vmul.f32 -0.055555556, %v1492_v56  ;;  %v5292_v41 = vmul.f32 %v4290_v59, %v4992_v62  ;;  %v1658_v59 = vmul.f32 -0.055555556, %v5107_v24 }
 0x120   : > { %v3892_v14 = vpop.eup %3891  ;;  %v1047_v30 = vmul.f32 1.442695, %v942_v13  ;;  %3911 = vrcp.f32 %v1188_v3  ;;  %3339 = vmatprep.subr.mxu0 %v5277_v36  ;;  %3370 = vmatprep.subr.mxu1 %v1961_v23  ;;  %v861_v11 = vadd.f32 %v5251_v20, %v665_v28  ;;  %v1186_v1 = vadd.f32 1.0, %v3890_v32 }
 0x121   : > { %v1960_v42 = vmul.f32 %v3892_v14, %v5246_v53  ;;  %v3894_v27 = vpop.eup %3893  ;;  %3913 = vrcp.f32 %v1187_v21  ;;  %v1779_v51 = vmul.f32 1.442695, %v1668_v57  ;;  %3340 = vmatpush3.msra.mxu0 %v5277_v36  ;;  %3371 = vmatpush3.msra.mxu1 %v1961_v23  ;;  %v1656_v3 = vmul.f32 -0.055555556, %v5092_v61 }
 0x122   : > { %3915 = vpow2.f32 %v1047_v30  ;;  %v941_v16 = vsub.f32 0.0, %v861_v11  ;;  %3341 = vmatprep.subr.mxu0 %v5281_v29  ;;  %v1959_v19 = vmul.f32 %v3894_v27, %v3888_v60  ;;  %v5294_v53 = vpop.xlane.xlu1 %1494  ;;  %v1663_v21 = vmul.f32 -0.055555556, %v5177_v26  ;;  %v367_v30 = vld [vmem:[%s4536_s21 + $0x208] sm:$0xff] }
 0x123   : > { %v3896_v25 = vpop.eup %3895  ;;  %3372 = vmatprep.subr.mxu1 %v1960_v42  ;;  %6670 = vst [vmem:[#allocation6_spill] sm:$0xff] %v5294_v53  ;;  %v662_v9 = vpop.xlane.xlu0 %661  ;;  %3917 = vpow2.f32 %v1779_v51  ;;  %3342 = vmatpush3.msra.mxu0 %v5281_v29  ;;  %v756_v61 = vsel %vm590_vm0, %v565_v50, 0.0  ;;  %v478_v60 = vadd.f32 %v5027_v48, %v4977_v12  ;;  %v1589_v23 = vsel %vm590_vm0, %v1381_v58, 0.0 }
 0x124   : > { %3373 = vmatpush3.msra.mxu1 %v1960_v42  ;;  %v860_v15 = vadd.f32 %v5251_v20, %v662_v9  ;;  %v1185_v13 = vadd.f32 1.0, %v3896_v25  ;;  %3919 = vpow2.f32 %v1777_v33  ;;  %v1045_v32 = vmul.f32 1.442695, %v941_v16  ;;  %1587 = vadd.xlane.f32.xlu1 %v5256_v54  ;;  %v5306_v40 = vpop.eup %3897 }
 0x125   : > { %3343 = vmatprep.subr.mxu0 %v5292_v41  ;;  %3921 = vrcp.f32 %v1186_v1  ;;  %3374 = vmatprep.subr.mxu1 %v1959_v19  ;;  %6671 = vst [vmem:[#allocation7_spill] sm:$0xff] %v5306_v40  ;;  %v1755_v28 = vmul.f32 1.442695, %v1656_v3  ;;  %v1657_v12 = vmul.f32 -0.055555556, %v5109_v17  ;;  %v564_v42 = vmul.f32 %v5062_v43, %v478_v60 }
 0x126   : > { %3344 = vmatpush3.msra.mxu0 %v5292_v41  ;;  %v940_v62 = vsub.f32 0.0, %v860_v15  ;;  %3923 = vpow2.f32 %v1045_v32  ;;  %3375 = vmatpush3.msra.mxu1 %v1959_v19  ;;  %v5308_v26 = vpop.xlane.xlu1 %1497  ;;  %v1769_v14 = vmul.f32 1.442695, %v1663_v21  ;;  %v1662_v33 = vmul.f32 -0.055555556, %v5155_v35  ;;  %v4291_v35 = vld [vmem:[%s4536_s21 + $0x1a8] sm:$0xff] }
 0x127   : > { %v659_v54 = vpop.xlane.xlu0 %658  ;;  %v3900_v56 = vpop.eup %3899  ;;  %3925 = vpow2.f32 %v1775_v31  ;;  %3376 = vmatprep.subr.mxu1 %v5003_v10  ;;  %v1382_v58 = vmul.f32 %v367_v30, %v367_v30  ;;  %v477_v25 = vadd.f32 %v4291_v35, %v5027_v48  ;;  %v1757_v19 = vmul.f32 1.442695, %v1657_v12 }
 0x128   : > { %v1043_v39 = vmul.f32 1.442695, %v940_v62  ;;  %v859_v50 = vadd.f32 %v5251_v20, %v659_v54  ;;  %v5313_v7 = vpop.eup %3901  ;;  %3927 = vrcp.f32 %v1185_v13  ;;  %v1184_v0 = vadd.f32 1.0, %v3900_v56  ;;  %3377 = vmatpush3.msra.mxu1 %v5003_v10  ;;  %757 = vadd.xlane.f32.xlu1 %v756_v61  ;;  %v5345_v56 = vld [vmem:[%s4536_s21 + $0x210] sm:$0xff] }
 0x129   : > { %6672 = vst [vmem:[#allocation8_spill] sm:$0xff] %v5313_v7  ;;  %v5318_v57 = vpop.eup %3903  ;;  %3378 = vmatprep.subr.mxu1 %v5006_v38  ;;  %v1661_v3 = vmul.f32 -0.055555556, %v5136_v18  ;;  %v1767_v31 = vmul.f32 1.442695, %v1662_v33  ;;  %v753_v15 = vsel %vm590_vm0, %v564_v42, 0.0  ;;  %v563_v61 = vmul.f32 %v5062_v43, %v477_v25 }
 0x12a   : > { %6673 = vst [vmem:[#allocation9_spill] sm:$0xff] %v5318_v57  ;;  %3929 = vpow2.f32 %v1043_v39  ;;  %v939_v11 = vsub.f32 0.0, %v859_v50  ;;  %v5323_v27 = vpop.eup %3905  ;;  %3379 = vmatpush3.msra.mxu1 %v5006_v38  ;;  %v5326_v17 = vpop.xlane.xlu1 %1500  ;;  %v1592_v62 = vsel %vm590_vm0, %v1382_v58, 0.0  ;;  %v1759_v18 = vmul.f32 1.442695, %v1658_v59  ;;  %v4292_v50 = vld [vmem:[%s4536_s21 + $0xf8] sm:$0xff] }
 0x12b   : > { %3931 = vrcp.f32 %v1184_v0  ;;  %v5328_v10 = vpop.xlane.xlu0 %655  ;;  %v3908_v1 = vpop.eup %3907  ;;  %v1659_v54 = vmul.f32 -0.055555556, %v5123_v4  ;;  %v1765_v39 = vmul.f32 1.442695, %v1661_v3  ;;  %v1660_v33 = vmul.f32 -0.055555556, %v5121_v5 }
 0x12c   : > { %3933 = vpow2.f32 %v1755_v28  ;;  %v1041_v51 = vmul.f32 1.442695, %v939_v11  ;;  %v5332_v16 = vpop.eup %3909  ;;  %v1183_v9 = vadd.f32 1.0, %v3908_v1  ;;  %1590 = vadd.xlane.f32.xlu1 %v1589_v23  ;;  %v1383_v58 = vmul.f32 %v5345_v56, %v5345_v56  ;;  %v4294_v59 = vld [vmem:[%s4536_s21 + $0x1a0] sm:$0xff]  ;;  %v4295_v3 = vld [vmem:[%s4536_s21 + $0x88] sm:$0xff] }
 0x12d   : > { %3935 = vpow2.f32 %v1769_v14  ;;  %v3912_v38 = vpop.eup %3911  ;;  %v4293_v14 = vld [vmem:[%s4536_s21 + $0x80] sm:$0xff]  ;;  %v1761_v5 = vmul.f32 1.442695, %v1659_v54 }
 0x12e   : > { %3937 = vpow2.f32 %v1041_v51  ;;  %v3914_v21 = vpop.eup %3913  ;;  %v5337_v13 = vpop.xlane.xlu1 %1503  ;;  %v5354_v0 = vmul.f32 %v4293_v14, %v5313_v7  ;;  %v750_v51 = vsel %vm590_vm0, %v563_v61, 0.0  ;;  %v1763_v61 = vmul.f32 1.442695, %v1660_v33  ;;  %v4299_v7 = vld [vmem:[%s4536_s21 + $0xa0] sm:$0xff] }
 0x12f   : > { %3939 = vrcp.f32 %v1183_v9  ;;  %v5339_v32 = vpop.xlane.xlu0 %652  ;;  %v3916_v24 = vpop.eup %3915 }
 0x130   : > { %v3918_v60 = vpop.eup %3917  ;;  %3941 = vpow2.f32 %v1757_v19  ;;  %v1182_v23 = vadd.f32 1.0, %v3916_v24  ;;  %754 = vadd.xlane.f32.xlu1 %v753_v15  ;;  %6674 = vst [vmem:[#allocation10_spill] sm:$0xff] %v5354_v0  ;;  %v476_v19 = vadd.f32 %v4294_v59, %v5027_v48 }
 0x131   : > { %v5347_v28 = vpop.eup %3919  ;;  %3943 = vpow2.f32 %v1767_v31  ;;  %v5350_v12 = vmul.f32 %v4292_v50, %v3918_v60  ;;  %v5361_v42 = vmul.f32 %v3918_v60, %v3912_v38  ;;  %v3709_v38 = vpack.i.bf16 %v5354_v0, %v5292_v41 }
 0x132   : > { %v3922_v30 = vpop.eup %3921  ;;  %3945 = vrcp.f32 %v1182_v23  ;;  %v5357_v4 = vpop.xlane.xlu1 %1506  ;;  %v5376_v31 = vmul.f32 %v4295_v3, %v5306_v40  ;;  %v5379_v15 = vmul.f32 %v5347_v28, %v3914_v21  ;;  %v562_v21 = vmul.f32 %v5062_v43, %v476_v19  ;;  %v5449_v40 = vld [vmem:[%s4536_s21 + $0x220] sm:$0xff] }
 0x133   : > { %v5359_v11 = vpop.xlane.xlu0 %649  ;;  %v3924_v1 = vpop.eup %3923  ;;  %3383 = vmatprep.subr.mxu0 %v5350_v12  ;;  %3947 = vpow2.f32 %v1759_v18  ;;  %3418 = vmatprep.subr.mxu1 %v5361_v42 }
 0x134   : > { %v5367_v35 = vpop.eup %3925  ;;  %v1181_v25 = vadd.f32 1.0, %v3924_v1  ;;  %1593 = vadd.xlane.f32.xlu1 %v1592_v62  ;;  %3949 = vpow2.f32 %v1765_v39  ;;  %6675 = vst [vmem:[#allocation11_spill] sm:$0xff] %v5376_v31  ;;  %v3711_v33 = vpack.i.bf16 %v5376_v31, %v5281_v29  ;;  %v4296_v1 = vld [vmem:[%s4536_s21 + $0x90] sm:$0xff]  ;;  %v747_v29 = vsel %vm590_vm0, %v562_v21, 0.0 }
 0x135   : > { %v3928_v9 = vpop.eup %3927  ;;  %v5386_v18 = vmul.f32 %v5367_v35, %v3922_v30  ;;  %v1595_v30 = vsel %vm590_vm0, %v1383_v58, 0.0 }
 0x136   : > { %3951 = vrcp.f32 %v1181_v25  ;;  %v5381_v62 = vpop.xlane.xlu1 %1509  ;;  %v5392_v39 = vmul.f32 %v3928_v9, %v5332_v16 }
 0x137   : > { %v3930_v24 = vpop.eup %3929  ;;  %v5383_v60 = vpop.xlane.xlu0 %646  ;;  %6676 = vst [vmem:[#allocation12_spill] sm:$0xff] %v5386_v18  ;;  %3710 = vxpose.xlu0.b32.start [1/16] (narrow) %v3709_v38, 16  ;;  %3953 = vpow2.f32 %v1761_v5  ;;  %v5404_v5 = vmul.f32 %v4296_v1, %v5318_v57 }
 0x138   : > { %v3932_v41 = vpop.eup %3931  ;;  %v1180_v54 = vadd.f32 1.0, %v3930_v24  ;;  %751 = vadd.xlane.f32.xlu1 %v750_v51  ;;  %6678 = vst [vmem:[#allocation14_spill] sm:$0xff] %v5392_v39  ;;  %v5407_v51 = vld [vmem:[%s4536_s21 + $0x218] sm:$0xff] }
 0x139   : > { %v5388_v23 = vpop.eup %3933  ;;  %v5395_v50 = vmul.f32 %v3932_v41, %v5323_v27  ;;  %6680 = vst [vmem:[#allocation16_spill] sm:$0xff] %v5404_v5  ;;  %v1384_v58 = vmul.f32 %v5407_v51, %v5407_v51  ;;  %v4297_v41 = vld [vmem:[%s4536_s21 + $0x98] sm:$0xff] }
 0x13a   : > { %6677 = vst [vmem:[#allocation13_spill] sm:$0xff] %v5388_v23  ;;  %v5397_v14 = vpop.eup %3935  ;;  %3955 = vrcp.f32 %v1180_v54  ;;  %v5409_v59 = vpop.xlane.xlu1 %1512  ;;  %v5425_v54 = vmul.f32 %v4297_v41, %v5388_v23 }
 0x13b   : > { %6679 = vst [vmem:[#allocation15_spill] sm:$0xff] %v5395_v50  ;;  %v3938_v25 = vpop.eup %3937  ;;  %3957 = vpow2.f32 %v1763_v61  ;;  %v5411_v19 = vpop.xlane.xlu0 %643  ;;  %3712 = vxpose.xlu0.b32.cont [2/16] (narrow) %v3711_v33, 16  ;;  %v3713_v61 = vpack.i.bf16 %v5404_v5, %v5277_v36  ;;  %v1598_v41 = vsel %vm590_vm0, %v1384_v58, 0.0 }
 0x13c   : > { %v3940_v9 = vpop.eup %3939  ;;  %v1179_v38 = vadd.f32 1.0, %v3938_v25  ;;  %1596 = vadd.xlane.f32.xlu1 %v1595_v30  ;;  %6683 = vst [vmem:[#allocation19_spill] sm:$0xff] %v5425_v54  ;;  %v4298_v30 = vld [vmem:[%s4536_s21 + $0x198] sm:$0xff] }
 0x13d   : > { %v5417_v3 = vmul.f32 %v3940_v9, %v5397_v14  ;;  %v5419_v24 = vpop.eup %3941  ;;  %v475_v21 = vadd.f32 %v4298_v30, %v5027_v48  ;;  %v3715_v30 = vpack.i.bf16 %v5425_v54, %v5267_v47  ;;  %v4300_v47 = vld [vmem:[%s4536_s21 + $0x190] sm:$0xff] }
 0x13e   : > { %6682 = vst [vmem:[#allocation18_spill] sm:$0xff] %v5419_v24  ;;  %3959 = vrcp.f32 %v1179_v38  ;;  %v5429_v33 = vpop.eup %3943  ;;  %v5431_v1 = vpop.xlane.xlu1 %1515  ;;  %v5446_v31 = vmul.f32 %v4299_v7, %v5419_v24  ;;  %v474_v7 = vadd.f32 %v4300_v47, %v5027_v48 }
 0x13f   : > { %6681 = vst [vmem:[#allocation17_spill] sm:$0xff] %v5417_v3  ;;  %v5433_v25 = vpop.xlane.xlu0 %640  ;;  %v3946_v9 = vpop.eup %3945  ;;  %3714 = vxpose.xlu0.b32.cont [3/16] (narrow) %v3713_v61, 16  ;;  %v561_v0 = vmul.f32 %v5062_v43, %v475_v21  ;;  %v1385_v43 = vmul.f32 %v5449_v40, %v5449_v40 }
 0x140   : > { %748 = vadd.xlane.f32.xlu1 %v747_v29  ;;  %v5436_v36 = vmul.f32 %v3946_v9, %v5429_v33  ;;  %v5438_v38 = vpop.eup %3947  ;;  %6686 = vst [vmem:[#allocation22_spill] sm:$0xff] %v5446_v31  ;;  %v3717_v24 = vpack.i.bf16 %v5446_v31, %v5260_v46  ;;  %v5477_v46 = vld [vmem:[%s6580_s3] ss:$0 sm:$0xff] }
 0x141   : > { %6685 = vst [vmem:[#allocation21_spill] sm:$0xff] %v5438_v38  ;;  %v5451_v29 = vpop.eup %3949  ;;  %v744_v23 = vsel %vm590_vm0, %v561_v0, 0.0  ;;  %v1601_v0 = vsel %vm590_vm0, %v1385_v43, 0.0  ;;  %v5488_v43 = vld [vmem:[%s4536_s21 + $0x228] sm:$0xff] }
 0x142   : > { %6684 = vst [vmem:[#allocation20_spill] sm:$0xff] %v5436_v36  ;;  %v5453_v61 = vpop.xlane.xlu1 %1518 }
 0x143   : > { %v734_v9 = vpop.xlane.xlu0 %733  ;;  %v3952_v5 = vpop.eup %3951  ;;  %3716 = vxpose.xlu0.b32.cont [4/16] (narrow) %v3715_v30, 16  ;;  %v4301_v30 = vld [vmem:[%s4536_s21 + $0xa8] sm:$0xff] }
 0x144   : > { %v884_v58 = vadd.f32 %v5251_v20, %v734_v9  ;;  %1599 = vadd.xlane.f32.xlu1 %v1598_v41  ;;  %v5461_v21 = vmul.f32 %v3952_v5, %v5451_v29  ;;  %v3954_v57 = vpop.eup %3953  ;;  %v5468_v9 = vmul.f32 %v4301_v30, %v5438_v38  ;;  %v560_v30 = vmul.f32 %v5477_v46, %v474_v7 }
 0x146   : > { %6687 = vst [vmem:[#allocation23_spill] sm:$0xff] %v5461_v21  ;;  %v964_v54 = vsub.f32 0.0, %v884_v58  ;;  %6688 = vst [vmem:[#allocation24_spill] sm:$0xff] %v5468_v9  ;;  %v5470_v53 = vpop.xlane.xlu1 %1521 }
 0x147   : > { %v3956_v41 = vpop.eup %3955  ;;  %v731_v47 = vpop.xlane.xlu0 %730  ;;  %3718 = vxpose.xlu0.b32.cont [5/16] (narrow) %v3717_v24, 16  ;;  %v3719_v24 = vpack.i.bf16 %v5468_v9, %v5243_v45  ;;  %v1386_v45 = vmul.f32 %v5488_v43, %v5488_v43 }
 0x148   : > { %v3958_v36 = vpop.eup %3957  ;;  %v1091_v5 = vmul.f32 1.442695, %v964_v54  ;;  %v883_v58 = vadd.f32 %v5251_v20, %v731_v47  ;;  %745 = vadd.xlane.f32.xlu1 %v744_v23  ;;  %v4303_v54 = vld [vmem:[%s4536_s21 + $0xb0] sm:$0xff] }
 0x149   : > { %v5480_v31 = vmul.f32 %v3958_v36, %v3956_v41  ;;  %v5485_v23 = vmul.f32 %v4303_v54, %v3954_v57  ;;  %v301_v41 = vld [vmem:[%s4531_s18 + $0x4] sm:$0x1] }
 0x14a   : > { %3961 = vpow2.f32 %v1091_v5  ;;  %v963_v38 = vsub.f32 0.0, %v883_v58  ;;  %v5490_v21 = vpop.xlane.xlu1 %1524  ;;  %v741_v5 = vsel %vm590_vm0, %v560_v30, 0.0  ;;  %v4304_v58 = vld [vmem:[%s4536_s21 + $0x188] sm:$0xff]  ;;  %v388_v39 = vmul.f32 0.1, %v301_v41  ;;  %v5520_v41 = vld [vmem:[%s4536_s21 + $0x230] sm:$0xff] }
 0x14b   : > { %6689 = vst [vmem:[#allocation25_spill] sm:$0xff] %v5480_v31  ;;  %6690 = vst [vmem:[#allocation26_spill] sm:$0xff] %v5485_v23  ;;  %v3960_v47 = vpop.eup %3959  ;;  %v728_v3 = vpop.xlane.xlu0 %727  ;;  %3720 = vxpose.xlu0.b32.cont [6/16] (narrow) %v3719_v24, 16  ;;  %v473_v54 = vadd.f32 %v4304_v58, %v5027_v48  ;;  %v4305_v24 = vld [vmem:[%s4536_s21 + $0xb8] sm:$0xff] }
 0x14c   : > { %v1089_v50 = vmul.f32 1.442695, %v963_v38  ;;  %v882_v7 = vadd.f32 %v5251_v20, %v728_v3  ;;  %1602 = vadd.xlane.f32.xlu1 %v1601_v0  ;;  %v5499_v9 = vmul.f32 %v3960_v47, %v3954_v57  ;;  %v3721_v38 = vpack.i.bf16 %v5485_v23, %v5236_v52  ;;  %v4306_v52 = vld [vmem:[%s4536_s21 + $0x180] sm:$0xff] }
 0x14d   : > { %v5504_v3 = vmul.f32 %v4305_v24, %v3958_v36  ;;  %v559_v47 = vmul.f32 %v5477_v46, %v473_v54  ;;  %v4307_v24 = vld [vmem:[%s4536_s21 + $0xc0] sm:$0xff] }
 0x14e   : > { %6691 = vst [vmem:[#allocation27_spill] sm:$0xff] %v5499_v9  ;;  %3963 = vpow2.f32 %v1089_v50  ;;  %v962_v31 = vsub.f32 0.0, %v882_v7  ;;  %v5506_v0 = vpop.xlane.xlu1 %1527  ;;  %v1604_v50 = vsel %vm590_vm0, %v1386_v45, 0.0  ;;  %v472_v7 = vadd.f32 %v4306_v52, %v5027_v48  ;;  %v4308_v45 = vld [vmem:[%s4524_s13] sm:$0x1]  ;;  %v4309_v52 = vld [vmem:[%s4536_s21 + $0xc8] sm:$0xff] }
 0x14f   : > { %6692 = vst [vmem:[#allocation28_spill] sm:$0xff] %v5504_v3  ;;  %v725_v30 = vpop.xlane.xlu0 %724  ;;  %3722 = vxpose.xlu0.b32.cont [7/16] (narrow) %v3721_v38, 16  ;;  %v3723_v58 = vpack.i.bf16 %v5504_v3, %v5224_v63  ;;  %v1387_v63 = vmul.f32 %v5520_v41, %v5520_v41  ;;  %s269_s13 = sand.u32 1, %s4417_s24  }
 0x150   : > { %v1087_v18 = vmul.f32 1.442695, %v962_v31  ;;  %v881_v57 = vadd.f32 %v5251_v20, %v725_v30  ;;  %742 = vadd.xlane.f32.xlu1 %v741_v5  ;;  %v5517_v31 = vmul.f32 %v4307_v24, %v5451_v29  ;;  %v393_v30 = vadd.f32 %v4308_v45, %v388_v39  ;;  %v4310_v45 = vld [vmem:[%s4536_s21 + $0xd0] sm:$0xff]  ;;  %s6372_s15 = smul.u32 80, %s269_s13  ;;  %s6537_s4 = scalar_lea.sflag [#allocation4], %s269_s13 }
 0x151   : > { %v558_v29 = vmul.f32 %v5477_v46, %v472_v7  ;;  %v5539_v7 = vmul.f32 %v4310_v45, %v5397_v14  ;;  %v1607_v9 = vsel %vm590_vm0, %v1387_v63, 0.0 }
 0x152   : > { %3965 = vpow2.f32 %v1087_v18  ;;  %v961_v36 = vsub.f32 0.0, %v881_v57  ;;  %6693 = vst [vmem:[#allocation29_spill] sm:$0xff] %v5517_v31  ;;  %v1531_v5 = vpop.xlane.xlu1 %1530  ;;  %v738_v18 = vsel %vm590_vm0, %v559_v47, 0.0  ;;  %v3725_v39 = vpack.i.bf16 %v5517_v31, %v5214_v2  ;;  %v4311_v31 = vld [vmem:[%s4536_s21 + $0xd8] sm:$0xff]  ;;  %s6399_s18 = scalar_lea.vmem [#allocation3], %s6372_s15 }
 0x153   : > { %v722_v38 = vpop.xlane.xlu0 %721  ;;  %3724 = vxpose.xlu0.b32.cont [8/16] (narrow) %v3723_v58, 16  ;;  %v5535_v47 = vrot.slane %v393_v30, %v4542_v6  ;;  %v735_v30 = vsel %vm590_vm0, %v558_v29, 0.0  ;;  %v1681_v29 = vmul.f32 -0.055555556, %v1531_v5  ;;  %v5566_v5 = vld [vmem:[%s4536_s21 + $0x240] sm:$0xff]  ;;  %s2995_s20 = sshll.u32 %s6399_s18, 4  ;;  %s6525_s20 = int_to_ptr.vmem [resolvable:$true] %s2995_s20 }
 0x154   : > { %v1085_v54 = vmul.f32 1.442695, %v961_v36  ;;  %v880_v48 = vadd.f32 %v5251_v20, %v722_v38  ;;  %1605 = vadd.xlane.f32.xlu1 %v1604_v50  ;;  %v5532_v36 = vmul.f32 %v4309_v52, %v5429_v33  ;;  %s4365_s29 = scalar_lea.vmem %s6525_s20, 1280  ;;  %p4372_p0 = scmp.lt.s32.totalorder %s6525_s20, %s4370_s11 }
 0x155   : > { %p4366_p11 = scmp.ne.s32.totalorder %s6525_s20, %s4365_s29  ;;  %p4373_p1 = scmp.lt.s32.totalorder %s4371_s12, %s4365_s29 }
 0x156   : > { %3967 = vpow2.f32 %v1085_v54  ;;  %v960_v57 = vsub.f32 0.0, %v880_v48  ;;  %v1534_v50 = vpop.xlane.xlu1 %1533  ;;  %v5542_v54 = vld [vmem:[%s4536_s21 + $0x238] sm:$0xff]  ;;  %v3727_v6 = vpack.i.bf16 %v5532_v36, %v5201_v49  ;;  %v3729_v49 = vpack.i.bf16 %v5539_v7, %v5192_v8 }
 0x157   : > { %v3962_v58 = vpop.eup %3961  ;;  %v719_v24 = vpop.xlane.xlu0 %718  ;;  %3726 = vxpose.xlu0.b32.cont [9/16] (narrow) %v3725_v39, 16  ;;  %v5545_v48 = vld [vmem:[%s4536_s21 + $0x278] sm:$0xff]  ;;  %v1682_v33 = vmul.f32 -0.055555556, %v1534_v50  ;;  %p4367_p12 = pnand %p4366_p11, %p4506_p5  ;;  %p4374_p2 = por %p4373_p1, %p4372_p0 }
 0x158   : > { %v1083_v38 = vmul.f32 1.442695, %v960_v57  ;;  %v1204_v2 = vadd.f32 1.0, %v3962_v58  ;;  %739 = vadd.xlane.f32.xlu1 %v738_v18  ;;  %v879_v52 = vadd.f32 %v5251_v20, %v719_v24  ;;  %v1388_v58 = vmul.f32 %v5542_v54, %v5542_v54 }
 0x159   : > { %v503_v18 = vadd.f32 %v5535_v47, %v5545_v48  ;;  %p4368_p13 = pneg %p4367_p12 }
 0x15a   : > { %3969 = vpow2.f32 %v1083_v38  ;;  %v959_v14 = vsub.f32 0.0, %v879_v52  ;;  %v1537_v39 = vpop.xlane.xlu1 %1536  ;;  %v1807_v38 = vmul.f32 1.442695, %v1682_v33  ;;  %v1610_v8 = vsel %vm590_vm0, %v1388_v58, 0.0  ;;  %v5569_v33 = vld [vmem:[%s4536_s21 + $0x270] sm:$0xff] }
 0x15b   : > { %v3964_v57 = vpop.eup %3963  ;;  %v716_v45 = vpop.xlane.xlu0 %715  ;;  %v1683_v24 = vmul.f32 -0.055555556, %v1537_v39  ;;  %3728 = vxpose.xlu0.b32.cont [10/16] (narrow) %v3727_v6, 16  ;;  %3971 = vrcp.f32 %v1204_v2  ;;  %v589_v2 = vmul.f32 %v5477_v46, %v503_v18  ;;  %p4375_p3 = pnand %p4374_p2, %p4368_p13 }
 0x15c   : > { %v1203_v50 = vadd.f32 1.0, %v3964_v57  ;;  %v878_v63 = vadd.f32 %v5251_v20, %v716_v45  ;;  %v1081_v52 = vmul.f32 1.442695, %v959_v14  ;;  %1608 = vadd.xlane.f32.xlu1 %v1607_v9  ;;  %v5561_v57 = vmul.f32 %v4311_v31, %v5323_v27 }
 0x15d   : > { %v1809_v23 = vmul.f32 1.442695, %v1683_v24  ;;  %v1680_v27 = vmul.f32 -0.055555556, %v5506_v0  ;;  %v1805_v31 = vmul.f32 1.442695, %v1681_v29  ;;  %v502_v29 = vadd.f32 %v5535_v47, %v5569_v33 }
 0x15e   : > { %3973 = vrcp.f32 %v1203_v50  ;;  %v958_v3 = vsub.f32 0.0, %v878_v63  ;;  %v1540_v39 = vpop.xlane.xlu1 %1539  ;;  %v3731_v18 = vpack.i.bf16 %v5561_v57, %v5180_v44  ;;  %v4312_v63 = vld [vmem:[%s4536_s21 + $0xe0] sm:$0xff] }
 0x15f   : > { %v3966_v6 = vpop.eup %3965  ;;  %3975 = vpow2.f32 %v1081_v52  ;;  %v713_v45 = vpop.xlane.xlu0 %712  ;;  %v1684_v50 = vmul.f32 -0.055555556, %v1540_v39  ;;  %3730 = vxpose.xlu0.b32.cont [11/16] (narrow) %v3729_v49, 16  ;;  %v5577_v52 = vmul.f32 %v4312_v63, %v5332_v16  ;;  %v828_v16 = vsel %vm590_vm0, %v589_v2, 0.0 }
 0x160   : > { %v1202_v9 = vadd.f32 1.0, %v3966_v6  ;;  %3977 = vpow2.f32 %v1809_v23  ;;  %v1079_v14 = vmul.f32 1.442695, %v958_v3  ;;  %736 = vadd.xlane.f32.xlu1 %v735_v30  ;;  %v877_v24 = vadd.f32 %v5251_v20, %v713_v45 }
 0x161   : > { %3979 = vpow2.f32 %v1807_v38  ;;  %v1811_v58 = vmul.f32 1.442695, %v1684_v50  ;;  %v1389_v30 = vmul.f32 %v5566_v5, %v5566_v5  ;;  %v1679_v6 = vmul.f32 -0.055555556, %v5490_v21  ;;  %v4313_v50 = vld [vmem:[%s4536_s21 + $0xe8] sm:$0xff] }
 0x162   : > { %3981 = vrcp.f32 %v1202_v9  ;;  %v957_v3 = vsub.f32 0.0, %v877_v24  ;;  %v5579_v49 = vpop.xlane.xlu1 %1542  ;;  %v1803_v39 = vmul.f32 1.442695, %v1680_v27  ;;  %v5592_v24 = vmul.f32 %v4313_v50, %v5367_v35 }
 0x163   : > { %v3968_v23 = vpop.eup %3967  ;;  %3983 = vpow2.f32 %v1079_v14  ;;  %v710_v0 = vpop.xlane.xlu0 %709  ;;  %3732 = vxpose.xlu0.b32.cont [12/16] (narrow) %v3731_v18, 16  ;;  %v3733_v14 = vpack.i.bf16 %v5577_v52, %v5163_v34  ;;  %v588_v18 = vmul.f32 %v5477_v46, %v502_v29  ;;  %v5600_v34 = vld [vmem:[%s4536_s21 + $0x248] sm:$0xff]  ;;  %v1678_v35 = vmul.f32 -0.055555556, %v5470_v53 }
 0x164   : > { %v1201_v38 = vadd.f32 1.0, %v3968_v23  ;;  %3985 = vpow2.f32 %v1811_v58  ;;  %v876_v44 = vadd.f32 %v5251_v20, %v710_v0  ;;  %v1077_v45 = vmul.f32 1.442695, %v957_v3  ;;  %1611 = vadd.xlane.f32.xlu1 %v1610_v8  ;;  %v5604_v3 = vld [vmem:[%s4536_s21 + $0x268] sm:$0xff] }
 0x165   : > { %3987 = vpow2.f32 %v1805_v31  ;;  %v1613_v31 = vsel %vm590_vm0, %v1389_v30, 0.0  ;;  %v1801_v63 = vmul.f32 1.442695, %v1679_v6 }
 0x166   : > { %3989 = vrcp.f32 %v1201_v38  ;;  %v956_v9 = vsub.f32 0.0, %v876_v44  ;;  %v5594_v58 = vpop.xlane.xlu1 %1545  ;;  %v3735_v44 = vpack.i.bf16 %v5592_v24, %v5159_v55  ;;  %v501_v55 = vadd.f32 %v5535_v47, %v5604_v3 }
 0x167   : > { %3991 = vpow2.f32 %v1077_v45  ;;  %v707_v2 = vpop.xlane.xlu0 %706  ;;  %v3970_v21 = vpop.eup %3969  ;;  %3734 = vxpose.xlu0.b32.cont [13/16] (narrow) %v3733_v14, 16  ;;  %v4314_v45 = vld [vmem:[%s4536_s21 + $0xf0] sm:$0xff] }
 0x168   : > { %v1075_v27 = vmul.f32 1.442695, %v956_v9  ;;  %v875_v8 = vadd.f32 %v5251_v20, %v707_v2  ;;  %3993 = vpow2.f32 %v1803_v39  ;;  %v1200_v23 = vadd.f32 1.0, %v3970_v21  ;;  %829 = vadd.xlane.f32.xlu1 %v828_v16  ;;  %v3972_v0 = vpop.eup %3971 }
 0x169   : > { %v5610_v30 = vmul.f32 %v4314_v45, %v5347_v28  ;;  %v1390_v16 = vmul.f32 %v5600_v34, %v5600_v34  ;;  %v1677_v28 = vmul.f32 -0.055555556, %v5453_v61  ;;  %v1799_v2 = vmul.f32 1.442695, %v1678_v35  ;;  %v5631_v35 = vld [vmem:[%s4536_s21 + $0x260] sm:$0xff] }
 0x16a   : > { %3995 = vpow2.f32 %v1075_v27  ;;  %v955_v38 = vsub.f32 0.0, %v875_v8  ;;  %v5612_v9 = vpop.xlane.xlu1 %1548 }
 0x16b   : > { %v3974_v29 = vpop.eup %3973  ;;  %3997 = vrcp.f32 %v1200_v23  ;;  %v704_v53 = vpop.xlane.xlu0 %703  ;;  %3736 = vxpose.xlu0.b32.cont [14/16] (narrow) %v3735_v44, 16  ;;  %v825_v23 = vsel %vm590_vm0, %v588_v18, 0.0  ;;  %v1616_v61 = vsel %vm590_vm0, %v1390_v16, 0.0 }
 0x16c   : > { %v3976_v6 = vpop.eup %3975  ;;  %v1073_v39 = vmul.f32 1.442695, %v955_v38  ;;  %v874_v14 = vadd.f32 %v5251_v20, %v704_v53  ;;  %3999 = vpow2.f32 %v1801_v63  ;;  %1614 = vadd.xlane.f32.xlu1 %v1613_v31  ;;  %v3737_v38 = vpack.i.bf16 %v5610_v30, %v5139_v22 }
 0x16d   : > { %v5619_v50 = vpop.eup %3977  ;;  %v1199_v21 = vadd.f32 1.0, %v3976_v6  ;;  %v1676_v6 = vmul.f32 -0.055555556, %v5431_v1  ;;  %v587_v22 = vmul.f32 %v5477_v46, %v501_v55  ;;  %v3739_v1 = vpack.i.bf16 %v5350_v12, %v5133_v37 }
 0x16e   : > { %v5622_v27 = vpop.eup %3979  ;;  %4001 = vpow2.f32 %v1073_v39  ;;  %v954_v8 = vsub.f32 0.0, %v874_v14  ;;  %v5627_v45 = vpop.xlane.xlu1 %1551  ;;  %v5634_v31 = vmul.f32 %v5619_v50, %v3974_v29 }
 0x16f   : > { %v3982_v44 = vpop.eup %3981  ;;  %4003 = vrcp.f32 %v1199_v21  ;;  %6694 = vst [vmem:[#allocation30_spill] sm:$0xff] %v5627_v45  ;;  %v701_v53 = vpop.xlane.xlu0 %700  ;;  %3738 = vxpose.xlu0.b32.cont [15/16] (narrow) %v3737_v38, 16  ;;  %v1797_v21 = vmul.f32 1.442695, %v1677_v28  ;;  %v1795_v37 = vmul.f32 1.442695, %v1676_v6 }
 0x170   : > { %6695 = vst [vmem:[#allocation31_spill] sm:$0xff] %v5634_v31  ;;  %v3984_v63 = vpop.eup %3983  ;;  %v1071_v39 = vmul.f32 1.442695, %v954_v8  ;;  %v873_v18 = vadd.f32 %v5251_v20, %v701_v53  ;;  %4005 = vpow2.f32 %v1799_v2  ;;  %826 = vadd.xlane.f32.xlu1 %v825_v23  ;;  %v5642_v16 = vmul.f32 %v3982_v44, %v5622_v27  ;;  %v377_v6 = vld [vmem:[%s4536_s21 + $0x258] sm:$0xff] }
 0x171   : > { %v5639_v14 = vpop.eup %3985  ;;  %v1198_v45 = vadd.f32 1.0, %v3984_v63  ;;  %v500_v8 = vadd.f32 %v5535_v47, %v5631_v35  ;;  %v1675_v44 = vmul.f32 -0.055555556, %v5409_v59 }
 0x172   : > { %6696 = vst [vmem:[#allocation32_spill] sm:$0xff] %v5642_v16  ;;  %v5644_v29 = vpop.eup %3987  ;;  %4007 = vpow2.f32 %v1071_v39  ;;  %v953_v31 = vsub.f32 0.0, %v873_v18  ;;  %v5650_v38 = vpop.xlane.xlu1 %1554  ;;  %v5653_v2 = vmul.f32 %v5639_v14, %v3972_v0  ;;  %v822_v16 = vsel %vm590_vm0, %v587_v22, 0.0 }
 0x173   : > { %6697 = vst [vmem:[#allocation33_spill] sm:$0xff] %v5644_v29  ;;  %v3990_v55 = vpop.eup %3989  ;;  %4009 = vrcp.f32 %v1198_v45  ;;  %v698_v28 = vpop.xlane.xlu0 %697  ;;  %3740 = vxpose.xlu0.b32.end [16/16] (narrow) %v3739_v1, 16  ;;  %v586_v59 = vmul.f32 %v5477_v46, %v500_v8 }
 0x174   : > { %v3992_v23 = vpop.eup %3991  ;;  %v1069_v53 = vmul.f32 1.442695, %v953_v31  ;;  %v872_v63 = vadd.f32 %v5251_v20, %v698_v28  ;;  %4011 = vpow2.f32 %v1797_v21  ;;  %1617 = vadd.xlane.f32.xlu1 %v1616_v61  ;;  %v5658_v45 = vmul.f32 %v3990_v55, %v5644_v29 }
 0x175   : > { %v1197_v39 = vadd.f32 1.0, %v3992_v23  ;;  %v5660_v18 = vpop.eup %3993  ;;  %v1674_v61 = vmul.f32 -0.055555556, %v5381_v62  ;;  %v499_v29 = vadd.f32 %v5535_v47, %v377_v6 }
 0x176   : > { %6698 = vst [vmem:[#allocation34_spill] sm:$0xff] %v5658_v45  ;;  %4013 = vpow2.f32 %v1069_v53  ;;  %v952_v0 = vsub.f32 0.0, %v872_v63  ;;  %v5664_v1 = vpop.xlane.xlu1 %1557  ;;  %v1793_v45 = vmul.f32 1.442695, %v1675_v44  ;;  %v819_v63 = vsel %vm590_vm0, %v586_v59, 0.0 }
 0x177   : > { %v3996_v31 = vpop.eup %3995  ;;  %4015 = vrcp.f32 %v1197_v39  ;;  %6699 = vst [vmem:[#allocation35_spill] sm:$0xff] %v5664_v1  ;;  %v695_v28 = vpop.xlane.xlu0 %694  ;;  %v1392_v39 = vmul.f32 %v377_v6, %v377_v6 }
 0x178   : > { %v3998_v21 = vpop.eup %3997  ;;  %v1196_v23 = vadd.f32 1.0, %v3996_v31  ;;  %v1067_v55 = vmul.f32 1.442695, %v952_v0  ;;  %4017 = vpow2.f32 %v1795_v37  ;;  %823 = vadd.xlane.f32.xlu1 %v822_v16  ;;  %v871_v53 = vadd.f32 %v5251_v20, %v695_v28 }
 0x179   : > { %v5670_v22 = vmul.f32 %v3998_v21, %v5660_v18  ;;  %v5672_v8 = vpop.eup %3999  ;;  %v1673_v37 = vmul.f32 -0.055555556, %v5357_v4  ;;  %v1791_v21 = vmul.f32 1.442695, %v1674_v61 }
 0x17a   : > { %6701 = vst [vmem:[#allocation37_spill] sm:$0xff] %v5672_v8  ;;  %4019 = vrcp.f32 %v1196_v23  ;;  %v951_v62 = vsub.f32 0.0, %v871_v53  ;;  %v5676_v0 = vpop.xlane.xlu1 %1560  ;;  %v1622_v53 = vsel %vm590_vm0, %v1392_v39, 0.0 }
 0x17b   : > { %6700 = vst [vmem:[#allocation36_spill] sm:$0xff] %v5670_v22  ;;  %v4002_v1 = vpop.eup %4001  ;;  %4021 = vpow2.f32 %v1067_v55  ;;  %v692_v44 = vpop.xlane.xlu0 %691  ;;  %v585_v22 = vmul.f32 %v5477_v46, %v499_v29 }
 0x17c   : > { %v4004_v16 = vpop.eup %4003  ;;  %v1195_v31 = vadd.f32 1.0, %v4002_v1  ;;  %v870_v28 = vadd.f32 %v5251_v20, %v692_v44  ;;  %4023 = vpow2.f32 %v1793_v45  ;;  %v1065_v23 = vmul.f32 1.442695, %v951_v62  ;;  %820 = vadd.xlane.f32.xlu1 %v819_v63  ;;  %v5692_v45 = vld [vmem:[%s4536_s21 + $0x250] sm:$0xff] }
 0x17d   : > { %v5681_v59 = vmul.f32 %v4004_v16, %v5672_v8  ;;  %v5683_v6 = vpop.eup %4005  ;;  %v1789_v44 = vmul.f32 1.442695, %v1673_v37  ;;  %v1393_v16 = vmul.f32 %v5631_v35, %v5631_v35 }
 0x17e   : > { %6703 = vst [vmem:[#allocation39_spill] sm:$0xff] %v5683_v6  ;;  %4025 = vrcp.f32 %v1195_v31  ;;  %v950_v55 = vsub.f32 0.0, %v870_v28  ;;  %v5687_v1 = vpop.xlane.xlu1 %1563  ;;  %v1672_v31 = vmul.f32 -0.055555556, %v5337_v13  ;;  %v816_v28 = vsel %vm590_vm0, %v585_v22, 0.0 }
 0x17f   : > { %6702 = vst [vmem:[#allocation38_spill] sm:$0xff] %v5681_v59  ;;  %v4008_v4 = vpop.eup %4007  ;;  %4027 = vpow2.f32 %v1065_v23  ;;  %6704 = vst [vmem:[#allocation40_spill] sm:$0xff] %v5687_v1  ;;  %v5689_v20 = vpop.xlane.xlu0 %688  ;;  %v498_v23 = vadd.f32 %v5535_v47, %v5692_v45  ;;  %v1671_v22 = vmul.f32 -0.055555556, %v5326_v17  ;;  %v497_v17 = vadd.f32 %v5535_v47, %v5600_v34 }
 0x180   : > { %v4010_v61 = vpop.eup %4009  ;;  %v1194_v63 = vadd.f32 1.0, %v4008_v4  ;;  %v1063_v62 = vmul.f32 1.442695, %v950_v55  ;;  %4029 = vpow2.f32 %v1791_v21  ;;  %1623 = vadd.xlane.f32.xlu1 %v1622_v53  ;;  %v1625_v4 = vsel %vm590_vm0, %v1393_v16, 0.0 }
 0x181   : > { %v5697_v39 = vmul.f32 %v4010_v61, %v5683_v6  ;;  %v5699_v29 = vpop.eup %4011 }
 0x182   : > { %6706 = vst [vmem:[#allocation42_spill] sm:$0xff] %v5699_v29  ;;  %4031 = vrcp.f32 %v1194_v63  ;;  %v5705_v37 = vpop.xlane.xlu1 %1566  ;;  %v1787_v63 = vmul.f32 1.442695, %v1672_v31 }
 0x183   : > { %6705 = vst [vmem:[#allocation41_spill] sm:$0xff] %v5697_v39  ;;  %v4014_v55 = vpop.eup %4013  ;;  %4033 = vpow2.f32 %v1063_v62  ;;  %v5707_v21 = vpop.xlane.xlu0 %781  ;;  %v584_v62 = vmul.f32 %v5477_v46, %v498_v23 }
 0x184   : > { %v4016_v35 = vpop.eup %4015  ;;  %v1193_v53 = vadd.f32 1.0, %v4014_v55  ;;  %4035 = vpow2.f32 %v1789_v44  ;;  %817 = vadd.xlane.f32.xlu1 %v816_v28  ;;  %v5719_v44 = vld [vmem:[#allocation2] ss:$0 sm:$0xff]  ;;  %v1670_v28 = vmul.f32 -0.055555556, %v5308_v26 }
 0x185   : > { %v5711_v13 = vmul.f32 %v4016_v35, %v5699_v29  ;;  %v5713_v61 = vpop.eup %4017  ;;  %v1394_v29 = vmul.f32 %v5604_v3, %v5604_v3 }
 0x186   : > { %6708 = vst [vmem:[#allocation44_spill] sm:$0xff] %v5713_v61  ;;  %4037 = vrcp.f32 %v1193_v53  ;;  %v5717_v59 = vpop.xlane.xlu1 %1569  ;;  %v1785_v53 = vmul.f32 1.442695, %v1671_v22  ;;  %v583_v22 = vmul.f32 %v5477_v46, %v497_v17 }
 0x187   : > { %6707 = vst [vmem:[#allocation43_spill] sm:$0xff] %v5711_v13  ;;  %v4020_v39 = vpop.eup %4019  ;;  %v779_v6 = vpop.xlane.xlu0 %778  ;;  %4039 = vpow2.f32 %v1787_v63  ;;  %v813_v13 = vsel %vm590_vm0, %v584_v62, 0.0 }
 0x188   : > { %v4022_v55 = vpop.eup %4021  ;;  %v899_v16 = vadd.f32 %v5719_v44, %v779_v6  ;;  %1626 = vadd.xlane.f32.xlu1 %v1625_v4  ;;  %v5726_v31 = vmul.f32 %v4020_v39, %v5713_v61  ;;  %v1783_v39 = vmul.f32 1.442695, %v1670_v28 }
 0x189   : > { %v1192_v35 = vadd.f32 1.0, %v4022_v55  ;;  %v5728_v23 = vpop.eup %4023 }
 0x18a   : > { %6709 = vst [vmem:[#allocation45_spill] sm:$0xff] %v5726_v31  ;;  %v5733_v26 = vpop.xlane.xlu1 %1572  ;;  %v979_v1 = vsub.f32 0.0, %v899_v16 }
 0x18b   : > { %v4026_v6 = vpop.eup %4025  ;;  %4041 = vrcp.f32 %v1192_v35  ;;  %v776_v4 = vpop.xlane.xlu0 %775  ;;  %v1628_v35 = vsel %vm590_vm0, %v1394_v29, 0.0 }
 0x18c   : > { %v4028_v55 = vpop.eup %4027  ;;  %v898_v34 = vadd.f32 %v5719_v44, %v776_v4  ;;  %814 = vadd.xlane.f32.xlu1 %v813_v13  ;;  %v5738_v63 = vmul.f32 %v4026_v6, %v5728_v23  ;;  %4043 = vpow2.f32 %v1785_v53  ;;  %v1121_v28 = vmul.f32 1.442695, %v979_v1 }
 0x18d   : > { %v1191_v31 = vadd.f32 1.0, %v4028_v55  ;;  %v5740_v62 = vpop.eup %4029  ;;  %v810_v6 = vsel %vm590_vm0, %v583_v22, 0.0  ;;  %v496_v1 = vadd.f32 %v5535_v47, %v5566_v5 }
 0x18e   : > { %v978_v3 = vsub.f32 0.0, %v898_v34  ;;  %v5743_v8 = vpop.xlane.xlu1 %1575 }
 0x18f   : > { %v4032_v61 = vpop.eup %4031  ;;  %4045 = vrcp.f32 %v1191_v31  ;;  %v773_v16 = vpop.xlane.xlu0 %772  ;;  %v1395_v31 = vmul.f32 %v5569_v33, %v5569_v33  ;;  %v582_v5 = vmul.f32 %v5477_v46, %v496_v1 }
 0x190   : > { %v4034_v4 = vpop.eup %4033  ;;  %v1119_v55 = vmul.f32 1.442695, %v978_v3  ;;  %v897_v13 = vadd.f32 %v5719_v44, %v773_v16  ;;  %4047 = vpow2.f32 %v1783_v39  ;;  %1629 = vadd.xlane.f32.xlu1 %v1628_v35  ;;  %v5748_v53 = vmul.f32 %v4032_v61, %v5740_v62 }
 0x191   : > { %v1190_v17 = vadd.f32 1.0, %v4034_v4  ;;  %v5750_v34 = vpop.eup %4035  ;;  %v495_v4 = vadd.f32 %v5535_v47, %v5542_v54  ;;  %v1631_v33 = vsel %vm590_vm0, %v1395_v31, 0.0  ;;  %v493_v54 = vadd.f32 %v5535_v47, %v5488_v43 }
 0x192   : > { %6710 = vst [vmem:[#allocation46_spill] sm:$0xff] %v5748_v53  ;;  %6711 = vst [vmem:[#allocation47_spill] sm:$0xff] %v5750_v34  ;;  %4049 = vpow2.f32 %v1119_v55  ;;  %v977_v29 = vsub.f32 0.0, %v897_v13  ;;  %v1579_v39 = vpop.xlane.xlu1 %1578  ;;  %v494_v55 = vadd.f32 %v5535_v47, %v5520_v41  ;;  %v858_v13 = vadd.f32 %v5719_v44, %v5328_v10 }
 0x193   : > { %v4038_v3 = vpop.eup %4037  ;;  %4051 = vrcp.f32 %v1190_v17  ;;  %v770_v16 = vpop.xlane.xlu0 %769  ;;  %v857_v31 = vadd.f32 %v5719_v44, %v5339_v32  ;;  %v1391_v41 = vmul.f32 %v5692_v45, %v5692_v45  ;;  %v581_v10 = vmul.f32 %v5477_v46, %v495_v4 }
 0x194   : > { %4053 = vpow2.f32 %v1121_v28  ;;  %v1117_v35 = vmul.f32 1.442695, %v977_v29  ;;  %v5757_v22 = vmul.f32 %v4038_v3, %v5750_v34  ;;  %811 = vadd.xlane.f32.xlu1 %v810_v6  ;;  %v896_v61 = vadd.f32 %v5719_v44, %v770_v16  ;;  %v5766_v28 = vpop.eup %4039 }
 0x195   : > { %v1396_v29 = vmul.f32 %v5545_v48, %v5545_v48  ;;  %v580_v43 = vmul.f32 %v5477_v46, %v494_v55  ;;  %v492_v32 = vadd.f32 %v5535_v47, %v5449_v40  ;;  %v1619_v55 = vsel %vm590_vm0, %v1391_v41, 0.0 }
 0x196   : > { %6712 = vst [vmem:[#allocation48_spill] sm:$0xff] %v5757_v22  ;;  %4055 = vpow2.f32 %v1117_v35  ;;  %v976_v17 = vsub.f32 0.0, %v896_v61  ;;  %v767_v6 = vpop.xlane.xlu1 %766  ;;  %v807_v61 = vsel %vm590_vm0, %v582_v5, 0.0  ;;  %v804_v53 = vsel %vm590_vm0, %v581_v10, 0.0 }
 0x197   : > { %v895_v1 = vadd.f32 %v5719_v44, %v767_v6  ;;  %v938_v6 = vsub.f32 0.0, %v858_v13  ;;  %v1634_v45 = vsel %vm590_vm0, %v1396_v29, 0.0  ;;  %v490_v41 = vadd.f32 %v5535_v47, %v5345_v56 }
 0x198   : > { %v4042_v3 = vpop.eup %4041  ;;  %v1115_v35 = vmul.f32 1.442695, %v976_v17  ;;  %1632 = vadd.xlane.f32.xlu1 %v1631_v33  ;;  %v579_v33 = vmul.f32 %v5477_v46, %v493_v54  ;;  %v937_v17 = vsub.f32 0.0, %v857_v31  ;;  %v801_v54 = vsel %vm590_vm0, %v580_v43, 0.0 }
 0x199   : > { %v5781_v16 = vmul.f32 %v4042_v3, %v5766_v28  ;;  %v975_v48 = vsub.f32 0.0, %v895_v1  ;;  %v5787_v22 = vpop.eup %4043  ;;  %v856_v3 = vadd.f32 %v5719_v44, %v5359_v11  ;;  %v578_v31 = vmul.f32 %v5477_v46, %v492_v32 }
 0x19a   : > { %4057 = vpow2.f32 %v1115_v35  ;;  %v491_v11 = vadd.f32 %v5535_v47, %v5407_v51  ;;  %v1039_v35 = vmul.f32 1.442695, %v938_v6  ;;  %v798_v10 = vsel %vm590_vm0, %v579_v33, 0.0 }
 0x19b   : > { %6713 = vst [vmem:[#allocation49_spill] sm:$0xff] %v5781_v16  ;;  %v1113_v1 = vmul.f32 1.442695, %v975_v48  ;;  %v1582_v5 = vpop.xlane.xlu1 %1581  ;;  %v1697_v16 = vmul.f32 -0.055555556, %v1579_v39  ;;  %v855_v43 = vadd.f32 %v5719_v44, %v5383_v60  ;;  %v795_v33 = vsel %vm590_vm0, %v578_v31, 0.0 }
 0x19c   : > { %v4046_v4 = vpop.eup %4045  ;;  %808 = vadd.xlane.f32.xlu1 %v807_v61  ;;  %v1698_v40 = vmul.f32 -0.055555556, %v1582_v5  ;;  %v936_v5 = vsub.f32 0.0, %v856_v3  ;;  %v576_v60 = vmul.f32 %v5477_v46, %v490_v41  ;;  %v1696_v31 = vmul.f32 -0.055555556, %v5743_v8 }
 0x19d   : > { %v5796_v13 = vmul.f32 %v4046_v4, %v5787_v22  ;;  %v5798_v29 = vpop.eup %4047  ;;  %4059 = vpow2.f32 %v1113_v1  ;;  %v1037_v4 = vmul.f32 1.442695, %v937_v17  ;;  %v1837_v51 = vmul.f32 1.442695, %v1697_v16 }
 0x19e   : > { %v1839_v48 = vmul.f32 1.442695, %v1698_v40  ;;  %v577_v17 = vmul.f32 %v5477_v46, %v491_v11  ;;  %v5817_v40 = vld [vmem:[%s4536_s21 + $0x208] sm:$0xff]  ;;  %v935_v41 = vsub.f32 0.0, %v855_v43  ;;  %v789_v8 = vsel %vm590_vm0, %v576_v60, 0.0 }
 0x19f   : > { %6714 = vst [vmem:[#allocation50_spill] sm:$0xff] %v5796_v13  ;;  %v4050_v39 = vpop.eup %4049  ;;  %v764_v32 = vpop.xlane.xlu1 %763  ;;  %v489_v16 = vadd.f32 %v5817_v40, %v5535_v47 }
 0x1a0   : > { %v4052_v61 = vpop.eup %4051  ;;  %v1218_v13 = vadd.f32 1.0, %v4050_v39  ;;  %4061 = vpow2.f32 %v1839_v48  ;;  %1635 = vadd.xlane.f32.xlu1 %v1634_v45  ;;  %v894_v56 = vadd.f32 %v5719_v44, %v764_v32  ;;  %1620 = vadd.xlane.f32.xlu0 %v1619_v55  ;;  %v5822_v45 = vld [vmem:[%s4536_s21 + $0x200] sm:$0xff]  ;;  %v1035_v39 = vmul.f32 1.442695, %v936_v5 }
 0x1a1   : > { %v4054_v34 = vpop.eup %4053  ;;  %v5811_v6 = vmul.f32 %v4052_v61, %v5798_v29  ;;  %v488_v55 = vadd.f32 %v5822_v45, %v5535_v47  ;;  %v854_v61 = vadd.f32 %v5719_v44, %v5411_v19  ;;  %v1695_v32 = vmul.f32 -0.055555556, %v5733_v26 }
 0x1a2   : > { %4063 = vrcp.f32 %v1218_v13  ;;  %v974_v1 = vsub.f32 0.0, %v894_v56  ;;  %v1219_v13 = vadd.f32 1.0, %v4054_v34  ;;  %v792_v47 = vsel %vm590_vm0, %v577_v17, 0.0 }
 0x1a3   : > { %v4056_v3 = vpop.eup %4055  ;;  %4065 = vpow2.f32 %v1039_v35  ;;  %v575_v34 = vmul.f32 %v5477_v46, %v489_v16  ;;  %v1033_v19 = vmul.f32 1.442695, %v935_v41  ;;  %v934_v17 = vsub.f32 0.0, %v854_v61 }
 0x1a4   : > { %4067 = vpow2.f32 %v1037_v4  ;;  %v1217_v11 = vadd.f32 1.0, %v4056_v3  ;;  %v1111_v35 = vmul.f32 1.442695, %v974_v1  ;;  %805 = vadd.xlane.f32.xlu1 %v804_v53  ;;  %v1585_v48 = vpop.xlane.xlu1 %1584  ;;  %802 = vadd.xlane.f32.xlu0 %v801_v54  ;;  %v853_v53 = vadd.f32 %v5719_v44, %v5433_v25 }
 0x1a5   : > { %4069 = vpow2.f32 %v1837_v51  ;;  %v1699_v56 = vmul.f32 -0.055555556, %v1585_v48  ;;  %v1835_v54 = vmul.f32 1.442695, %v1696_v31  ;;  %v574_v51 = vmul.f32 %v5477_v46, %v488_v55 }
 0x1a6   : > { %4071 = vrcp.f32 %v1217_v11  ;;  %v1833_v3 = vmul.f32 1.442695, %v1695_v32  ;;  %v933_v16 = vsub.f32 0.0, %v853_v53  ;;  %v1031_v46 = vmul.f32 1.442695, %v934_v17 }
 0x1a7   : > { %4073 = vpow2.f32 %v1111_v35  ;;  %v4058_v4 = vpop.eup %4057  ;;  %v1841_v5 = vmul.f32 1.442695, %v1699_v56  ;;  %v1694_v55 = vmul.f32 -0.055555556, %v5717_v59  ;;  %v1693_v17 = vmul.f32 -0.055555556, %v5705_v37 }
 0x1a8   : > { %4075 = vrcp.f32 %v1219_v13  ;;  %v1216_v43 = vadd.f32 1.0, %v4058_v4  ;;  %799 = vadd.xlane.f32.xlu1 %v798_v10  ;;  %v761_v26 = vpop.xlane.xlu1 %760  ;;  %796 = vadd.xlane.f32.xlu0 %v795_v33  ;;  %v786_v10 = vsel %vm590_vm0, %v575_v34, 0.0  ;;  %v783_v33 = vsel %vm590_vm0, %v574_v51, 0.0 }
 0x1a9   : > { %4077 = vpow2.f32 %v1035_v39  ;;  %v893_v60 = vadd.f32 %v5719_v44, %v761_v26  ;;  %v1029_v48 = vmul.f32 1.442695, %v933_v16 }
 0x1aa   : > { %4079 = vpow2.f32 %v1841_v5  ;;  %v4060_v1 = vpop.eup %4059 }
 0x1ab   : > { %4081 = vrcp.f32 %v1216_v43  ;;  %v973_v25 = vsub.f32 0.0, %v893_v60  ;;  %v1215_v13 = vadd.f32 1.0, %v4060_v1 }
 0x1ac   : > { %4083 = vpow2.f32 %v1835_v54  ;;  %793 = vadd.xlane.f32.xlu1 %v792_v47  ;;  %790 = vadd.xlane.f32.xlu0 %v789_v8  ;;  %v1831_v47 = vmul.f32 1.442695, %v1694_v55 }
 0x1ad   : > { %4085 = vpow2.f32 %v1033_v19  ;;  %v5839_v31 = vpop.eup %4061  ;;  %v1109_v11 = vmul.f32 1.442695, %v973_v25  ;;  %v5842_v39 = vpop.xlane.xlu1 %1587 }
 0x1ae   : > { %4087 = vpow2.f32 %v1833_v3 }
 0x1af   : > { %v4064_v41 = vpop.eup %4063  ;;  %4089 = vrcp.f32 %v1215_v13 }
 0x1b0   : > { %v4066_v35 = vpop.eup %4065  ;;  %4091 = vpow2.f32 %v1109_v11  ;;  %v5845_v61 = vmul.f32 %v4064_v41, %v5839_v31  ;;  %787 = vadd.xlane.f32.xlu1 %v786_v10  ;;  %784 = vadd.xlane.f32.xlu0 %v783_v33  ;;  %v1829_v11 = vmul.f32 1.442695, %v1693_v17 }
 0x1b1   : > { %v4068_v32 = vpop.eup %4067  ;;  %4093 = vpow2.f32 %v1031_v46  ;;  %v5849_v59 = vpop.xlane.xlu1 %757  ;;  %v1178_v25 = vadd.f32 1.0, %v4066_v35 }
 0x1b2   : > { %v5847_v56 = vpop.eup %4069  ;;  %4095 = vpow2.f32 %v1029_v48  ;;  %v1177_v10 = vadd.f32 1.0, %v4068_v32 }
 0x1b3   : > { %v4072_v8 = vpop.eup %4071  ;;  %v5851_v4 = vpop.trf.xlu0  ;;  %4097 = vpow2.f32 %v1831_v47 }
 0x1b4   : > { %v4074_v34 = vpop.eup %4073  ;;  %v5854_v53 = vmul.f32 %v4072_v8, %v5847_v56  ;;  %v3742_v26 = vunpack.i.l.bf16 %v5851_v4 }
 0x1b5   : > { %v4076_v54 = vpop.eup %4075  ;;  %v1214_v5 = vadd.f32 1.0, %v4074_v34  ;;  %v5856_v43 = vpop.xlane.xlu1 %1590 }
 0x1b6   : > { %v4078_v19 = vpop.eup %4077  ;;  %3345 = vmatprep.mubr.f32.mxu0 %v3742_v26  ;;  %3380 = vmatprep.mubr.f32.mxu1 %v3742_v26 }
 0x1b7   : > { %v5859_v51 = vpop.eup %4079  ;;  %4099 = vrcp.f32 %v1214_v5  ;;  %v5862_v60 = vpop.trf.xlu0  ;;  %v1176_v32 = vadd.f32 1.0, %v4078_v19 }
 0x1b8   : > { %v4082_v3 = vpop.eup %4081  ;;  %v5865_v1 = vmul.f32 %v5859_v51, %v4076_v54  ;;  %v3747_v46 = vunpack.i.l.bf16 %v5862_v60  ;;  %4101 = vrcp.f32 %v1178_v25 }
 0x1b9   : > { %v5867_v16 = vpop.eup %4083  ;;  %v5869_v33 = vpop.xlane.xlu1 %754  ;;  %4103 = vrcp.f32 %v1177_v10  ;;  %v6719_v10 = vld [vmem:[#allocation20_spill] sm:$0xff] }
 0x1ba   : > { %v4086_v13 = vpop.eup %4085  ;;  %v5873_v37 = vmul.f32 %v5867_v16, %v4082_v3  ;;  %3346 = vmatmul.mubr.f32.vlgmr.msra.gmra.mxu0 %v3747_v46  ;;  %3381 = vmatmul.mubr.f32.vlgmr.msra.gmra.mxu1 %v3747_v46  ;;  %4105 = vpow2.f32 %v1829_v11  ;;  %v6720_v11 = vld [vmem:[#allocation6_spill] sm:$0xff] }
 0x1bb   : > { %v5875_v55 = vpop.eup %4087  ;;  %3384 = vmatpush3.msra.mxu0 %v5350_v12  ;;  %3419 = vmatpush3.msra.mxu1 %v5361_v42  ;;  %v1175_v12 = vadd.f32 1.0, %v4086_v13  ;;  %v6715_v42 = vld [vmem:[#allocation12_spill] sm:$0xff]  ;;  %v1685_v13 = vmul.f32 -0.055555556, %v5579_v49  ;;  %v6721_v49 = vld [vmem:[#allocation29_spill] sm:$0xff] }
 0x1bc   : > { %v4090_v41 = vpop.eup %4089  ;;  %3385 = vmatprep.subr.mxu0 %v5610_v30  ;;  %3420 = vmatprep.subr.mxu1 %v5379_v15 }
 0x1bd   : > { %v4092_v48 = vpop.eup %4091  ;;  %v5880_v35 = vmul.f32 %v4090_v41, %v5875_v55  ;;  %v1594_v8 = vpop.xlane.xlu1 %1593  ;;  %3386 = vmatpush3.msra.mxu0 %v5610_v30  ;;  %3421 = vmatpush3.msra.mxu1 %v5379_v15  ;;  %v6716_v30 = vld [vmem:[#allocation14_spill] sm:$0xff]  ;;  %v1669_v41 = vmul.f32 -0.055555556, %v6720_v11  ;;  %v6728_v11 = vld [vmem:[#allocation24_spill] sm:$0xff] }
 0x1be   : > { %v1213_v47 = vadd.f32 1.0, %v4092_v48  ;;  %v4094_v34 = vpop.eup %4093  ;;  %3387 = vmatprep.subr.mxu0 %v5592_v24  ;;  %3422 = vmatprep.subr.mxu1 %v6715_v42 }
 0x1bf   : > { %v4096_v54 = vpop.eup %4095  ;;  %3388 = vmatpush3.msra.mxu0 %v5592_v24  ;;  %3423 = vmatpush3.msra.mxu1 %v6715_v42  ;;  %v1174_v5 = vadd.f32 1.0, %v4094_v34  ;;  %v6717_v24 = vld [vmem:[#allocation15_spill] sm:$0xff]  ;;  %v6724_v42 = vld [vmem:[#allocation25_spill] sm:$0xff] }
 0x1c0   : > { %4107 = vrcp.f32 %v1213_v47  ;;  %3389 = vmatprep.subr.mxu0 %v5577_v52  ;;  %3424 = vmatprep.subr.mxu1 %v6716_v30  ;;  %v5894_v15 = vpop.eup %4097  ;;  %v1173_v17 = vadd.f32 1.0, %v4096_v54  ;;  %v1813_v47 = vmul.f32 1.442695, %v1685_v13 }
 0x1c1   : > { %4109 = vrcp.f32 %v1176_v32  ;;  %v5890_v19 = vpop.xlane.xlu1 %751  ;;  %3390 = vmatpush3.msra.mxu0 %v5577_v52  ;;  %3425 = vmatpush3.msra.mxu1 %v6716_v30  ;;  %v6718_v52 = vld [vmem:[#allocation17_spill] sm:$0xff]  ;;  %v1781_v30 = vmul.f32 1.442695, %v1669_v41  ;;  %v6729_v41 = vld [vmem:[#allocation18_spill] sm:$0xff] }
 0x1c2   : > { %4111 = vrcp.f32 %v1175_v12  ;;  %3391 = vmatprep.subr.mxu0 %v5561_v57  ;;  %3426 = vmatprep.subr.mxu1 %v6717_v24  ;;  %v6723_v12 = vld [vmem:[#allocation28_spill] sm:$0xff] }
 0x1c3   : > { %3392 = vmatpush3.msra.mxu0 %v5561_v57  ;;  %3427 = vmatpush3.msra.mxu1 %v6717_v24  ;;  %4113 = vrcp.f32 %v1174_v5  ;;  %v1701_v57 = vmul.f32 -0.055555556, %v5856_v43  ;;  %v1702_v5 = vmul.f32 -0.055555556, %v1594_v8  ;;  %v6726_v24 = vld [vmem:[#allocation27_spill] sm:$0xff] }
 0x1c4   : > { %v4100_v26 = vpop.eup %4099  ;;  %3393 = vmatprep.subr.mxu0 %v5539_v7  ;;  %3428 = vmatprep.subr.mxu1 %v6718_v52  ;;  %4115 = vrcp.f32 %v1173_v17  ;;  %v6725_v17 = vld [vmem:[#allocation26_spill] sm:$0xff] }
 0x1c5   : > { %v5903_v3 = vmul.f32 %v4100_v26, %v5894_v15  ;;  %v1597_v25 = vpop.xlane.xlu1 %1596  ;;  %3394 = vmatpush3.msra.mxu0 %v5539_v7  ;;  %3429 = vmatpush3.msra.mxu1 %v6718_v52  ;;  %v4102_v46 = vpop.eup %4101  ;;  %v6722_v7 = vld [vmem:[#allocation23_spill] sm:$0xff]  ;;  %v1845_v34 = vmul.f32 1.442695, %v1701_v57  ;;  %v6727_v52 = vld [vmem:[#allocation21_spill] sm:$0xff]  ;;  %4117 = vpow2.f32 %v1813_v47 }
 0x1c6   : > { %3395 = vmatprep.subr.mxu0 %v5532_v36  ;;  %3430 = vmatprep.subr.mxu1 %v6719_v10  ;;  %v4104_v32 = vpop.eup %4103  ;;  %v1978_v13 = vmul.f32 %v4102_v46, %v6727_v52  ;;  %v1703_v47 = vmul.f32 -0.055555556, %v1597_v25  ;;  %v6734_v52 = vld [vmem:[#allocation30_spill] sm:$0xff] }
 0x1c7   : > { %3396 = vmatpush3.msra.mxu0 %v5532_v36  ;;  %3431 = vmatpush3.msra.mxu1 %v6719_v10  ;;  %v5922_v43 = vpop.eup %4105  ;;  %v1686_v36 = vmul.f32 -0.055555556, %v5594_v58  ;;  %v869_v10 = vadd.f32 %v5719_v44, %v5689_v20  ;;  %4119 = vpow2.f32 %v1845_v34  ;;  %v6731_v20 = vld [vmem:[#allocation13_spill] sm:$0xff] }
 0x1c8   : > { %3397 = vmatprep.subr.mxu0 %v6721_v49  ;;  %3432 = vmatprep.subr.mxu1 %v6722_v7  ;;  %4121 = vpow2.f32 %v1781_v30 }
 0x1c9   : > { %v5916_v48 = vpop.xlane.xlu1 %748  ;;  %3398 = vmatpush3.msra.mxu0 %v6721_v49  ;;  %3433 = vmatpush3.msra.mxu1 %v6722_v7  ;;  %v1815_v8 = vmul.f32 1.442695, %v1686_v36  ;;  %v1977_v49 = vmul.f32 %v4104_v32, %v6729_v41  ;;  %v1687_v7 = vmul.f32 -0.055555556, %v5612_v9  ;;  %v6730_v36 = vld [vmem:[#allocation22_spill] sm:$0xff]  ;;  %v949_v32 = vsub.f32 0.0, %v869_v10 }
 0x1ca   : > { %3399 = vmatprep.subr.mxu0 %v6723_v12  ;;  %3434 = vmatprep.subr.mxu1 %v6724_v42  ;;  %v6732_v9 = vld [vmem:[#allocation19_spill] sm:$0xff] }
 0x1cb   : > { %3400 = vmatpush3.msra.mxu0 %v6723_v12  ;;  %3435 = vmatpush3.msra.mxu1 %v6724_v42  ;;  %v1847_v12 = vmul.f32 1.442695, %v1702_v5  ;;  %4123 = vpow2.f32 %v1815_v8  ;;  %v6733_v5 = vld [vmem:[#allocation9_spill] sm:$0xff]  ;;  %v1817_v25 = vmul.f32 1.442695, %v1687_v7  ;;  %v6735_v8 = vld [vmem:[#allocation16_spill] sm:$0xff] }
 0x1cc   : > { %3401 = vmatprep.subr.mxu0 %v6725_v17  ;;  %3436 = vmatprep.subr.mxu1 %v6726_v24  ;;  %v6736_v10 = vld [vmem:[#allocation7_spill] sm:$0xff] }
 0x1cd   : > { %v4108_v54 = vpop.eup %4107  ;;  %v1600_v26 = vpop.xlane.xlu1 %1599  ;;  %3402 = vmatpush3.msra.mxu0 %v6725_v17  ;;  %3437 = vmatpush3.msra.mxu1 %v6726_v24  ;;  %v900_v24 = vadd.f32 %v5719_v44, %v5707_v21  ;;  %4125 = vpow2.f32 %v1847_v12  ;;  %v6737_v7 = vld [vmem:[#allocation11_spill] sm:$0xff]  ;;  %v6738_v21 = vld [vmem:[#allocation8_spill] sm:$0xff]  ;;  %v3745_v12 = vunpack.i.h.bf16 %v5851_v4 }
 0x1ce   : > { %v5933_v58 = vmul.f32 %v4108_v54, %v5922_v43  ;;  %v4110_v57 = vpop.eup %4109  ;;  %3403 = vmatprep.subr.mxu0 %v6728_v11  ;;  %3438 = vmatprep.subr.mxu1 %v1978_v13  ;;  %4127 = vpow2.f32 %v1817_v25  ;;  %v4318_v4 = vld [vmem:[%s4536_s21 + $0x178] sm:$0xff] }
 0x1cf   : > { %v4112_v46 = vpop.eup %4111  ;;  %3404 = vmatpush3.msra.mxu0 %v6728_v11  ;;  %3439 = vmatpush3.msra.mxu1 %v1978_v13  ;;  %v1976_v34 = vmul.f32 %v4110_v57, %v6731_v20  ;;  %v1688_v13 = vmul.f32 -0.055555556, %v6734_v52  ;;  %v1849_v57 = vmul.f32 1.442695, %v1703_v47  ;;  %v980_v47 = vsub.f32 0.0, %v900_v24 }
 0x1d0   : > { %3405 = vmatprep.subr.mxu0 %v6730_v36  ;;  %3440 = vmatprep.subr.mxu1 %v1977_v49  ;;  %v4114_v54 = vpop.eup %4113  ;;  %v1975_v17 = vmul.f32 %v4112_v46, %v6733_v5  ;;  %v1061_v46 = vmul.f32 1.442695, %v949_v32 }
 0x1d1   : > { %v5943_v42 = vpop.xlane.xlu1 %745  ;;  %3406 = vmatpush3.msra.mxu0 %v6730_v36  ;;  %3441 = vmatpush3.msra.mxu1 %v1977_v49  ;;  %v4116_v30 = vpop.eup %4115  ;;  %v1974_v41 = vmul.f32 %v4114_v54, %v6736_v10  ;;  %v1704_v49 = vmul.f32 -0.055555556, %v1600_v26  ;;  %v1819_v36 = vmul.f32 1.442695, %v1688_v13  ;;  %v3750_v26 = vunpack.i.h.bf16 %v5862_v60 }
 0x1d2   : > { %3407 = vmatprep.subr.mxu0 %v6732_v9  ;;  %3442 = vmatprep.subr.mxu1 %v1976_v34  ;;  %v1973_v44 = vmul.f32 %v4116_v30, %v6738_v21  ;;  %4129 = vpow2.f32 %v1849_v57  ;;  %v1689_v54 = vmul.f32 -0.055555556, %v5650_v38  ;;  %v5971_v5 = vpop.eup %4117  ;;  %v1123_v30 = vmul.f32 1.442695, %v980_v47  ;;  %v4319_v38 = vld [vmem:[%s4536_s21 + $0x170] sm:$0xff]  ;;  %v4322_v21 = vld [vmem:[%s4536_s21 + $0x160] sm:$0xff] }
 0x1d3   : > { %3408 = vmatpush3.msra.mxu0 %v6732_v9  ;;  %3443 = vmatpush3.msra.mxu1 %v1976_v34  ;;  %v6739_v34 = vld [vmem:[#allocation10_spill] sm:$0xff]  ;;  %v1851_v32 = vmul.f32 1.442695, %v1704_v49  ;;  %v5969_v9 = vmul.f32 %v4318_v4, %v5639_v14  ;;  %6740 = vst [vmem:[#allocation12_spill] sm:$0xff] %v5971_v5  ;;  %4131 = vpow2.f32 %v1061_v46  ;;  %v5979_v25 = vmul.f32 %v4319_v38, %v5619_v50  ;;  %v6745_v46 = vld [vmem:[#allocation35_spill] sm:$0xff] }
 0x1d4   : > { %3409 = vmatprep.subr.mxu0 %v6735_v8  ;;  %3444 = vmatprep.subr.mxu1 %v1975_v17  ;;  %4133 = vpow2.f32 %v1819_v36  ;;  %v1821_v52 = vmul.f32 1.442695, %v1689_v54  ;;  %v4320_v50 = vld [vmem:[%s4536_s21 + $0x168] sm:$0xff]  ;;  %v4323_v47 = vld [vmem:[%s4536_s21 + $0x100] sm:$0xff] }
 0x1d5   : > { %v1603_v11 = vpop.xlane.xlu1 %1602  ;;  %3410 = vmatpush3.msra.mxu0 %v6735_v8  ;;  %3445 = vmatpush3.msra.mxu1 %v1975_v17  ;;  %v5973_v17 = vpop.eup %4119  ;;  %4135 = vpow2.f32 %v1851_v32  ;;  %v5993_v10 = vmul.f32 %v4320_v50, %v5622_v27  ;;  %v6749_v4 = vld [vmem:[#allocation34_spill] sm:$0xff] }
 0x1d6   : > { %3411 = vmatprep.subr.mxu0 %v6737_v7  ;;  %3446 = vmatprep.subr.mxu1 %v1974_v41  ;;  %v1705_v60 = vmul.f32 -0.055555556, %v1603_v11  ;;  %6741 = vst [vmem:[#allocation14_spill] sm:$0xff] %v5973_v17  ;;  %v5981_v24 = vpop.eup %4121  ;;  %v6742_v11 = vld [vmem:[#allocation31_spill] sm:$0xff]  ;;  %v5989_v8 = vmul.f32 %v5822_v45, %v5973_v17  ;;  %4137 = vpow2.f32 %v1123_v30  ;;  %v4324_v30 = vld [vmem:[%s4536_s21 + $0x158] sm:$0xff] }
 0x1d7   : > { %3412 = vmatpush3.msra.mxu0 %v6737_v7  ;;  %3447 = vmatpush3.msra.mxu1 %v1974_v41  ;;  %v4321_v41 = vld [vmem:[%s4536_s21 + $0x180] sm:$0xff]  ;;  %v1690_v7 = vmul.f32 -0.055555556, %v6745_v46  ;;  %v6016_v36 = vmul.f32 %v4323_v47, %v5981_v24  ;;  %4139 = vpow2.f32 %v1821_v52  ;;  %v4325_v38 = vld [vmem:[%s4536_s21 + $0x188] sm:$0xff]  ;;  %v6754_v47 = vld [vmem:[#allocation40_spill] sm:$0xff] }
 0x1d8   : > { %3413 = vmatprep.subr.mxu0 %v6739_v34  ;;  %3448 = vmatprep.subr.mxu1 %v1973_v44  ;;  %v1853_v57 = vmul.f32 1.442695, %v1705_v60  ;;  %6743 = vst [vmem:[#allocation15_spill] sm:$0xff] %v5989_v8  ;;  %v5997_v49 = vmul.f32 %v4321_v41, %v5971_v5  ;;  %v6752_v41 = vld [vmem:[#allocation37_spill] sm:$0xff] }
 0x1d9   : > { %v5962_v20 = vpop.xlane.xlu1 %742  ;;  %3414 = vmatpush3.msra.mxu0 %v6739_v34  ;;  %3449 = vmatpush3.msra.mxu1 %v1973_v44  ;;  %v6747_v44 = vld [vmem:[#allocation33_spill] sm:$0xff]  ;;  %v6748_v34 = vld [vmem:[#allocation32_spill] sm:$0xff]  ;;  %v1823_v32 = vmul.f32 1.442695, %v1690_v7  ;;  %v4327_v7 = vld [vmem:[%s4536_s21 + $0x108] sm:$0xff] }
 0x1da   : > { %3415 = vmatprep.mubr.f32.mxu0 %v3745_v12  ;;  %3450 = vmatprep.mubr.f32.mxu1 %v3745_v12  ;;  %6744 = vst [vmem:[#allocation17_spill] sm:$0xff] %v5997_v49  ;;  %v6012_v12 = vmul.f32 %v4322_v21, %v6747_v44  ;;  %4141 = vpow2.f32 %v1853_v57  ;;  %v3751_v54 = vpack.i.bf16 %v5997_v49, %v6016_v36  ;;  %v1691_v57 = vmul.f32 -0.055555556, %v5676_v0  ;;  %v6753_v21 = vld [vmem:[#allocation36_spill] sm:$0xff] }
 0x1db   : > { %3453 = vmatprep.subr.mxu0 %v5969_v9  ;;  %3488 = vmatprep.subr.mxu1 %v5653_v2  ;;  %v6052_v0 = vmul.f32 %v4327_v7, %v5798_v29  ;;  %v4330_v7 = vld [vmem:[%s4536_s21 + $0x190] sm:$0xff] }
 0x1dc   : > { %3416 = vmatmul.mubr.f32.vlgmr.msra.gmra.mxu0 %v3750_v26  ;;  %3451 = vmatmul.mubr.f32.vlgmr.msra.gmra.mxu1 %v3750_v26 }
 0x1dd   : > { %v1606_v14 = vpop.xlane.xlu1 %1605  ;;  %3454 = vmatpush3.msra.mxu0 %v5969_v9  ;;  %3489 = vmatpush3.msra.mxu1 %v5653_v2  ;;  %v5999_v2 = vpop.eup %4123 }
 0x1de   : > { %v1706_v13 = vmul.f32 -0.055555556, %v1606_v14  ;;  %3455 = vmatprep.subr.mxu0 %v5979_v25  ;;  %3490 = vmatprep.subr.mxu1 %v6742_v11  ;;  %v6004_v45 = vpop.eup %4125  ;;  %v6032_v14 = vmul.f32 %v4324_v30, %v5660_v18  ;;  %v6036_v52 = vmul.f32 %v4325_v38, %v5999_v2  ;;  %v1825_v30 = vmul.f32 1.442695, %v1691_v57 }
 0x1df   : > { %3456 = vmatpush3.msra.mxu0 %v5979_v25  ;;  %3491 = vmatpush3.msra.mxu1 %v6742_v11  ;;  %6746 = vst [vmem:[#allocation20_spill] sm:$0xff] %v6004_v45  ;;  %v6028_v60 = vmul.f32 %v5817_v40, %v6004_v45  ;;  %v4326_v40 = vld [vmem:[%s4536_s21 + $0x150] sm:$0xff]  ;;  %v1700_v38 = vmul.f32 -0.055555556, %v5842_v39  ;;  %v4335_v45 = vld [vmem:[%s4536_s21 + $0x198] sm:$0xff] }
 0x1e0   : > { %2788 = vxpose.xlu0.b32.start [1/16] (narrow) %v5989_v8, 16  ;;  %3457 = vmatprep.subr.mxu0 %v5993_v10  ;;  %v1855_v26 = vmul.f32 1.442695, %v1706_v13  ;;  %v6038_v13 = vpop.eup %4127  ;;  %v6048_v46 = vmul.f32 %v4326_v40, %v6752_v41 }
 0x1e1   : > { %v6008_v27 = vpop.xlane.xlu1 %739  ;;  %3492 = vmatprep.subr.mxu1 %v6748_v34  ;;  %3458 = vmatpush3.msra.mxu0 %v5993_v10  ;;  %6750 = vst [vmem:[#allocation6_spill] sm:$0xff] %v6028_v60  ;;  %v6042_v50 = vpop.eup %4129 }
 0x1e2   : > { %3493 = vmatpush3.msra.mxu1 %v6748_v34  ;;  %3459 = vmatprep.subr.mxu0 %v6012_v12  ;;  %6751 = vst [vmem:[#allocation29_spill] sm:$0xff] %v6042_v50  ;;  %4143 = vpow2.f32 %v1855_v26  ;;  %v4132_v44 = vpop.eup %4131  ;;  %v1692_v26 = vmul.f32 -0.055555556, %v6754_v47  ;;  %v3753_v34 = vpack.i.bf16 %v6036_v52, %v6052_v0 }
 0x1e3   : > { %3494 = vmatprep.subr.mxu1 %v6749_v4  ;;  %3460 = vmatpush3.msra.mxu0 %v6012_v12  ;;  %4145 = vpow2.f32 %v1823_v32  ;;  %v4329_v32 = vld [vmem:[%s4536_s21 + $0x210] sm:$0xff]  ;;  %v6078_v47 = vpop.eup %4133 }
 0x1e4   : > { %3495 = vmatpush3.msra.mxu1 %v6749_v4  ;;  %3752 = vxpose.xlu1.b32.start [1/16] (narrow) %v3751_v54, 16  ;;  %v4328_v54 = vld [vmem:[%s4536_s21 + $0x148] sm:$0xff]  ;;  %v6070_v40 = vmul.f32 %v4329_v32, %v6042_v50  ;;  %v6081_v39 = vpop.eup %4135  ;;  %4147 = vpow2.f32 %v1825_v30  ;;  %v4334_v30 = vld [vmem:[%s4536_s21 + $0x218] sm:$0xff] }
 0x1e5   : > { %v1609_v11 = vpop.xlane.xlu1 %1608  ;;  %2789 = vxpose.xlu0.b32.cont [2/16] (narrow) %v6028_v60, 16  ;;  %3461 = vmatprep.subr.mxu0 %v6032_v14  ;;  %v6755_v4 = vld [vmem:[#allocation39_spill] sm:$0xff]  ;;  %6758 = vst [vmem:[#allocation28_spill] sm:$0xff] %v6081_v39  ;;  %v6759_v32 = vld [vmem:[#allocation42_spill] sm:$0xff] }
 0x1e6   : > { %v1707_v18 = vmul.f32 -0.055555556, %v1609_v11  ;;  %3496 = vmatprep.subr.mxu1 %v6753_v21  ;;  %3462 = vmatpush3.msra.mxu0 %v6032_v14  ;;  %v6063_v29 = vmul.f32 %v4328_v54, %v6755_v4  ;;  %v6756_v11 = vld [vmem:[#allocation38_spill] sm:$0xff]  ;;  %6757 = vst [vmem:[#allocation23_spill] sm:$0xff] %v6070_v40  ;;  %v1189_v54 = vadd.f32 1.0, %v4132_v44  ;;  %v4138_v44 = vpop.eup %4137  ;;  %v6762_v60 = vld [vmem:[#allocation43_spill] sm:$0xff] }
 0x1e7   : > { %3497 = vmatpush3.msra.mxu1 %v6753_v21  ;;  %3463 = vmatprep.subr.mxu0 %v6048_v46  ;;  %v6076_v21 = vmul.f32 %v4330_v7, %v6038_v13  ;;  %v4331_v4 = vld [vmem:[%s4536_s21 + $0x140] sm:$0xff]  ;;  %v4332_v7 = vld [vmem:[%s4536_s21 + $0x110] sm:$0xff]  ;;  %v6113_v50 = vpop.eup %4139 }
 0x1e8   : > { %3498 = vmatprep.subr.mxu1 %v6756_v11  ;;  %3464 = vmatpush3.msra.mxu0 %v6048_v46  ;;  %v1857_v57 = vmul.f32 1.442695, %v1707_v18  ;;  %v6087_v8 = vmul.f32 %v4331_v4, %v6759_v32  ;;  %v6091_v17 = vmul.f32 %v4332_v7, %v5787_v22  ;;  %v1827_v18 = vmul.f32 1.442695, %v1692_v26  ;;  %v4333_v22 = vld [vmem:[%s4536_s21 + $0x138] sm:$0xff] }
 0x1e9   : > { %v6072_v41 = vpop.xlane.xlu1 %736  ;;  %3499 = vmatpush3.msra.mxu1 %v6756_v11  ;;  %3754 = vxpose.xlu1.b32.cont [2/16] (narrow) %v3753_v34, 16  ;;  %v6760_v11 = vld [vmem:[#allocation41_spill] sm:$0xff]  ;;  %v1843_v34 = vmul.f32 1.442695, %v1700_v38  ;;  %v6761_v32 = vld [vmem:[#allocation44_spill] sm:$0xff]  ;;  %v6107_v38 = vmul.f32 %v4334_v30, %v6081_v39  ;;  %v1220_v30 = vadd.f32 1.0, %v4138_v44 }
 0x1ea   : > { %2790 = vxpose.xlu0.b32.cont [3/16] (narrow) %v6070_v40, 16  ;;  %3465 = vmatprep.subr.mxu0 %v6063_v29  ;;  %v3755_v4 = vpack.i.bf16 %v6076_v21, %v6091_v17  ;;  %v6101_v7 = vmul.f32 %v4333_v22, %v6761_v32  ;;  %4149 = vpow2.f32 %v1857_v57  ;;  %v6111_v40 = vmul.f32 %v4335_v45, %v6078_v47  ;;  %v4336_v57 = vld [vmem:[%s4536_s21 + $0x118] sm:$0xff]  ;;  %v6118_v32 = vpop.eup %4141 }
 0x1eb   : > { %3500 = vmatprep.subr.mxu1 %v6760_v11  ;;  %3466 = vmatpush3.msra.mxu0 %v6063_v29  ;;  %6763 = vst [vmem:[#allocation25_spill] sm:$0xff] %v6107_v38  ;;  %4151 = vrcp.f32 %v1189_v54  ;;  %v1912_v22 = vmul.f32 %v4336_v57, %v5766_v28  ;;  %6764 = vst [vmem:[#allocation26_spill] sm:$0xff] %v6118_v32  ;;  %v4340_v57 = vld [vmem:[%s4536_s21 + $0x1a0] sm:$0xff] }
 0x1ec   : > { %3501 = vmatpush3.msra.mxu1 %v6760_v11  ;;  %3467 = vmatprep.subr.mxu0 %v6087_v8  ;;  %4153 = vpow2.f32 %v1827_v18 }
 0x1ed   : > { %v1612_v26 = vpop.xlane.xlu1 %1611  ;;  %3502 = vmatprep.subr.mxu1 %v6762_v60  ;;  %3468 = vmatpush3.msra.mxu0 %v6087_v8  ;;  %4155 = vpow2.f32 %v1843_v34  ;;  %v3757_v18 = vpack.i.bf16 %v6111_v40, %v1912_v22 }
 0x1ee   : > { %v1708_v11 = vmul.f32 -0.055555556, %v1612_v26  ;;  %3503 = vmatpush3.msra.mxu1 %v6762_v60  ;;  %3756 = vxpose.xlu1.b32.cont [3/16] (narrow) %v3755_v4, 16  ;;  %v4337_v26 = vld [vmem:[%s4536_s21 + $0x130] sm:$0xff]  ;;  %v6765_v60 = vld [vmem:[#allocation45_spill] sm:$0xff]  ;;  %v4339_v4 = vld [vmem:[%s4536_s21 + $0x128] sm:$0xff] }
 0x1ef   : > { %2791 = vxpose.xlu0.b32.cont [4/16] (narrow) %v6107_v38, 16  ;;  %3469 = vmatprep.subr.mxu0 %v6101_v7  ;;  %v6124_v54 = vmul.f32 %v4337_v26, %v5728_v23  ;;  %v6133_v44 = vpop.eup %4143  ;;  %v4338_v23 = vld [vmem:[%s4536_s21 + $0x220] sm:$0xff] }
 0x1f0   : > { %v1859_v45 = vmul.f32 1.442695, %v1708_v11  ;;  %3504 = vmatprep.subr.mxu1 %v6765_v60  ;;  %3470 = vmatpush3.msra.mxu0 %v6101_v7  ;;  %6766 = vst [vmem:[#allocation27_spill] sm:$0xff] %v6133_v44  ;;  %v6139_v34 = vmul.f32 %v4338_v23, %v6118_v32  ;;  %v1914_v11 = vmul.f32 %v4339_v4, %v5740_v62  ;;  %v6148_v26 = vpop.eup %4145  ;;  %v6768_v23 = vld [vmem:[#allocation47_spill] sm:$0xff]  ;;  %v6769_v32 = vld [vmem:[#allocation46_spill] sm:$0xff] }
 0x1f1   : > { %v6128_v28 = vpop.xlane.xlu1 %829  ;;  %3505 = vmatpush3.msra.mxu1 %v6765_v60  ;;  %3471 = vmatprep.subr.mxu0 %v6124_v54  ;;  %v4341_v60 = vld [vmem:[%s4536_s21 + $0x120] sm:$0xff]  ;;  %v4342_v62 = vld [vmem:[%s4536_s21 + $0x228] sm:$0xff] }
 0x1f2   : > { %4157 = vpow2.f32 %v1859_v45  ;;  %3506 = vmatprep.subr.mxu1 %v5738_v63  ;;  %3472 = vmatpush3.msra.mxu0 %v6124_v54  ;;  %6767 = vst [vmem:[#allocation21_spill] sm:$0xff] %v6139_v34  ;;  %v6145_v45 = vmul.f32 %v4340_v57, %v6113_v50  ;;  %v1913_v38 = vmul.f32 %v4341_v60, %v6768_v23 }
 0x1f3   : > { %4159 = vrcp.f32 %v1220_v30  ;;  %3507 = vmatpush3.msra.mxu1 %v5738_v63  ;;  %3758 = vxpose.xlu1.b32.cont [4/16] (narrow) %v3757_v18, 16  ;;  %v6156_v4 = vmul.f32 %v4342_v62, %v6133_v44  ;;  %v6771_v18 = vld [vmem:[#allocation48_spill] sm:$0xff]  ;;  %v6166_v62 = vpop.eup %4147 }
 0x1f4   : > { %2792 = vxpose.xlu0.b32.cont [5/16] (narrow) %v6139_v34, 16  ;;  %3473 = vmatprep.subr.mxu0 %v1914_v11  ;;  %v3759_v63 = vpack.i.bf16 %v6145_v45, %v1913_v38  ;;  %v4343_v34 = vld [vmem:[%s4536_s21 + $0x1a8] sm:$0xff] }
 0x1f5   : > { %v1615_v39 = vpop.xlane.xlu1 %1614  ;;  %3508 = vmatprep.subr.mxu1 %v6769_v32  ;;  %3474 = vmatpush3.msra.mxu0 %v1914_v11  ;;  %6770 = vst [vmem:[#allocation24_spill] sm:$0xff] %v6156_v4  ;;  %v6163_v60 = vmul.f32 %v4343_v34, %v6148_v26 }
 0x1f6   : > { %v1709_v30 = vmul.f32 -0.055555556, %v1615_v39  ;;  %3509 = vmatpush3.msra.mxu1 %v6769_v32  ;;  %3475 = vmatprep.subr.mxu0 %v1913_v38  ;;  %v6773_v32 = vld [vmem:[#allocation49_spill] sm:$0xff] }
 0x1f7   : > { %3510 = vmatprep.subr.mxu1 %v6771_v18  ;;  %3476 = vmatpush3.msra.mxu0 %v1913_v38  ;;  %v6169_v39 = vpop.eup %4149  ;;  %v3761_v34 = vpack.i.bf16 %v6163_v60, %v1914_v11 }
 0x1f8   : > { %v1861_v57 = vmul.f32 1.442695, %v1709_v30  ;;  %3511 = vmatpush3.msra.mxu1 %v6771_v18  ;;  %3760 = vxpose.xlu1.b32.cont [5/16] (narrow) %v3759_v63, 16  ;;  %6772 = vst [vmem:[#allocation18_spill] sm:$0xff] %v6169_v39  ;;  %v4152_v38 = vpop.eup %4151  ;;  %v6774_v63 = vld [vmem:[#allocation50_spill] sm:$0xff]  ;;  %v4344_v18 = vld [vmem:[%s4536_s21 + $0x1b0] sm:$0xff] }
 0x1f9   : > { %v827_v23 = vpop.xlane.xlu1 %826  ;;  %2793 = vxpose.xlu0.b32.cont [6/16] (narrow) %v6156_v4, 16  ;;  %3477 = vmatprep.subr.mxu0 %v1912_v22  ;;  %v6175_v30 = vpop.eup %4153 }
 0x1fa   : > { %4161 = vpow2.f32 %v1861_v57  ;;  %3512 = vmatprep.subr.mxu1 %v6773_v32  ;;  %3478 = vmatpush3.msra.mxu0 %v1912_v22  ;;  %v6181_v57 = vmul.f32 %v4344_v18, %v6166_v62  ;;  %v4156_v44 = vpop.eup %4155  ;;  %v4345_v22 = vld [vmem:[%s4536_s21 + $0x230] sm:$0xff]  ;;  %v4346_v18 = vld [vmem:[%s4536_s21 + $0x1f8] sm:$0xff] }
 0x1fb   : > { %3513 = vmatpush3.msra.mxu1 %v6773_v32  ;;  %3479 = vmatprep.subr.mxu0 %v6091_v17  ;;  %v6186_v11 = vmul.f32 %v4345_v22, %v6169_v39  ;;  %v6199_v22 = vmul.f32 %v4346_v18, %v4156_v44  ;;  %v4347_v39 = vld [vmem:[%s4536_s21 + $0x1b8] sm:$0xff] }
 0x1fc   : > { %3514 = vmatprep.subr.mxu1 %v6774_v63  ;;  %3480 = vmatpush3.msra.mxu0 %v6091_v17  ;;  %v1989_v17 = vmul.f32 %v4152_v38, %v5981_v24  ;;  %v6203_v5 = vmul.f32 %v4347_v39, %v6175_v30  ;;  %v4349_v38 = vld [vmem:[%s4536_s21 + $0x238] sm:$0xff]  ;;  %v4350_v39 = vld [vmem:[%s4536_s21 + $0x1c0] sm:$0xff] }
 0x1fd   : > { %v1618_v4 = vpop.xlane.xlu1 %1617  ;;  %3515 = vmatpush3.msra.mxu1 %v6774_v63  ;;  %3762 = vxpose.xlu1.b32.cont [6/16] (narrow) %v3761_v34, 16  ;;  %6775 = vst [vmem:[#allocation22_spill] sm:$0xff] %v6186_v11 }
 0x1fe   : > { %v1710_v32 = vmul.f32 -0.055555556, %v1618_v4  ;;  %3481 = vmatprep.subr.mxu0 %v6052_v0  ;;  %3516 = vmatprep.subr.mxu1 %v5811_v6  ;;  %v3763_v4 = vpack.i.bf16 %v6181_v57, %v6124_v54 }
 0x1ff   : > { %v6188_v49 = vpop.eup %4157  ;;  %3482 = vmatpush3.msra.mxu0 %v6052_v0  ;;  %3517 = vmatpush3.msra.mxu1 %v5811_v6  ;;  %v6209_v0 = vld [vmem:[#allocation2] ss:$0 sm:$0xff] }
 0x200   : > { %6776 = vst [vmem:[#allocation13_spill] sm:$0xff] %v6188_v49  ;;  %v1863_v63 = vmul.f32 1.442695, %v1710_v32  ;;  %v4160_v34 = vpop.eup %4159  ;;  %3483 = vmatprep.subr.mxu0 %v6016_v36  ;;  %3518 = vmatprep.subr.mxu1 %v1989_v17  ;;  %v6214_v32 = vmul.f32 %v4349_v38, %v6188_v49  ;;  %v4351_v38 = vld [vmem:[%s4536_s21 + $0x240] sm:$0xff] }
 0x201   : > { %v824_v24 = vpop.xlane.xlu1 %823  ;;  %2794 = vxpose.xlu0.b32.cont [7/16] (narrow) %v6186_v11, 16  ;;  %3484 = vmatpush3.msra.mxu0 %v6016_v36  ;;  %v6207_v6 = vmul.f32 %v4160_v34, %v4156_v44  ;;  %v3765_v44 = vpack.i.bf16 %v6203_v5, %v6101_v7 }
 0x202   : > { %4163 = vpow2.f32 %v1863_v63  ;;  %v914_v54 = vadd.f32 %v6209_v0, %v824_v24  ;;  %6777 = vst [vmem:[#allocation19_spill] sm:$0xff] %v6214_v32  ;;  %3519 = vmatpush3.msra.mxu1 %v1989_v17  ;;  %3764 = vxpose.xlu1.b32.cont [7/16] (narrow) %v3763_v4, 16  ;;  %v6222_v63 = vmul.f32 %v4350_v39, %v5922_v43  ;;  %v4352_v39 = vld [vmem:[%s4536_s21 + $0x1c8] sm:$0xff] }
 0x203   : > { %3523 = vmatprep.subr.mxu0 %v6199_v22  ;;  %3558 = vmatprep.subr.mxu1 %v6207_v6  ;;  %v915_v4 = vadd.f32 %v6209_v0, %v827_v23  ;;  %v6237_v11 = vmul.f32 %v4352_v39, %v5894_v15  ;;  %v4354_v39 = vld [vmem:[%s4536_s21 + $0x248] sm:$0xff] }
 0x204   : > { %v994_v36 = vsub.f32 0.0, %v914_v54  ;;  %v3767_v43 = vpack.i.bf16 %v6222_v63, %v6087_v8 }
 0x205   : > { %v821_v34 = vpop.xlane.xlu1 %820  ;;  %2795 = vxpose.xlu0.b32.cont [8/16] (narrow) %v6214_v32, 16  ;;  %v995_v23 = vsub.f32 0.0, %v915_v4  ;;  %v3769_v8 = vpack.i.bf16 %v6237_v11, %v6063_v29 }
 0x206   : > { %v913_v17 = vadd.f32 %v6209_v0, %v821_v34  ;;  %3766 = vxpose.xlu1.b32.cont [8/16] (narrow) %v3765_v44, 16  ;;  %v1151_v24 = vmul.f32 1.442695, %v994_v36  ;;  %v916_v36 = vadd.f32 %v6209_v0, %v6128_v28  ;;  %v4353_v44 = vld [vmem:[%s4536_s21 + $0x1d0] sm:$0xff] }
 0x207   : > { %v6226_v18 = vpop.eup %4161  ;;  %v6246_v15 = vmul.f32 %v4353_v44, %v5875_v55  ;;  %v1153_v4 = vmul.f32 1.442695, %v995_v23 }
 0x208   : > { %6778 = vst [vmem:[#allocation9_spill] sm:$0xff] %v6226_v18  ;;  %v993_v54 = vsub.f32 0.0, %v913_v17  ;;  %v6231_v7 = vmul.f32 %v4351_v38, %v6226_v18  ;;  %4165 = vpow2.f32 %v1151_v24  ;;  %v996_v24 = vsub.f32 0.0, %v916_v36 }
 0x209   : > { %v1624_v34 = vpop.xlane.xlu1 %1623  ;;  %v3771_v29 = vpack.i.bf16 %v6246_v15, %v6048_v46 }
 0x20a   : > { %6779 = vst [vmem:[#allocation30_spill] sm:$0xff] %v6231_v7  ;;  %v1149_v32 = vmul.f32 1.442695, %v993_v54  ;;  %2796 = vxpose.xlu0.b32.cont [9/16] (narrow) %v6231_v7, 16  ;;  %3768 = vxpose.xlu1.b32.cont [9/16] (narrow) %v3767_v43, 16 }
 0x20b   : > { %v1155_v36 = vmul.f32 1.442695, %v996_v24 }
 0x20c   : > { %4167 = vpow2.f32 %v1149_v32  ;;  %v4355_v32 = vld [vmem:[%s4536_s21 + $0x1d8] sm:$0xff] }
 0x20d   : > { %v818_v17 = vpop.xlane.xlu1 %817  ;;  %v6259_v55 = vmul.f32 %v4355_v32, %v5867_v16  ;;  %4169 = vpow2.f32 %v1153_v4 }
 0x20e   : > { %v912_v54 = vadd.f32 %v6209_v0, %v818_v17  ;;  %3770 = vxpose.xlu1.b32.cont [10/16] (narrow) %v3769_v8, 16 }
 0x20f   : > { %v6249_v38 = vpop.eup %4163  ;;  %v3773_v8 = vpack.i.bf16 %v6259_v55, %v6032_v14 }
 0x210   : > { %v992_v43 = vsub.f32 0.0, %v912_v54  ;;  %v6253_v28 = vmul.f32 %v4354_v39, %v6249_v38  ;;  %v4356_v54 = vld [vmem:[%s4536_s21 + $0x1e0] sm:$0xff] }
 0x211   : > { %v1627_v44 = vpop.xlane.xlu1 %1626  ;;  %v6266_v46 = vmul.f32 %v4356_v54, %v5847_v56 }
 0x212   : > { %6780 = vst [vmem:[#allocation16_spill] sm:$0xff] %v6253_v28  ;;  %v1147_v17 = vmul.f32 1.442695, %v992_v43  ;;  %2797 = vxpose.xlu0.b32.cont [10/16] (narrow) %v6253_v28, 16  ;;  %3772 = vxpose.xlu1.b32.cont [11/16] (narrow) %v3771_v29, 16 }
 0x213   : > { %v1713_v23 = vmul.f32 -0.055555556, %v1627_v44  ;;  %v3775_v24 = vpack.i.bf16 %v6266_v46, %v6012_v12  ;;  %v4357_v44 = vld [vmem:[%s4536_s21 + $0x1e8] sm:$0xff] }
 0x214   : > { %4171 = vpow2.f32 %v1147_v17  ;;  %v6273_v14 = vmul.f32 %v4357_v44, %v5839_v31 }
 0x215   : > { %v815_v39 = vpop.xlane.xlu1 %814  ;;  %v1869_v43 = vmul.f32 1.442695, %v1713_v23  ;;  %v4166_v32 = vpop.eup %4165  ;;  %4173 = vpow2.f32 %v1155_v36 }
 0x216   : > { %v911_v16 = vadd.f32 %v6209_v0, %v815_v39  ;;  %3774 = vxpose.xlu1.b32.cont [12/16] (narrow) %v3773_v8, 16  ;;  %v1234_v7 = vadd.f32 1.0, %v4166_v32  ;;  %v1712_v39 = vmul.f32 -0.055555556, %v1624_v34  ;;  %v3777_v36 = vpack.i.bf16 %v6273_v14, %v5993_v10  ;;  %v4358_v8 = vld [vmem:[%s4536_s21 + $0x1f0] sm:$0xff] }
 0x217   : > { %4175 = vpow2.f32 %v1869_v43  ;;  %v6279_v12 = vmul.f32 %v4358_v8, %v5859_v51 }
 0x218   : > { %v991_v4 = vsub.f32 0.0, %v911_v16 }
 0x219   : > { %v4168_v29 = vpop.eup %4167  ;;  %v1630_v17 = vpop.xlane.xlu1 %1629 }
 0x21a   : > { %v1233_v56 = vadd.f32 1.0, %v4168_v29  ;;  %v1145_v54 = vmul.f32 1.442695, %v991_v4  ;;  %v1714_v49 = vmul.f32 -0.055555556, %v1630_v17  ;;  %3776 = vxpose.xlu1.b32.cont [13/16] (narrow) %v3775_v24, 16  ;;  %v4170_v34 = vpop.eup %4169 }
 0x21b   : > { %v1867_v4 = vmul.f32 1.442695, %v1712_v39  ;;  %v1235_v17 = vadd.f32 1.0, %v4170_v34 }
 0x21c   : > { %4177 = vrcp.f32 %v1233_v56  ;;  %v1871_v23 = vmul.f32 1.442695, %v1714_v49  ;;  %v3779_v49 = vpack.i.bf16 %v6279_v12, %v5979_v25 }
 0x21d   : > { %4179 = vpow2.f32 %v1145_v54  ;;  %v812_v31 = vpop.xlane.xlu1 %811 }
 0x21e   : > { %4181 = vpow2.f32 %v1871_v23  ;;  %v910_v16 = vadd.f32 %v6209_v0, %v812_v31  ;;  %3778 = vxpose.xlu1.b32.cont [14/16] (narrow) %v3777_v36, 16 }
 0x21f   : > { %4183 = vrcp.f32 %v1234_v7  ;;  %v3781_v7 = vpack.i.bf16 %v6199_v22, %v5969_v9 }
 0x220   : > { %v990_v43 = vsub.f32 0.0, %v910_v16  ;;  %4185 = vpow2.f32 %v1867_v4 }
 0x221   : > { %v4172_v32 = vpop.eup %4171  ;;  %v1633_v29 = vpop.xlane.xlu1 %1632 }
 0x222   : > { %v1232_v24 = vadd.f32 1.0, %v4172_v32  ;;  %v1143_v10 = vmul.f32 1.442695, %v990_v43  ;;  %v1715_v44 = vmul.f32 -0.055555556, %v1633_v29  ;;  %3780 = vxpose.xlu1.b32.cont [15/16] (narrow) %v3779_v49, 16  ;;  %v4174_v56 = vpop.eup %4173 }
 0x223   : > { %v1236_v39 = vadd.f32 1.0, %v4174_v56 }
 0x224   : > { %4187 = vrcp.f32 %v1232_v24  ;;  %v1873_v51 = vmul.f32 1.442695, %v1715_v44  ;;  %v4176_v25 = vpop.eup %4175 }
 0x225   : > { %4189 = vpow2.f32 %v1143_v10  ;;  %v6286_v54 = vpop.xlane.xlu1 %808 }
 0x226   : > { %4191 = vpow2.f32 %v1873_v51  ;;  %3782 = vxpose.xlu1.b32.end [16/16] (narrow) %v3781_v7, 16 }
 0x227   : > { %4193 = vrcp.f32 %v1235_v17 }
 0x228   : > { %4195 = vrcp.f32 %v1236_v39 }
 0x229   : > { %v4178_v23 = vpop.eup %4177  ;;  %v1636_v36 = vpop.xlane.xlu1 %1635 }
 0x22a   : > { %v1621_v8 = vpop.xlane.xlu0 %1620  ;;  %v4180_v31 = vpop.eup %4179  ;;  %v1716_v16 = vmul.f32 -0.055555556, %v1636_v36  ;;  %v6288_v34 = vmul.f32 %v4178_v23, %v4176_v25 }
 0x22b   : > { %v1711_v4 = vmul.f32 -0.055555556, %v1621_v8  ;;  %v4182_v43 = vpop.eup %4181  ;;  %v1231_v32 = vadd.f32 1.0, %v4180_v31 }
 0x22c   : > { %v4184_v49 = vpop.eup %4183  ;;  %v1875_v9 = vmul.f32 1.442695, %v1716_v16 }
 0x22d   : > { %v1865_v29 = vmul.f32 1.442695, %v1711_v4  ;;  %4197 = vrcp.f32 %v1231_v32  ;;  %v6290_v24 = vmul.f32 %v4184_v49, %v4182_v43  ;;  %v4186_v10 = vpop.eup %4185  ;;  %v4359_v4 = vld [vmem:[%s4536_s21 + $0x250] sm:$0xff] }
 0x22e   : > { %4199 = vpow2.f32 %v1875_v9 }
 0x22f   : > { %4201 = vpow2.f32 %v1865_v29  ;;  %v4360_v29 = vld [vmem:[%s4536_s21 + $0x258] sm:$0xff] }
 0x231   : > { %v4188_v44 = vpop.eup %4187 }
 0x232   : > { %v4190_v17 = vpop.eup %4189  ;;  %v6292_v7 = vmul.f32 %v4188_v44, %v4186_v10  ;;  %v6305_v44 = vmul.f32 %v4360_v29, %v4186_v10  ;;  %v892_v10 = vadd.f32 %v6209_v0, %v5849_v59  ;;  %v889_v59 = vadd.f32 %v6209_v0, %v5916_v48 }
 0x233   : > { %v4192_v51 = vpop.eup %4191  ;;  %v1230_v56 = vadd.f32 1.0, %v4190_v17 }
 0x234   : > { %v4194_v23 = vpop.eup %4193 }
 0x235   : > { %4203 = vrcp.f32 %v1230_v56  ;;  %v6294_v39 = vmul.f32 %v4194_v23, %v4192_v51  ;;  %v4196_v36 = vpop.eup %4195  ;;  %v4361_v23 = vld [vmem:[%s4536_s21 + $0x260] sm:$0xff] }
 0x23a   : > { %v4198_v8 = vpop.eup %4197 }
 0x23b   : > { %v4200_v31 = vpop.eup %4199 }
 0x23c   : > { %v4202_v16 = vpop.eup %4201  ;;  %v6299_v49 = vmul.f32 %v4200_v31, %v4196_v36  ;;  %v4362_v36 = vld [vmem:[%s4536_s21 + $0x268] sm:$0xff] }
 0x23d   : > { %v6297_v32 = vmul.f32 %v4359_v4, %v4202_v16  ;;  %v6301_v9 = vmul.f32 %v4202_v16, %v4198_v8  ;;  %v6312_v4 = vmul.f32 %v4361_v23, %v4176_v25  ;;  %v6316_v8 = vmul.f32 %v4362_v36, %v4182_v43  ;;  %v4363_v16 = vld [vmem:[%s4536_s21 + $0x270] sm:$0xff]  ;;  %v806_v23 = vpop.xlane.xlu1 %805  ;;  %v4364_v43 = vld [vmem:[%s4536_s21 + $0x278] sm:$0xff] }
 0x23e   : > { %v6322_v29 = vmul.f32 %v4363_v16, %v4192_v51  ;;  %v972_v25 = vsub.f32 0.0, %v892_v10  ;;  %v6330_v36 = vmul.f32 %v4364_v43, %v4200_v31  ;;  %v969_v10 = vsub.f32 0.0, %v889_v59 }
 0x23f   : > { %6781 = vst [vmem:[#allocation7_spill] sm:$0xff] %v6301_v9  ;;  %2798 = vxpose.xlu0.b32.cont [11/16] (narrow) %v6297_v32, 16 }
 0x240   : > { %v1107_v51 = vmul.f32 1.442695, %v972_v25  ;;  %v1101_v48 = vmul.f32 1.442695, %v969_v10  ;;  %v885_v25 = vadd.f32 %v6209_v0, %v6072_v41  ;;  %v803_v41 = vpop.xlane.xlu0 %802 }
 0x241   : > { %v800_v28 = vpop.xlane.xlu1 %799 }
 0x242   : > { %v4204_v17 = vpop.eup %4203  ;;  %4205 = vpow2.f32 %v1107_v51  ;;  %v965_v59 = vsub.f32 0.0, %v885_v25  ;;  %v909_v25 = vadd.f32 %v6209_v0, %v6286_v54 }
 0x243   : > { %2799 = vxpose.xlu0.b32.cont [12/16] (narrow) %v6305_v44, 16  ;;  %v6309_v56 = vmul.f32 %v4204_v17, %v6249_v38  ;;  %v891_v38 = vadd.f32 %v6209_v0, %v5869_v33  ;;  %v890_v17 = vadd.f32 %v6209_v0, %v5890_v19  ;;  %v888_v33 = vadd.f32 %v6209_v0, %v5943_v42 }
 0x244   : > { %v887_v19 = vadd.f32 %v6209_v0, %v5962_v20  ;;  %v989_v54 = vsub.f32 0.0, %v909_v25 }
 0x245   : > { %6782 = vst [vmem:[#allocation11_spill] sm:$0xff] %v6309_v56  ;;  %v971_v18 = vsub.f32 0.0, %v891_v38  ;;  %v970_v16 = vsub.f32 0.0, %v890_v17  ;;  %v968_v43 = vsub.f32 0.0, %v888_v33  ;;  %v886_v38 = vadd.f32 %v6209_v0, %v6008_v27  ;;  %v6343_v17 = vpop.xlane.xlu1 %793 }
 0x246   : > { %v967_v9 = vsub.f32 0.0, %v887_v19 }
 0x247   : > { %2800 = vxpose.xlu0.b32.cont [13/16] (narrow) %v6312_v4, 16  ;;  %v1105_v56 = vmul.f32 1.442695, %v971_v18  ;;  %v1103_v31 = vmul.f32 1.442695, %v970_v16  ;;  %v966_v18 = vsub.f32 0.0, %v886_v38 }
 0x248   : > { %v1099_v42 = vmul.f32 1.442695, %v968_v43  ;;  %v1097_v20 = vmul.f32 1.442695, %v967_v9  ;;  %v1093_v16 = vmul.f32 1.442695, %v965_v59  ;;  %v908_v59 = vadd.f32 %v6209_v0, %v806_v23 }
 0x249   : > { %4207 = vpow2.f32 %v1105_v56  ;;  %v1095_v51 = vmul.f32 1.442695, %v966_v18  ;;  %v6345_v33 = vpop.xlane.xlu1 %787 }
 0x24a   : > { %4209 = vpow2.f32 %v1103_v31 }
 0x24b   : > { %2801 = vxpose.xlu0.b32.cont [14/16] (narrow) %v6316_v8, 16  ;;  %4211 = vpow2.f32 %v1101_v48 }
 0x24c   : > { %4213 = vpow2.f32 %v1099_v42 }
 0x24d   : > { %4215 = vpow2.f32 %v1097_v20 }
 0x24e   : > { %4217 = vpow2.f32 %v1095_v51  ;;  %v797_v51 = vpop.xlane.xlu0 %796 }
 0x24f   : > { %2802 = vxpose.xlu0.b32.cont [15/16] (narrow) %v6322_v29, 16  ;;  %v4206_v27 = vpop.eup %4205  ;;  %4219 = vpow2.f32 %v1093_v16 }
 0x250   : > { %v1212_v31 = vadd.f32 1.0, %v4206_v27 }
 0x252   : > { %4221 = vrcp.f32 %v1212_v31  ;;  %v988_v31 = vsub.f32 0.0, %v908_v59  ;;  %v791_v25 = vpop.xlane.xlu0 %790 }
 0x253   : > { %2803 = vxpose.xlu0.b32.end [16/16] (narrow) %v6330_v36, 16 }
 0x256   : > { %v4208_v10 = vpop.eup %4207  ;;  %v785_v59 = vpop.xlane.xlu0 %784 }
 0x257   : > { %v4210_v43 = vpop.eup %4209  ;;  %v1211_v38 = vadd.f32 1.0, %v4208_v10 }
 0x258   : > { %v4212_v48 = vpop.eup %4211  ;;  %v1210_v18 = vadd.f32 1.0, %v4210_v43  ;;  %v1141_v43 = vmul.f32 1.442695, %v989_v54 }
 0x259   : > { %v4214_v20 = vpop.eup %4213  ;;  %4223 = vrcp.f32 %v1211_v38  ;;  %v1209_v27 = vadd.f32 1.0, %v4212_v48  ;;  %v905_v48 = vadd.f32 %v6209_v0, %v797_v51 }
 0x25a   : > { %v4216_v10 = vpop.eup %4215  ;;  %4225 = vrcp.f32 %v1210_v18  ;;  %v1208_v23 = vadd.f32 1.0, %v4214_v20  ;;  %v903_v20 = vadd.f32 %v6209_v0, %v791_v25 }
 0x25b   : > { %4227 = vrcp.f32 %v1209_v27  ;;  %v985_v18 = vsub.f32 0.0, %v905_v48 }
 0x25c   : > { %4229 = vrcp.f32 %v1208_v23 }
 0x25d   : > { %v1133_v27 = vmul.f32 1.442695, %v985_v18  ;;  %v6788_v18 = vld [vmem:[#allocation9_spill] sm:$0xff] }
 0x266   : > { %v3783_v56 = vpop.trf.xlu1 }
 0x267   : > { %v3784_v19 = vunpack.i.l.bf16 %v3783_v56  ;;  %v3787_v16 = vunpack.i.h.bf16 %v3783_v56  ;;  %v4218_v56 = vpop.eup %4217 }
 0x269   : > { %3485 = vmatprep.mubr.f32.mxu0 %v3784_v19  ;;  %3520 = vmatprep.mubr.f32.mxu1 %v3784_v19  ;;  %v907_v19 = vadd.f32 %v6209_v0, %v803_v41  ;;  %v4220_v41 = vpop.eup %4219 }
 0x26a   : > { %v6347_v9 = vpop.trf.xlu1 }
 0x26b   : > { %v3789_v42 = vunpack.i.l.bf16 %v6347_v9  ;;  %v987_v38 = vsub.f32 0.0, %v907_v19 }
 0x26d   : > { %3486 = vmatmul.mubr.f32.vlgmr.msra.gmra.mxu0 %v3789_v42  ;;  %3521 = vmatmul.mubr.f32.vlgmr.msra.gmra.mxu1 %v3789_v42  ;;  %v904_v42 = vadd.f32 %v6209_v0, %v6343_v17 }
 0x26e   : > { %3524 = vmatpush3.msra.mxu0 %v6199_v22  ;;  %3559 = vmatpush3.msra.mxu1 %v6207_v6  ;;  %v906_v22 = vadd.f32 %v6209_v0, %v800_v28  ;;  %v1207_v6 = vadd.f32 1.0, %v4216_v10  ;;  %v1139_v28 = vmul.f32 1.442695, %v988_v31  ;;  %v983_v10 = vsub.f32 0.0, %v903_v20 }
 0x26f   : > { %3525 = vmatprep.subr.mxu0 %v6279_v12  ;;  %3555 = vmatprep.mubr.f32.mxu0 %v3787_v16  ;;  %v984_v17 = vsub.f32 0.0, %v904_v42 }
 0x270   : > { %3560 = vmatprep.subr.mxu1 %v5865_v1  ;;  %3590 = vmatprep.mubr.f32.mxu1 %v3787_v16  ;;  %4231 = vrcp.f32 %v1207_v6  ;;  %v1129_v23 = vmul.f32 1.442695, %v983_v10 }
 0x271   : > { %3526 = vmatpush3.msra.mxu0 %v6279_v12  ;;  %3561 = vmatpush3.msra.mxu1 %v5865_v1  ;;  %v1206_v1 = vadd.f32 1.0, %v4218_v56  ;;  %v986_v12 = vsub.f32 0.0, %v906_v22  ;;  %4233 = vpow2.f32 %v1141_v43  ;;  %v1131_v54 = vmul.f32 1.442695, %v984_v17 }
 0x272   : > { %3527 = vmatprep.subr.mxu0 %v6273_v14  ;;  %3562 = vmatprep.subr.mxu1 %v5845_v61 }
 0x273   : > { %3528 = vmatpush3.msra.mxu0 %v6273_v14  ;;  %3563 = vmatpush3.msra.mxu1 %v5845_v61  ;;  %v1205_v61 = vadd.f32 1.0, %v4220_v41  ;;  %v1137_v14 = vmul.f32 1.442695, %v987_v38  ;;  %4235 = vrcp.f32 %v1206_v1 }
 0x274   : > { %3529 = vmatprep.subr.mxu0 %v6266_v46  ;;  %3564 = vmatprep.subr.mxu1 %v5854_v53  ;;  %4237 = vpow2.f32 %v1139_v28  ;;  %v3792_v28 = vunpack.i.h.bf16 %v6347_v9 }
 0x275   : > { %3530 = vmatpush3.msra.mxu0 %v6266_v46  ;;  %3565 = vmatpush3.msra.mxu1 %v5854_v53  ;;  %v4222_v53 = vpop.eup %4221  ;;  %v1135_v46 = vmul.f32 1.442695, %v986_v12  ;;  %4239 = vrcp.f32 %v1205_v61  ;;  %v6784_v12 = vld [vmem:[#allocation17_spill] sm:$0xff] }
 0x276   : > { %3531 = vmatprep.subr.mxu0 %v6259_v55  ;;  %3566 = vmatprep.subr.mxu1 %v5873_v37  ;;  %v4224_v16 = vpop.eup %4223  ;;  %4241 = vpow2.f32 %v1137_v14 }
 0x277   : > { %3532 = vmatpush3.msra.mxu0 %v6259_v55  ;;  %3567 = vmatpush3.msra.mxu1 %v5873_v37  ;;  %v902_v37 = vadd.f32 %v6209_v0, %v6345_v33  ;;  %4243 = vpow2.f32 %v1135_v46  ;;  %v2011_v19 = vmul.f32 %v4224_v16, %v6166_v62  ;;  %v6789_v46 = vld [vmem:[#allocation30_spill] sm:$0xff] }
 0x278   : > { %3533 = vmatprep.subr.mxu0 %v6246_v15  ;;  %3568 = vmatprep.subr.mxu1 %v5880_v35  ;;  %4245 = vpow2.f32 %v1133_v27  ;;  %v6792_v16 = vld [vmem:[#allocation18_spill] sm:$0xff] }
 0x279   : > { %3534 = vmatpush3.msra.mxu0 %v6246_v15  ;;  %3569 = vmatpush3.msra.mxu1 %v5880_v35  ;;  %v901_v35 = vadd.f32 %v6209_v0, %v785_v59  ;;  %v2012_v15 = vmul.f32 %v4222_v53, %v6175_v30  ;;  %v982_v0 = vsub.f32 0.0, %v902_v37  ;;  %4247 = vpow2.f32 %v1131_v54  ;;  %v6796_v54 = vld [vmem:[#allocation26_spill] sm:$0xff] }
 0x27a   : > { %3535 = vmatprep.subr.mxu0 %v6237_v11  ;;  %3570 = vmatprep.subr.mxu1 %v5903_v3  ;;  %v3347_v55 = vpop.f32.mrf.mxu0  ;;  %v3382_v51 = vpop.f32.mrf.mxu1  ;;  %4249 = vpow2.f32 %v1129_v23  ;;  %v6798_v23 = vld [vmem:[#allocation28_spill] sm:$0xff] }
 0x27b   : > { %3536 = vmatpush3.msra.mxu0 %v6237_v11  ;;  %3571 = vmatpush3.msra.mxu1 %v5903_v3  ;;  %2145 = vst.msk [vmem:[%s6399_s18 + $0x8] sm:$0xff] %vm590_vm0, %v3347_v55  ;;  %v4226_v3 = vpop.eup %4225  ;;  %v981_v56 = vsub.f32 0.0, %v901_v35  ;;  %v1127_v31 = vmul.f32 1.442695, %v982_v0  ;;  %v6793_v35 = vld [vmem:[#allocation22_spill] sm:$0xff] }
 0x27c   : > { %2223 = vst.msk [vmem:[%s6388_s17 + $0x8] sm:$0xff] %vm2221_vm1, %v3382_v51  ;;  %3537 = vmatprep.subr.mxu0 %v6222_v63  ;;  %3572 = vmatprep.subr.mxu1 %v5933_v58  ;;  %v2135_v11 = vpop.f32.mrf.mxu0  ;;  %v2212_v33 = vpop.f32.mrf.mxu1  ;;  %v6791_v51 = vld [vmem:[#allocation19_spill] sm:$0xff] }
 0x27d   : > { %3538 = vmatpush3.msra.mxu0 %v6222_v63  ;;  %3573 = vmatpush3.msra.mxu1 %v5933_v58  ;;  %2144 = vst.msk [vmem:[%s6399_s18] sm:$0xff] %vm590_vm0, %v2135_v11  ;;  %v4228_v30 = vpop.eup %4227  ;;  %v2010_v58 = vmul.f32 %v4226_v3, %v6148_v26  ;;  %v1125_v6 = vmul.f32 1.442695, %v981_v56  ;;  %4251 = vpow2.f32 %v1127_v31  ;;  %v6795_v3 = vld [vmem:[#allocation24_spill] sm:$0xff]  ;;  %v6800_v31 = vld [vmem:[#allocation29_spill] sm:$0xff] }
 0x27e   : > { %2222 = vst.msk [vmem:[%s6388_s17] sm:$0xff] %vm2221_vm1, %v2212_v33  ;;  %3539 = vmatprep.subr.mxu0 %v6203_v5  ;;  %3574 = vmatprep.subr.mxu1 %v2012_v15  ;;  %v4230_v63 = vpop.eup %4229  ;;  %v2009_v62 = vmul.f32 %v4228_v30, %v6113_v50  ;;  %v6797_v30 = vld [vmem:[#allocation21_spill] sm:$0xff] }
 0x27f   : > { %3540 = vmatpush3.msra.mxu0 %v6203_v5  ;;  %3575 = vmatpush3.msra.mxu1 %v2012_v15  ;;  %v4232_v22 = vpop.eup %4231  ;;  %v2008_v26 = vmul.f32 %v4230_v63, %v6078_v47  ;;  %4253 = vpow2.f32 %v1125_v6  ;;  %v6794_v15 = vld [vmem:[#allocation27_spill] sm:$0xff]  ;;  %v6799_v63 = vld [vmem:[#allocation25_spill] sm:$0xff] }
 0x280   : > { %3541 = vmatprep.subr.mxu0 %v6181_v57  ;;  %3576 = vmatprep.subr.mxu1 %v2011_v19  ;;  %v4234_v5 = vpop.eup %4233  ;;  %v2007_v50 = vmul.f32 %v4232_v22, %v6038_v13  ;;  %v6783_v13 = vld [vmem:[#allocation12_spill] sm:$0xff]  ;;  %v6801_v6 = vld [vmem:[#allocation23_spill] sm:$0xff] }
 0x281   : > { %3542 = vmatpush3.msra.mxu0 %v6181_v57  ;;  %3577 = vmatpush3.msra.mxu1 %v2011_v19  ;;  %v4236_v57 = vpop.eup %4235  ;;  %v1229_v43 = vadd.f32 1.0, %v4234_v5 }
 0x282   : > { %3543 = vmatprep.subr.mxu0 %v6163_v60  ;;  %3578 = vmatprep.subr.mxu1 %v2010_v58  ;;  %v4238_v41 = vpop.eup %4237  ;;  %v2006_v47 = vmul.f32 %v4236_v57, %v5999_v2 }
 0x283   : > { %3544 = vmatpush3.msra.mxu0 %v6163_v60  ;;  %3579 = vmatpush3.msra.mxu1 %v2010_v58  ;;  %v4240_v60 = vpop.eup %4239  ;;  %4255 = vrcp.f32 %v1229_v43 }
 0x284   : > { %3545 = vmatprep.subr.mxu0 %v6145_v45  ;;  %3580 = vmatprep.subr.mxu1 %v2009_v62  ;;  %v4242_v38 = vpop.eup %4241  ;;  %v2005_v25 = vmul.f32 %v4240_v60, %v6783_v13 }
 0x285   : > { %3546 = vmatpush3.msra.mxu0 %v6145_v45  ;;  %3581 = vmatpush3.msra.mxu1 %v2009_v62  ;;  %v1228_v45 = vadd.f32 1.0, %v4238_v41  ;;  %v4244_v48 = vpop.eup %4243  ;;  %v6803_v41 = vld [vmem:[#allocation6_spill] sm:$0xff] }
 0x286   : > { %3547 = vmatprep.subr.mxu0 %v6111_v40  ;;  %3582 = vmatprep.subr.mxu1 %v2008_v26  ;;  %v4246_v1 = vpop.eup %4245  ;;  %v1226_v2 = vadd.f32 1.0, %v4244_v48 }
 0x287   : > { %3548 = vmatpush3.msra.mxu0 %v6111_v40  ;;  %3583 = vmatpush3.msra.mxu1 %v2008_v26  ;;  %v1227_v40 = vadd.f32 1.0, %v4242_v38  ;;  %4257 = vrcp.f32 %v1228_v45  ;;  %v1225_v42 = vadd.f32 1.0, %v4246_v1  ;;  %v6802_v26 = vld [vmem:[#allocation20_spill] sm:$0xff]  ;;  %v6805_v38 = vld [vmem:[#allocation15_spill] sm:$0xff] }
 0x288   : > { %3549 = vmatprep.subr.mxu0 %v6076_v21  ;;  %3584 = vmatprep.subr.mxu1 %v2007_v50 }
 0x289   : > { %3550 = vmatpush3.msra.mxu0 %v6076_v21  ;;  %3585 = vmatpush3.msra.mxu1 %v2007_v50  ;;  %v4248_v21 = vpop.eup %4247  ;;  %4259 = vrcp.f32 %v1227_v40  ;;  %v6804_v50 = vld [vmem:[#allocation14_spill] sm:$0xff] }
 0x28a   : > { %3551 = vmatprep.subr.mxu0 %v6036_v52  ;;  %3586 = vmatprep.subr.mxu1 %v2006_v47  ;;  %4261 = vrcp.f32 %v1226_v2  ;;  %v1224_v9 = vadd.f32 1.0, %v4248_v21 }
 0x28b   : > { %3552 = vmatpush3.msra.mxu0 %v6036_v52  ;;  %3587 = vmatpush3.msra.mxu1 %v2006_v47  ;;  %v4250_v52 = vpop.eup %4249  ;;  %4263 = vrcp.f32 %v1225_v42 }
 0x28c   : > { %3553 = vmatprep.subr.mxu0 %v6784_v12  ;;  %3588 = vmatprep.subr.mxu1 %v2005_v25  ;;  %v4252_v61 = vpop.eup %4251  ;;  %v1223_v14 = vadd.f32 1.0, %v4250_v52  ;;  %4265 = vrcp.f32 %v1224_v9 }
 0x28d   : > { %3554 = vmatpush3.msra.mxu0 %v6784_v12  ;;  %3589 = vmatpush3.msra.mxu1 %v2005_v25 }
 0x28e   : > { %3556 = vmatmul.mubr.f32.vlgmr.msra.gmra.mxu0 %v3792_v28  ;;  %3591 = vmatmul.mubr.f32.vlgmr.msra.gmra.mxu1 %v3792_v28  ;;  %4267 = vrcp.f32 %v1223_v14 }
 0x28f   : > { %3593 = vmatprep.subr.mxu0 %v6330_v36  ;;  %3628 = vmatprep.subr.mxu1 %v6299_v49 }
 0x290   : > { %3594 = vmatpush3.msra.mxu0 %v6330_v36  ;;  %3629 = vmatpush3.msra.mxu1 %v6299_v49  ;;  %v4254_v49 = vpop.eup %4253 }
 0x291   : > { %3595 = vmatprep.subr.mxu0 %v6322_v29  ;;  %3630 = vmatprep.subr.mxu1 %v6294_v39 }
 0x292   : > { %3596 = vmatpush3.msra.mxu0 %v6322_v29  ;;  %3631 = vmatpush3.msra.mxu1 %v6294_v39  ;;  %v1222_v29 = vadd.f32 1.0, %v4252_v61  ;;  %v4256_v39 = vpop.eup %4255 }
 0x293   : > { %3597 = vmatprep.subr.mxu0 %v6316_v8  ;;  %3632 = vmatprep.subr.mxu1 %v6290_v24  ;;  %v2804_v22 = vpop.trf.xlu0 }
 0x294   : > { %3598 = vmatpush3.msra.mxu0 %v6316_v8  ;;  %3633 = vmatpush3.msra.mxu1 %v6290_v24  ;;  %v1221_v8 = vadd.f32 1.0, %v4254_v49  ;;  %v6785_v24 = vld [vmem:[#allocation7_spill] sm:$0xff]  ;;  %v4258_v36 = vpop.eup %4257  ;;  %4269 = vrcp.f32 %v1222_v29 }
 0x295   : > { %3599 = vmatprep.subr.mxu0 %v6312_v4  ;;  %3634 = vmatprep.subr.mxu1 %v6288_v34 }
 0x296   : > { %3600 = vmatpush3.msra.mxu0 %v6312_v4  ;;  %3635 = vmatpush3.msra.mxu1 %v6288_v34  ;;  %v6786_v34 = vld [vmem:[#allocation16_spill] sm:$0xff]  ;;  %v6787_v4 = vld [vmem:[#allocation11_spill] sm:$0xff]  ;;  %v4260_v20 = vpop.eup %4259  ;;  %4271 = vrcp.f32 %v1221_v8 }
 0x297   : > { %3601 = vmatprep.subr.mxu0 %v6305_v44  ;;  %3636 = vmatprep.subr.mxu1 %v6292_v7  ;;  %v4262_v59 = vpop.eup %4261  ;;  %v2027_v27 = vmul.f32 %v4260_v20, %v6792_v16  ;;  %v2805_v43 = vpop.trf.xlu0 }
 0x298   : > { %3602 = vmatpush3.msra.mxu0 %v6305_v44  ;;  %3637 = vmatpush3.msra.mxu1 %v6292_v7  ;;  %v2029_v44 = vmul.f32 %v4256_v39, %v6788_v18  ;;  %v4264_v10 = vpop.eup %4263  ;;  %v2026_v11 = vmul.f32 %v4262_v59, %v6794_v15 }
 0x299   : > { %3603 = vmatprep.subr.mxu0 %v6297_v32  ;;  %3638 = vmatprep.subr.mxu1 %v6785_v24  ;;  %v4266_v33 = vpop.eup %4265  ;;  %v2025_v0 = vmul.f32 %v4264_v10, %v6796_v54 }
 0x29a   : > { %3604 = vmatpush3.msra.mxu0 %v6297_v32  ;;  %3639 = vmatpush3.msra.mxu1 %v6785_v24  ;;  %v6790_v32 = vld [vmem:[#allocation13_spill] sm:$0xff]  ;;  %v2024_v56 = vmul.f32 %v4266_v33, %v6798_v23 }
 0x29b   : > { %3605 = vmatprep.subr.mxu0 %v6786_v34  ;;  %3640 = vmatprep.subr.mxu1 %v6787_v4  ;;  %v2028_v17 = vmul.f32 %v4258_v36, %v6790_v32  ;;  %v4268_v19 = vpop.eup %4267 }
 0x29c   : > { %3606 = vmatpush3.msra.mxu0 %v6786_v34  ;;  %3641 = vmatpush3.msra.mxu1 %v6787_v4  ;;  %v3417_v7 = vpop.f32.mrf.mxu0  ;;  %v3452_v53 = vpop.f32.mrf.mxu1  ;;  %v2023_v62 = vmul.f32 %v4268_v19, %v6800_v31 }
 0x29d   : > { %3607 = vmatprep.subr.mxu0 %v6789_v46  ;;  %3642 = vmatprep.subr.mxu1 %v2029_v44  ;;  %3115 = vst.msk [vmem:[%s6399_s18 + $0x18] sm:$0xff] %vm590_vm0, %v3417_v7 }
 0x29e   : > { %3117 = vst.msk [vmem:[%s6388_s17 + $0x18] sm:$0xff] %vm2221_vm1, %v3452_v53  ;;  %3608 = vmatpush3.msra.mxu0 %v6789_v46  ;;  %3643 = vmatpush3.msra.mxu1 %v2029_v44  ;;  %v2322_v37 = vpop.f32.mrf.mxu0  ;;  %v2400_v55 = vpop.f32.mrf.mxu1 }
 0x29f   : > { %3609 = vmatprep.subr.mxu0 %v6791_v51  ;;  %3644 = vmatprep.subr.mxu1 %v2028_v17  ;;  %3114 = vst.msk [vmem:[%s6399_s18 + $0x10] sm:$0xff] %vm590_vm0, %v2322_v37 }
 0x2a0   : > { %3116 = vst.msk [vmem:[%s6388_s17 + $0x10] sm:$0xff] %vm2221_vm1, %v2400_v55  ;;  %3610 = vmatpush3.msra.mxu0 %v6791_v51  ;;  %3645 = vmatpush3.msra.mxu1 %v2028_v17 }
 0x2a1   : > { %3611 = vmatprep.subr.mxu0 %v6793_v35  ;;  %3646 = vmatprep.subr.mxu1 %v2027_v27  ;;  %v4270_v58 = vpop.eup %4269 }
 0x2a2   : > { %3612 = vmatpush3.msra.mxu0 %v6793_v35  ;;  %3647 = vmatpush3.msra.mxu1 %v2027_v27  ;;  %v2022_v57 = vmul.f32 %v4270_v58, %v6802_v26 }
 0x2a3   : > { %3613 = vmatprep.subr.mxu0 %v6795_v3  ;;  %3648 = vmatprep.subr.mxu1 %v2026_v11  ;;  %v4272_v5 = vpop.eup %4271 }
 0x2a4   : > { %3614 = vmatpush3.msra.mxu0 %v6795_v3  ;;  %3649 = vmatpush3.msra.mxu1 %v2026_v11  ;;  %v2021_v60 = vmul.f32 %v4272_v5, %v6804_v50 }
 0x2a5   : > { %3615 = vmatprep.subr.mxu0 %v6797_v30  ;;  %3650 = vmatprep.subr.mxu1 %v2025_v0 }
 0x2a6   : > { %3616 = vmatpush3.msra.mxu0 %v6797_v30  ;;  %3651 = vmatpush3.msra.mxu1 %v2025_v0 }
 0x2a7   : > { %3617 = vmatprep.subr.mxu0 %v6799_v63  ;;  %3652 = vmatprep.subr.mxu1 %v2024_v56 }
 0x2a8   : > { %3618 = vmatpush3.msra.mxu0 %v6799_v63  ;;  %3653 = vmatpush3.msra.mxu1 %v2024_v56 }
 0x2a9   : > { %3619 = vmatprep.subr.mxu0 %v6801_v6  ;;  %3654 = vmatprep.subr.mxu1 %v2023_v62 }
 0x2aa   : > { %3620 = vmatpush3.msra.mxu0 %v6801_v6  ;;  %3655 = vmatpush3.msra.mxu1 %v2023_v62 }
 0x2ab   : > { %3621 = vmatprep.subr.mxu0 %v6803_v41  ;;  %3625 = vmatprep.mubr.f32.mxu0 %v2804_v22 }
 0x2ac   : > { %3656 = vmatprep.subr.mxu1 %v2022_v57  ;;  %3660 = vmatprep.mubr.f32.mxu1 %v2804_v22 }
 0x2ad   : > { %3622 = vmatpush3.msra.mxu0 %v6803_v41  ;;  %3657 = vmatpush3.msra.mxu1 %v2022_v57 }
 0x2ae   : > { %3623 = vmatprep.subr.mxu0 %v6805_v38  ;;  %3658 = vmatprep.subr.mxu1 %v2021_v60 }
 0x2af   : > { %3624 = vmatpush3.msra.mxu0 %v6805_v38  ;;  %3659 = vmatpush3.msra.mxu1 %v2021_v60 }
 0x2b0   : > { %3626 = vmatmul.mubr.f32.vlgmr.msra.gmra.mxu0 %v2805_v43  ;;  %3661 = vmatmul.mubr.f32.vlgmr.msra.gmra.mxu1 %v2805_v43 }
 0x32d   : > { %v3487_v47 = vpop.f32.mrf.mxu0  ;;  %v3522_v45 = vpop.f32.mrf.mxu1 }
 0x32e   : > { %3119 = vst.msk [vmem:[%s6399_s18 + $0x28] sm:$0xff] %vm590_vm0, %v3487_v47 }
 0x32f   : > { %3121 = vst.msk [vmem:[%s6388_s17 + $0x28] sm:$0xff] %vm2221_vm1, %v3522_v45  ;;  %v2510_v48 = vpop.f32.mrf.mxu0  ;;  %v2588_v13 = vpop.f32.mrf.mxu1 }
 0x330   : > { %3118 = vst.msk [vmem:[%s6399_s18 + $0x20] sm:$0xff] %vm590_vm0, %v2510_v48 }
 0x331   : > { %3120 = vst.msk [vmem:[%s6388_s17 + $0x20] sm:$0xff] %vm2221_vm1, %v2588_v13 }
 0x34e   : > { %v3557_v25 = vpop.f32.mrf.mxu0  ;;  %v3592_v40 = vpop.f32.mrf.mxu1 }
 0x34f   : > { %3123 = vst.msk [vmem:[%s6399_s18 + $0x38] sm:$0xff] %vm590_vm0, %v3557_v25 }
 0x350   : > { %3125 = vst.msk [vmem:[%s6388_s17 + $0x38] sm:$0xff] %vm2221_vm1, %v3592_v40  ;;  %v2698_v1 = vpop.f32.mrf.mxu0  ;;  %v2776_v28 = vpop.f32.mrf.mxu1 }
 0x351   : > { %3122 = vst.msk [vmem:[%s6399_s18 + $0x30] sm:$0xff] %vm590_vm0, %v2698_v1 }
 0x352   : > { %3124 = vst.msk [vmem:[%s6388_s17 + $0x30] sm:$0xff] %vm2221_vm1, %v2776_v28 }
 0x370   : > { %v3627_v12 = vpop.f32.mrf.mxu0  ;;  %v3662_v2 = vpop.f32.mrf.mxu1 }
 0x371   : > { %3127 = vst.msk [vmem:[%s6399_s18 + $0x48] sm:$0xff] %vm590_vm0, %v3627_v12 }
 0x372   : > { %3129 = vst.msk [vmem:[%s6388_s17 + $0x48] sm:$0xff] %vm2221_vm1, %v3662_v2  ;;  %v2886_v21 = vpop.f32.mrf.mxu0  ;;  %v2964_v42 = vpop.f32.mrf.mxu1 }
 0x373   : > { %3126 = vst.msk [vmem:[%s6399_s18 + $0x40] sm:$0xff] %vm590_vm0, %v2886_v21 }
 0x374   : > { %3128 = vst.msk [vmem:[%s6388_s17 + $0x40] sm:$0xff] %vm2221_vm1, %v2964_v42 }
 0x375   : > { %4378 = shalt.err (!%p4375_p3)
}
 0x376   : > { %s4379_s13 = scalar_lea.hbm %s6523_s27, 1280  ;;  %s4383_s10 = scalar_lea.hbm %s6582_s5, 2560 }
 0x377   : > { %p4380_p4 = scmp.ne.s32.totalorder %s6523_s27, %s4379_s13  ;;  %p4384_p9 = scmp.lt.s32.totalorder %s6523_s27, %s6582_s5 }
 0x378   : > { %p4385_p10 = scmp.lt.s32.totalorder %s4383_s10, %s4379_s13 }
 0x379   : > { %p4381_p7 = pnand %p4380_p4, %p4506_p5 }
 0x37a   : > { %p4386_p11 = por %p4385_p10, %p4384_p9 }
 0x37b   : > { %p4382_p8 = pneg %p4381_p7 }
 0x37d   : > { %p4387_p12 = pnand %p4386_p11, %p4382_p8 }
 0x37f   : > { %4390 = shalt.err (!%p4387_p12)
}
 0x380   : > { %s4428_s18 = smov 128   ;;  %s4429_s19 = smov 8  }
 0x381   : > { %3668 = dma.vmem_to_hbm [thread:$0]  (%p4506_p5), %s6525_s20, 1280, %s6523_s27, %s6537_s4, %s4428_s18, %s4428_s18, %s4429_s19  }
 0x382 PF: > { %p3674_p13 = scmp.ge.s32.totalorder %s4425_s26, 2  ;;  %s3013_s21 = sand.u32 1, %s4413_s23  }
 0x383   : > { %s3014_s22 = scalar_lea.sflag [#allocation4], %s3013_s21 }
 0x384   : > { %p3671_p0 = pnand %p3674_p13, %p4510_p6 }
 0x386   : > { %p3672_p1 = pneg %p3671_p0 }
 0x388   : > { %4408 = dma.done.wait (%p3672_p1), %s3014_s22, 1280  }
 0x389   : > { %4410 = vsyncadd (%p3672_p1), %s3014_s22, 4294966016  ;;  %p19_p2 = scmp.ge.s32.totalorder %s4493_s28, 4   ;;  %s6806_s23 = smov %s4417_s24 }
 0x38a   : > { %s6807_s24 = smov %s4421_s25  ;;  %s6808_s25 = smov %s4504_s7 }
 0x38b   : > { %s6809_s26 = smov %s4493_s28  ;;  %21 = sbr.rel (!%p19_p2) target bundleno = 6 (0x6), region = 101 }
 0x390   :  { %3027 = vsyncpa [#allocation4], 1 }
 0x391   :  { %3029 = vsyncpa [#allocation4 + $0x1], 1 }

</bundles_post_ra>
